<compile_context>
chip_gen: v7x
topology: tpu7x:2x2x1
jax: 0.10.0
libtpu: 0.0.40
codegen_flags: <defaults>
</compile_context>

<pallas_src>
import math

import jax
import jax.numpy as jnp
import numpy as np
from jax import lax
from jax.experimental import pallas as pl
from jax.experimental.pallas import tpu as pltpu


# ---------------------------------------------------------------- helpers ----
def _mxu(a, b):
    """(m,k)@(k,n) on the MXU with bf16 operands, f32 accumulation."""
    return lax.dot_general(a.astype(jnp.bfloat16), b.astype(jnp.bfloat16),
                           (((1,), (0,)), ((), ())),
                           preferred_element_type=jnp.float32)


def _dot(a, b):           # f32 (m,k)@(k,n)
    return lax.dot_general(a, b, (((1,), (0,)), ((), ())),
                           preferred_element_type=jnp.float32)


def _dot_t(a, b):         # contract dim0 with dim0: (d,t),(d,h) -> (t,h)
    return lax.dot_general(a, b, (((0,), (0,)), ((), ())),
                           preferred_element_type=jnp.float32)


def _dot_nt(a, b):        # contract dim1 with dim1: (m,k),(n,k) -> (m,n)
    return lax.dot_general(a, b, (((1,), (1,)), ((), ())),
                           preferred_element_type=jnp.float32)


def _layernorm(y, g, b, eps=1e-5):
    mu = jnp.mean(y, axis=-1, keepdims=True)
    var = jnp.mean((y - mu) ** 2, axis=-1, keepdims=True)
    return (y - mu) * lax.rsqrt(var + eps) * g + b


# ---------------------------------------------------------------- wrapper ----
def transformer_forward(x_static, x_dynamic, fourier_coeffs, p, nh):
    f32, bf16 = jnp.float32, jnp.bfloat16
    B, S = x_static.shape
    _, I, T = x_dynamic.shape
    V = fourier_coeffs.shape[1]
    H = p['Ws'].shape[1]
    F = p['W1'].shape[-1]
    OUT = p['Wh'].shape[1]
    depth = p['Wq'].shape[0]
    hd = H // nh
    scale = 1.0 / math.sqrt(hd)
    OUT_PAD = 128                      # lane-dense padded head output width

    # --- operand layout prep (pure layout / weight folding; no compute hoisting)
    xs = x_static.astype(f32)                                              # (B, S)
    xdt = jnp.transpose(x_dynamic.astype(f32), (0, 2, 1)).reshape(B * T, I)

    fre = jnp.real(fourier_coeffs).astype(f32)
    fim = jnp.imag(fourier_coeffs).astype(f32)
    fcat = jnp.concatenate([fre, fim], axis=-1).reshape(B * V, 2 * T)      # (B*V, 2T)

    # real(ifft) as one matmul:  [Re | Im] @ [cos ; -sin] / T
    n = jnp.arange(T, dtype=f32)
    ang = 2.0 * jnp.pi * jnp.outer(n, n) / T
    dft = (jnp.concatenate([jnp.cos(ang), -jnp.sin(ang)], axis=0) / T).astype(bf16)

    ws = p['Ws'].astype(bf16)
    bs = p['bs'].reshape(1, H).astype(f32)
    wdi = p['Wd'][:I].astype(bf16)
    wdv = p['Wd'][I:].astype(f32)       # tiny transposed contraction: keep f32
    bd = p['bd'].reshape(1, H).astype(f32)

    wqkv = jnp.concatenate([p['Wq'], p['Wk'], p['Wv']], axis=-1).astype(bf16)     # (D,H,3H)
    bqkv = jnp.concatenate([p['bq'], p['bk'], p['bv']],
                           axis=-1).reshape(depth, 1, 3 * H).astype(f32)
    wo = p['Wo'].astype(bf16)
    bo = p['bo'].reshape(depth, 1, H).astype(f32)
    g1 = p['g1'].reshape(depth, 1, H).astype(f32)
    be1 = p['be1'].reshape(depth, 1, H).astype(f32)
    w1 = p['W1'].astype(bf16)
    b1 = p['b1'].reshape(depth, 1, F).astype(f32)
    w2 = p['W2'].astype(bf16)
    b2 = p['b2'].reshape(depth, 1, H).astype(f32)
    g2 = p['g2'].reshape(depth, 1, H).astype(f32)
    be2 = p['be2'].reshape(depth, 1, H).astype(f32)

    whs = jnp.zeros((H, OUT_PAD), f32).at[:, :OUT].set(p['Wh'][:H]).astype(bf16)
    whd = jnp.zeros((H, OUT_PAD), f32).at[:, :OUT].set(p['Wh'][H:]).astype(bf16)
    bh = jnp.zeros((1, OUT_PAD), f32).at[:, :OUT].set(p['bh'].reshape(1, OUT))

    # --- batch-block grid (single block at this size; "parallel" lets Mosaic
    #     shard batch blocks across TensorCores / pipeline DMA when B grows).
    BB = B
    grid = (pl.cdiv(B, BB),)

    def kernel(xs_ref, xdt_ref, fcat_ref, dft_ref,
               ws_ref, bs_ref, wdi_ref, wdv_ref, bd_ref,
               wqkv_ref, bqkv_ref, wo_ref, bo_ref,
               g1_ref, be1_ref, w1_ref, b1_ref, w2_ref, b2_ref,
               g2_ref, be2_ref, whs_ref, whd_ref, bh_ref, out_ref):
        # iDFT for every (batch, vital) row at once:  (BB*V, 2T) @ (2T, T)
        xvit = _mxu(fcat_ref[...], dft_ref[...])                           # (BB*V, T) f32

        # dynamic projection, batch stacked into M:  (BB*T, I) @ (I, H)
        x = _mxu(xdt_ref[...], wdi_ref[...])                               # (BB*T, H)
        xv_rows = []
        for b in range(BB):
            xv_b = xvit[b * V:(b + 1) * V, :]                              # (V, T)
            xv_rows.append(_dot_t(xv_b, wdv_ref[...]))                     # (T, H)
        x = x + jnp.concatenate(xv_rows, axis=0) + bd_ref[...]             # (BB*T, H)

        # Transformer encoder (post-norm, ReLU FFN); dropout = identity (eval).
        for l in range(depth):
            qkv = _mxu(x, wqkv_ref[l]) + bqkv_ref[l]                       # (BB*T, 3H)
            attn_rows = []
            for b in range(BB):
                r = b * T
                heads = []
                for h in range(nh):
                    c = h * hd
                    q = qkv[r:r + T, c:c + hd]                             # (T, hd)
                    k = qkv[r:r + T, H + c:H + c + hd]
                    v = qkv[r:r + T, 2 * H + c:2 * H + c + hd]
                    s = _dot_nt(q, k) * scale                              # (T, T)
                    s = s - jnp.max(s, axis=-1, keepdims=True)
                    e = jnp.exp(s)
                    pr = e * pl.reciprocal(
                        jnp.sum(e, axis=-1, keepdims=True), approx=True)
                    heads.append(_dot(pr, v))                              # (T, hd)
                attn_rows.append(jnp.concatenate(heads, axis=-1))          # (T, H)
            attn_cat = jnp.concatenate(attn_rows, axis=0)                  # (BB*T, H)
            attn = _mxu(attn_cat, wo_ref[l]) + bo_ref[l]                   # one out-proj
            x = _layernorm(x + attn, g1_ref[l], be1_ref[l])

            f = jnp.maximum(_mxu(x, w1_ref[l]) + b1_ref[l], 0.0)           # (BB*T, F)
            f = _mxu(f, w2_ref[l]) + b2_ref[l]                             # (BB*T, H)
            x = _layernorm(x + f, g2_ref[l], be2_ref[l])

        # final head, batched; single lane-dense (BB, 128) store.
        h_static = _mxu(xs_ref[...], ws_ref[...]) + bs_ref[...]            # (BB, H)
        h_dyn = jnp.concatenate(
            [x[b * T + T - 1:b * T + T, :] for b in range(BB)], axis=0)    # (BB, H)
        out = _mxu(h_static, whs_ref[...]) + _mxu(h_dyn, whd_ref[...]) + bh_ref[...]
        out_ref[...] = out

    def _const(shape):                          # weights resident across the grid
        if len(shape) == 2:
            return pl.BlockSpec(shape, lambda i: (0, 0))
        return pl.BlockSpec(shape, lambda i: (0, 0, 0))

    in_specs = [
        pl.BlockSpec((BB, S), lambda i: (i, 0)),               # x_static
        pl.BlockSpec((BB * T, I), lambda i: (i, 0)),           # x_dynamic (T-major)
        pl.BlockSpec((BB * V, 2 * T), lambda i: (i, 0)),       # fourier [Re|Im]
        _const((2 * T, T)),                                    # iDFT matrix
        _const((S, H)), _const((1, H)),                        # Ws, bs
        _const((I, H)), _const((V, H)), _const((1, H)),        # Wd_i, Wd_v, bd
        _const((depth, H, 3 * H)), _const((depth, 1, 3 * H)),  # Wqkv, bqkv
        _const((depth, H, H)), _const((depth, 1, H)),          # Wo, bo
        _const((depth, 1, H)), _const((depth, 1, H)),          # g1, be1
        _const((depth, H, F)), _const((depth, 1, F)),          # W1, b1
        _const((depth, F, H)), _const((depth, 1, H)),          # W2, b2
        _const((depth, 1, H)), _const((depth, 1, H)),          # g2, be2
        _const((H, OUT_PAD)), _const((H, OUT_PAD)), _const((1, OUT_PAD)),  # head
    ]
    out_spec = pl.BlockSpec((BB, OUT_PAD), lambda i: (i, 0))

    out_padded = pl.pallas_call(
        kernel,
        out_shape=jax.ShapeDtypeStruct((B, OUT_PAD), f32),
        grid_spec=pltpu.PrefetchScalarGridSpec(
            num_scalar_prefetch=0, grid=grid,
            in_specs=in_specs, out_specs=out_spec),
        compiler_params=pltpu.CompilerParams(
            dimension_semantics=("parallel",)),
    )(xs, xdt, fcat, dft, ws, bs, wdi, wdv, bd,
      wqkv, bqkv, wo, bo, g1, be1, w1, b1, w2, b2, g2, be2, whs, whd, bh)

    logits = out_padded[:, :OUT]
    # TODO(synk): the PyTorch module always returns reconstructed_vitals=None.
    return {'logits': logits, 'reconstructed_vitals': None}


# ------------------------------------------------------- pure-JAX reference --
def reference_forward(x_static, x_dynamic, fourier_coeffs, p, nh):
    H = p['Ws'].shape[1]
    hd = H // nh
    depth = p['Wq'].shape[0]

    xvit = jnp.real(jnp.fft.ifft(fourier_coeffs, axis=-1)).astype(jnp.float32)
    xcat = jnp.concatenate([x_dynamic, xvit], axis=1)                      # (B, D, T)
    h_static = x_static @ p['Ws'] + p['bs']
    x = jnp.einsum('bdt,dh->bth', xcat, p['Wd']) + p['bd']
    B, T, _ = x.shape
    for l in range(depth):
        q = (x @ p['Wq'][l] + p['bq'][l]).reshape(B, T, nh, hd).transpose(0, 2, 1, 3)
        k = (x @ p['Wk'][l] + p['bk'][l]).reshape(B, T, nh, hd).transpose(0, 2, 1, 3)
        v = (x @ p['Wv'][l] + p['bv'][l]).reshape(B, T, nh, hd).transpose(0, 2, 1, 3)
        s = jnp.einsum('bhqd,bhkd->bhqk', q, k) / math.sqrt(hd)
        a = jax.nn.softmax(s, axis=-1)
        o = jnp.einsum('bhqk,bhkd->bhqd', a, v).transpose(0, 2, 1, 3).reshape(B, T, H)
        attn = o @ p['Wo'][l] + p['bo'][l]
        x = _layernorm(x + attn, p['g1'][l], p['be1'][l])
        f = jnp.maximum(x @ p['W1'][l] + p['b1'][l], 0.0) @ p['W2'][l] + p['b2'][l]
        x = _layernorm(x + f, p['g2'][l], p['be2'][l])
    h = jnp.concatenate([h_static, x[:, -1]], axis=-1)
    return h @ p['Wh'] + p['bh']


# ------------------------------------------------------------------- main ----
if __name__ == "__main__":
    # configs (small, consistent with the module's forward)
    S, I, V = 6, 3, 5          # static / intervention / vital feature counts
    H, F = 32, 64              # hidden_dim / ff_dim
    NH, D, OUT = 4, 2, 2       # head_num / encoder_depth / out_dim
    B, T = 2, 8                # batch / sequence length

    key = jax.random.PRNGKey(0)
    ks = jax.random.split(key, 26)
    nrm = lambda k, s, sc=0.1: (sc * jax.random.normal(k, s)).astype(jnp.float32)

    params = {
        'Ws': nrm(ks[0], (S, H)),           'bs': nrm(ks[1], (H,)),
        'Wd': nrm(ks[2], (I + V, H)),       'bd': nrm(ks[3], (H,)),
        'Wq': nrm(ks[4], (D, H, H)),        'bq': nrm(ks[5], (D, H)),
        'Wk': nrm(ks[6], (D, H, H)),        'bk': nrm(ks[7], (D, H)),
        'Wv': nrm(ks[8], (D, H, H)),        'bv': nrm(ks[9], (D, H)),
        'Wo': nrm(ks[10], (D, H, H)),       'bo': nrm(ks[11], (D, H)),
        'g1': 1.0 + nrm(ks[12], (D, H)),    'be1': nrm(ks[13], (D, H)),
        'W1': nrm(ks[14], (D, H, F)),       'b1': nrm(ks[15], (D, F)),
        'W2': nrm(ks[16], (D, F, H)),       'b2': nrm(ks[17], (D, H)),
        'g2': 1.0 + nrm(ks[18], (D, H)),    'be2': nrm(ks[19], (D, H)),
        'Wh': nrm(ks[20], (2 * H, OUT)),    'bh': nrm(ks[21], (OUT,)),
    }

    x_static = nrm(ks[22], (B, S), 1.0)
    x_dynamic = nrm(ks[23], (B, I, T), 1.0)
    fourier_coeffs = (jax.random.normal(ks[24], (B, V, T)) +
                      1j * jax.random.normal(ks[25], (B, V, T))).astype(jnp.complex64)

    res = transformer_forward(x_static, x_dynamic, fourier_coeffs, params, nh=NH)
    logits = jax.block_until_ready(res['logits'])

    ref = reference_forward(x_static, x_dynamic, fourier_coeffs, params, NH)
    # bf16 MXU operands (f32 accumulation) => bf16-appropriate tolerance vs f32 ref.
    assert np.allclose(np.asarray(logits), np.asarray(ref), atol=2e-2, rtol=2e-2), \
        (np.asarray(logits), np.asarray(ref))

    print("KERNEL_OK")
</pallas_src>

<mosaic_0001>
module attributes {stable_mosaic.version = 11 : i64} {
  func.func @kernel(%arg0: i32, %arg1: memref<2x6xf32, #tpu.memory_space<vmem>>, %arg2: memref<16x3xf32, #tpu.memory_space<vmem>>, %arg3: memref<10x16xf32, #tpu.memory_space<vmem>>, %arg4: memref<16x8xbf16, #tpu.memory_space<vmem>>, %arg5: memref<6x32xbf16, #tpu.memory_space<vmem>>, %arg6: memref<1x32xf32, #tpu.memory_space<vmem>>, %arg7: memref<3x32xbf16, #tpu.memory_space<vmem>>, %arg8: memref<5x32xf32, #tpu.memory_space<vmem>>, %arg9: memref<1x32xf32, #tpu.memory_space<vmem>>, %arg10: memref<2x32x96xbf16, #tpu.memory_space<vmem>>, %arg11: memref<2x1x96xf32, #tpu.memory_space<vmem>>, %arg12: memref<2x32x32xbf16, #tpu.memory_space<vmem>>, %arg13: memref<2x1x32xf32, #tpu.memory_space<vmem>>, %arg14: memref<2x1x32xf32, #tpu.memory_space<vmem>>, %arg15: memref<2x1x32xf32, #tpu.memory_space<vmem>>, %arg16: memref<2x32x64xbf16, #tpu.memory_space<vmem>>, %arg17: memref<2x1x64xf32, #tpu.memory_space<vmem>>, %arg18: memref<2x64x32xbf16, #tpu.memory_space<vmem>>, %arg19: memref<2x1x32xf32, #tpu.memory_space<vmem>>, %arg20: memref<2x1x32xf32, #tpu.memory_space<vmem>>, %arg21: memref<2x1x32xf32, #tpu.memory_space<vmem>>, %arg22: memref<32x128xbf16, #tpu.memory_space<vmem>>, %arg23: memref<32x128xbf16, #tpu.memory_space<vmem>>, %arg24: memref<1x128xf32, #tpu.memory_space<vmem>>, %arg25: memref<2x128xf32, #tpu.memory_space<vmem>>) attributes {dimension_semantics = [#tpu.dimension_semantics<parallel>], iteration_bounds = array<i64: 1>, scalar_prefetch = 0 : i64, scratch_operands = 0 : i64, tpu.core_type = #tpu.core_type<tc>, window_params = [{transform_indices = @transform_0, window_bounds = array<i64: 2, 6>}, {transform_indices = @transform_1, window_bounds = array<i64: 16, 3>}, {transform_indices = @transform_2, window_bounds = array<i64: 10, 16>}, {pipeline_mode = #tpu.pipeline_mode<synchronous>, transform_indices = @transform_3, window_bounds = array<i64: 16, 8>}, {pipeline_mode = #tpu.pipeline_mode<synchronous>, transform_indices = @transform_4, window_bounds = array<i64: 6, 32>}, {pipeline_mode = #tpu.pipeline_mode<synchronous>, transform_indices = @transform_5, window_bounds = array<i64: 1, 32>}, {pipeline_mode = #tpu.pipeline_mode<synchronous>, transform_indices = @transform_6, window_bounds = array<i64: 3, 32>}, {pipeline_mode = #tpu.pipeline_mode<synchronous>, transform_indices = @transform_7, window_bounds = array<i64: 5, 32>}, {pipeline_mode = #tpu.pipeline_mode<synchronous>, transform_indices = @transform_8, window_bounds = array<i64: 1, 32>}, {pipeline_mode = #tpu.pipeline_mode<synchronous>, transform_indices = @transform_9, window_bounds = array<i64: 2, 32, 96>}, {pipeline_mode = #tpu.pipeline_mode<synchronous>, transform_indices = @transform_10, window_bounds = array<i64: 2, 1, 96>}, {pipeline_mode = #tpu.pipeline_mode<synchronous>, transform_indices = @transform_11, window_bounds = array<i64: 2, 32, 32>}, {pipeline_mode = #tpu.pipeline_mode<synchronous>, transform_indices = @transform_12, window_bounds = array<i64: 2, 1, 32>}, {pipeline_mode = #tpu.pipeline_mode<synchronous>, transform_indices = @transform_13, window_bounds = array<i64: 2, 1, 32>}, {pipeline_mode = #tpu.pipeline_mode<synchronous>, transform_indices = @transform_14, window_bounds = array<i64: 2, 1, 32>}, {pipeline_mode = #tpu.pipeline_mode<synchronous>, transform_indices = @transform_15, window_bounds = array<i64: 2, 32, 64>}, {pipeline_mode = #tpu.pipeline_mode<synchronous>, transform_indices = @transform_16, window_bounds = array<i64: 2, 1, 64>}, {pipeline_mode = #tpu.pipeline_mode<synchronous>, transform_indices = @transform_17, window_bounds = array<i64: 2, 64, 32>}, {pipeline_mode = #tpu.pipeline_mode<synchronous>, transform_indices = @transform_18, window_bounds = array<i64: 2, 1, 32>}, {pipeline_mode = #tpu.pipeline_mode<synchronous>, transform_indices = @transform_19, window_bounds = array<i64: 2, 1, 32>}, {pipeline_mode = #tpu.pipeline_mode<synchronous>, transform_indices = @transform_20, window_bounds = array<i64: 2, 1, 32>}, {pipeline_mode = #tpu.pipeline_mode<synchronous>, transform_indices = @transform_21, window_bounds = array<i64: 32, 128>}, {pipeline_mode = #tpu.pipeline_mode<synchronous>, transform_indices = @transform_22, window_bounds = array<i64: 32, 128>}, {pipeline_mode = #tpu.pipeline_mode<synchronous>, transform_indices = @transform_23, window_bounds = array<i64: 1, 128>}, {transform_indices = @transform_24, window_bounds = array<i64: 2, 128>}]} {
    %c0 = arith.constant 0 : index
    %c0_0 = arith.constant 0 : index
    %0 = vector.load %arg3[%c0, %c0_0] : memref<10x16xf32, #tpu.memory_space<vmem>>, vector<10x16xf32>
    %c0_1 = arith.constant 0 : index
    %c0_2 = arith.constant 0 : index
    %1 = vector.load %arg4[%c0_1, %c0_2] : memref<16x8xbf16, #tpu.memory_space<vmem>>, vector<16x8xbf16>
    %2 = arith.truncf %0 : vector<10x16xf32> to vector<10x16xbf16>
    %cst = arith.constant dense<0.000000e+00> : vector<10x8xf32>
    %3 = tpu.matmul %2, %1, %cst {dimension_numbers = #tpu.dot_dimension_numbers<[1], [0], [0], [1], [0, 0, 1, 1], [], []>} : vector<10x16xbf16>, vector<16x8xbf16>, vector<10x8xf32> -> vector<10x8xf32>
    %c0_3 = arith.constant 0 : index
    %c0_4 = arith.constant 0 : index
    %4 = vector.load %arg2[%c0_3, %c0_4] : memref<16x3xf32, #tpu.memory_space<vmem>>, vector<16x3xf32>
    %c0_5 = arith.constant 0 : index
    %c0_6 = arith.constant 0 : index
    %5 = vector.load %arg7[%c0_5, %c0_6] : memref<3x32xbf16, #tpu.memory_space<vmem>>, vector<3x32xbf16>
    %6 = arith.truncf %4 : vector<16x3xf32> to vector<16x3xbf16>
    %cst_7 = arith.constant dense<0.000000e+00> : vector<16x32xf32>
    %7 = tpu.matmul %6, %5, %cst_7 {dimension_numbers = #tpu.dot_dimension_numbers<[1], [0], [0], [1], [0, 0, 1, 1], [], []>} : vector<16x3xbf16>, vector<3x32xbf16>, vector<16x32xf32> -> vector<16x32xf32>
    %8 = vector.extract_strided_slice %3 {offsets = [0, 0], sizes = [5, 8], strides = [1, 1]} : vector<10x8xf32> to vector<5x8xf32>
    %c0_8 = arith.constant 0 : index
    %c0_9 = arith.constant 0 : index
    %9 = vector.load %arg8[%c0_8, %c0_9] : memref<5x32xf32, #tpu.memory_space<vmem>>, vector<5x32xf32>
    %cst_10 = arith.constant dense<0.000000e+00> : vector<8x32xf32>
    %10 = tpu.matmul %8, %9, %cst_10 {dimension_numbers = #tpu.dot_dimension_numbers<[0], [0], [1], [1], [0, 1, 1, 1], [], []>} : vector<5x8xf32>, vector<5x32xf32>, vector<8x32xf32> -> vector<8x32xf32>
    %11 = vector.extract_strided_slice %3 {offsets = [5, 0], sizes = [5, 8], strides = [1, 1]} : vector<10x8xf32> to vector<5x8xf32>
    %c0_11 = arith.constant 0 : index
    %c0_12 = arith.constant 0 : index
    %12 = vector.load %arg8[%c0_11, %c0_12] : memref<5x32xf32, #tpu.memory_space<vmem>>, vector<5x32xf32>
    %cst_13 = arith.constant dense<0.000000e+00> : vector<8x32xf32>
    %13 = tpu.matmul %11, %12, %cst_13 {dimension_numbers = #tpu.dot_dimension_numbers<[0], [0], [1], [1], [0, 1, 1, 1], [], []>} : vector<5x8xf32>, vector<5x32xf32>, vector<8x32xf32> -> vector<8x32xf32>
    %14 = tpu.concatenate %10, %13 in 0 : vector<8x32xf32>, vector<8x32xf32> -> vector<16x32xf32>
    %15 = arith.addf %7, %14 : vector<16x32xf32>
    %c0_14 = arith.constant 0 : index
    %c0_15 = arith.constant 0 : index
    %16 = vector.load %arg9[%c0_14, %c0_15] : memref<1x32xf32, #tpu.memory_space<vmem>>, vector<1x32xf32>
    %17 = vector.broadcast %16 : vector<1x32xf32> to vector<16x32xf32>
    %18 = arith.addf %15, %17 : vector<16x32xf32>
    %c0_16 = arith.constant 0 : index
    %c0_17 = arith.constant 0 : index
    %c0_18 = arith.constant 0 : index
    %19 = vector.load %arg10[%c0_16, %c0_17, %c0_18] : memref<2x32x96xbf16, #tpu.memory_space<vmem>>, vector<1x32x96xbf16>
    %20 = vector.shape_cast %19 : vector<1x32x96xbf16> to vector<32x96xbf16>
    %21 = arith.truncf %18 : vector<16x32xf32> to vector<16x32xbf16>
    %cst_19 = arith.constant dense<0.000000e+00> : vector<16x96xf32>
    %22 = tpu.matmul %21, %20, %cst_19 {dimension_numbers = #tpu.dot_dimension_numbers<[1], [0], [0], [1], [0, 0, 1, 1], [], []>} : vector<16x32xbf16>, vector<32x96xbf16>, vector<16x96xf32> -> vector<16x96xf32>
    %c0_20 = arith.constant 0 : index
    %c0_21 = arith.constant 0 : index
    %c0_22 = arith.constant 0 : index
    %23 = vector.load %arg11[%c0_20, %c0_21, %c0_22] : memref<2x1x96xf32, #tpu.memory_space<vmem>>, vector<1x1x96xf32>
    %24 = vector.shape_cast %23 : vector<1x1x96xf32> to vector<1x96xf32>
    %25 = vector.broadcast %24 : vector<1x96xf32> to vector<16x96xf32>
    %26 = arith.addf %22, %25 : vector<16x96xf32>
    %27 = vector.extract_strided_slice %26 {offsets = [0, 0], sizes = [8, 8], strides = [1, 1]} : vector<16x96xf32> to vector<8x8xf32>
    %28 = vector.extract_strided_slice %26 {offsets = [0, 32], sizes = [8, 8], strides = [1, 1]} : vector<16x96xf32> to vector<8x8xf32>
    %29 = vector.extract_strided_slice %26 {offsets = [0, 64], sizes = [8, 8], strides = [1, 1]} : vector<16x96xf32> to vector<8x8xf32>
    %cst_23 = arith.constant dense<0.000000e+00> : vector<8x8xf32>
    %30 = tpu.matmul %27, %28, %cst_23 {dimension_numbers = #tpu.dot_dimension_numbers<[1], [1], [0], [0], [0, 0, 1, 0], [], []>} : vector<8x8xf32>, vector<8x8xf32>, vector<8x8xf32> -> vector<8x8xf32>
    %cst_24 = arith.constant 0.353553385 : f32
    %31 = vector.broadcast %cst_24 : f32 to vector<8x8xf32>
    %32 = arith.mulf %30, %31 : vector<8x8xf32>
    %cst_25 = arith.constant dense<0xFF800000> : vector<8xf32>
    %33 = vector.multi_reduction <maximumf>, %32, %cst_25 [1] : vector<8x8xf32> to vector<8xf32>
    %34 = vector.shape_cast %33 : vector<8xf32> to vector<8x1xf32>
    %35 = vector.broadcast %34 : vector<8x1xf32> to vector<8x8xf32>
    %36 = arith.subf %32, %35 : vector<8x8xf32>
    %37 = math.exp %36 : vector<8x8xf32>
    %cst_26 = arith.constant dense<0.000000e+00> : vector<8xf32>
    %38 = vector.multi_reduction <add>, %37, %cst_26 [1] : vector<8x8xf32> to vector<8xf32>
    %39 = vector.shape_cast %38 : vector<8xf32> to vector<8x1xf32>
    %40 = tpu.reciprocal %39 {approx = true} : vector<8x1xf32> -> vector<8x1xf32>
    %41 = vector.broadcast %40 : vector<8x1xf32> to vector<8x8xf32>
    %42 = arith.mulf %37, %41 : vector<8x8xf32>
    %cst_27 = arith.constant dense<0.000000e+00> : vector<8x8xf32>
    %43 = tpu.matmul %42, %29, %cst_27 {dimension_numbers = #tpu.dot_dimension_numbers<[1], [0], [0], [1], [0, 0, 1, 1], [], []>} : vector<8x8xf32>, vector<8x8xf32>, vector<8x8xf32> -> vector<8x8xf32>
    %44 = vector.extract_strided_slice %26 {offsets = [0, 8], sizes = [8, 8], strides = [1, 1]} : vector<16x96xf32> to vector<8x8xf32>
    %45 = vector.extract_strided_slice %26 {offsets = [0, 40], sizes = [8, 8], strides = [1, 1]} : vector<16x96xf32> to vector<8x8xf32>
    %46 = vector.extract_strided_slice %26 {offsets = [0, 72], sizes = [8, 8], strides = [1, 1]} : vector<16x96xf32> to vector<8x8xf32>
    %cst_28 = arith.constant dense<0.000000e+00> : vector<8x8xf32>
    %47 = tpu.matmul %44, %45, %cst_28 {dimension_numbers = #tpu.dot_dimension_numbers<[1], [1], [0], [0], [0, 0, 1, 0], [], []>} : vector<8x8xf32>, vector<8x8xf32>, vector<8x8xf32> -> vector<8x8xf32>
    %cst_29 = arith.constant 0.353553385 : f32
    %48 = vector.broadcast %cst_29 : f32 to vector<8x8xf32>
    %49 = arith.mulf %47, %48 : vector<8x8xf32>
    %cst_30 = arith.constant dense<0xFF800000> : vector<8xf32>
    %50 = vector.multi_reduction <maximumf>, %49, %cst_30 [1] : vector<8x8xf32> to vector<8xf32>
    %51 = vector.shape_cast %50 : vector<8xf32> to vector<8x1xf32>
    %52 = vector.broadcast %51 : vector<8x1xf32> to vector<8x8xf32>
    %53 = arith.subf %49, %52 : vector<8x8xf32>
    %54 = math.exp %53 : vector<8x8xf32>
    %cst_31 = arith.constant dense<0.000000e+00> : vector<8xf32>
    %55 = vector.multi_reduction <add>, %54, %cst_31 [1] : vector<8x8xf32> to vector<8xf32>
    %56 = vector.shape_cast %55 : vector<8xf32> to vector<8x1xf32>
    %57 = tpu.reciprocal %56 {approx = true} : vector<8x1xf32> -> vector<8x1xf32>
    %58 = vector.broadcast %57 : vector<8x1xf32> to vector<8x8xf32>
    %59 = arith.mulf %54, %58 : vector<8x8xf32>
    %cst_32 = arith.constant dense<0.000000e+00> : vector<8x8xf32>
    %60 = tpu.matmul %59, %46, %cst_32 {dimension_numbers = #tpu.dot_dimension_numbers<[1], [0], [0], [1], [0, 0, 1, 1], [], []>} : vector<8x8xf32>, vector<8x8xf32>, vector<8x8xf32> -> vector<8x8xf32>
    %61 = vector.extract_strided_slice %26 {offsets = [0, 16], sizes = [8, 8], strides = [1, 1]} : vector<16x96xf32> to vector<8x8xf32>
    %62 = vector.extract_strided_slice %26 {offsets = [0, 48], sizes = [8, 8], strides = [1, 1]} : vector<16x96xf32> to vector<8x8xf32>
    %63 = vector.extract_strided_slice %26 {offsets = [0, 80], sizes = [8, 8], strides = [1, 1]} : vector<16x96xf32> to vector<8x8xf32>
    %cst_33 = arith.constant dense<0.000000e+00> : vector<8x8xf32>
    %64 = tpu.matmul %61, %62, %cst_33 {dimension_numbers = #tpu.dot_dimension_numbers<[1], [1], [0], [0], [0, 0, 1, 0], [], []>} : vector<8x8xf32>, vector<8x8xf32>, vector<8x8xf32> -> vector<8x8xf32>
    %cst_34 = arith.constant 0.353553385 : f32
    %65 = vector.broadcast %cst_34 : f32 to vector<8x8xf32>
    %66 = arith.mulf %64, %65 : vector<8x8xf32>
    %cst_35 = arith.constant dense<0xFF800000> : vector<8xf32>
    %67 = vector.multi_reduction <maximumf>, %66, %cst_35 [1] : vector<8x8xf32> to vector<8xf32>
    %68 = vector.shape_cast %67 : vector<8xf32> to vector<8x1xf32>
    %69 = vector.broadcast %68 : vector<8x1xf32> to vector<8x8xf32>
    %70 = arith.subf %66, %69 : vector<8x8xf32>
    %71 = math.exp %70 : vector<8x8xf32>
    %cst_36 = arith.constant dense<0.000000e+00> : vector<8xf32>
    %72 = vector.multi_reduction <add>, %71, %cst_36 [1] : vector<8x8xf32> to vector<8xf32>
    %73 = vector.shape_cast %72 : vector<8xf32> to vector<8x1xf32>
    %74 = tpu.reciprocal %73 {approx = true} : vector<8x1xf32> -> vector<8x1xf32>
    %75 = vector.broadcast %74 : vector<8x1xf32> to vector<8x8xf32>
    %76 = arith.mulf %71, %75 : vector<8x8xf32>
    %cst_37 = arith.constant dense<0.000000e+00> : vector<8x8xf32>
    %77 = tpu.matmul %76, %63, %cst_37 {dimension_numbers = #tpu.dot_dimension_numbers<[1], [0], [0], [1], [0, 0, 1, 1], [], []>} : vector<8x8xf32>, vector<8x8xf32>, vector<8x8xf32> -> vector<8x8xf32>
    %78 = vector.extract_strided_slice %26 {offsets = [0, 24], sizes = [8, 8], strides = [1, 1]} : vector<16x96xf32> to vector<8x8xf32>
    %79 = vector.extract_strided_slice %26 {offsets = [0, 56], sizes = [8, 8], strides = [1, 1]} : vector<16x96xf32> to vector<8x8xf32>
    %80 = vector.extract_strided_slice %26 {offsets = [0, 88], sizes = [8, 8], strides = [1, 1]} : vector<16x96xf32> to vector<8x8xf32>
    %cst_38 = arith.constant dense<0.000000e+00> : vector<8x8xf32>
    %81 = tpu.matmul %78, %79, %cst_38 {dimension_numbers = #tpu.dot_dimension_numbers<[1], [1], [0], [0], [0, 0, 1, 0], [], []>} : vector<8x8xf32>, vector<8x8xf32>, vector<8x8xf32> -> vector<8x8xf32>
    %cst_39 = arith.constant 0.353553385 : f32
    %82 = vector.broadcast %cst_39 : f32 to vector<8x8xf32>
    %83 = arith.mulf %81, %82 : vector<8x8xf32>
    %cst_40 = arith.constant dense<0xFF800000> : vector<8xf32>
    %84 = vector.multi_reduction <maximumf>, %83, %cst_40 [1] : vector<8x8xf32> to vector<8xf32>
    %85 = vector.shape_cast %84 : vector<8xf32> to vector<8x1xf32>
    %86 = vector.broadcast %85 : vector<8x1xf32> to vector<8x8xf32>
    %87 = arith.subf %83, %86 : vector<8x8xf32>
    %88 = math.exp %87 : vector<8x8xf32>
    %cst_41 = arith.constant dense<0.000000e+00> : vector<8xf32>
    %89 = vector.multi_reduction <add>, %88, %cst_41 [1] : vector<8x8xf32> to vector<8xf32>
    %90 = vector.shape_cast %89 : vector<8xf32> to vector<8x1xf32>
    %91 = tpu.reciprocal %90 {approx = true} : vector<8x1xf32> -> vector<8x1xf32>
    %92 = vector.broadcast %91 : vector<8x1xf32> to vector<8x8xf32>
    %93 = arith.mulf %88, %92 : vector<8x8xf32>
    %cst_42 = arith.constant dense<0.000000e+00> : vector<8x8xf32>
    %94 = tpu.matmul %93, %80, %cst_42 {dimension_numbers = #tpu.dot_dimension_numbers<[1], [0], [0], [1], [0, 0, 1, 1], [], []>} : vector<8x8xf32>, vector<8x8xf32>, vector<8x8xf32> -> vector<8x8xf32>
    %95 = tpu.concatenate %43, %60, %77, %94 in 1 : vector<8x8xf32>, vector<8x8xf32>, vector<8x8xf32>, vector<8x8xf32> -> vector<8x32xf32>
    %96 = vector.extract_strided_slice %26 {offsets = [8, 0], sizes = [8, 8], strides = [1, 1]} : vector<16x96xf32> to vector<8x8xf32>
    %97 = vector.extract_strided_slice %26 {offsets = [8, 32], sizes = [8, 8], strides = [1, 1]} : vector<16x96xf32> to vector<8x8xf32>
    %98 = vector.extract_strided_slice %26 {offsets = [8, 64], sizes = [8, 8], strides = [1, 1]} : vector<16x96xf32> to vector<8x8xf32>
    %cst_43 = arith.constant dense<0.000000e+00> : vector<8x8xf32>
    %99 = tpu.matmul %96, %97, %cst_43 {dimension_numbers = #tpu.dot_dimension_numbers<[1], [1], [0], [0], [0, 0, 1, 0], [], []>} : vector<8x8xf32>, vector<8x8xf32>, vector<8x8xf32> -> vector<8x8xf32>
    %cst_44 = arith.constant 0.353553385 : f32
    %100 = vector.broadcast %cst_44 : f32 to vector<8x8xf32>
    %101 = arith.mulf %99, %100 : vector<8x8xf32>
    %cst_45 = arith.constant dense<0xFF800000> : vector<8xf32>
    %102 = vector.multi_reduction <maximumf>, %101, %cst_45 [1] : vector<8x8xf32> to vector<8xf32>
    %103 = vector.shape_cast %102 : vector<8xf32> to vector<8x1xf32>
    %104 = vector.broadcast %103 : vector<8x1xf32> to vector<8x8xf32>
    %105 = arith.subf %101, %104 : vector<8x8xf32>
    %106 = math.exp %105 : vector<8x8xf32>
    %cst_46 = arith.constant dense<0.000000e+00> : vector<8xf32>
    %107 = vector.multi_reduction <add>, %106, %cst_46 [1] : vector<8x8xf32> to vector<8xf32>
    %108 = vector.shape_cast %107 : vector<8xf32> to vector<8x1xf32>
    %109 = tpu.reciprocal %108 {approx = true} : vector<8x1xf32> -> vector<8x1xf32>
    %110 = vector.broadcast %109 : vector<8x1xf32> to vector<8x8xf32>
    %111 = arith.mulf %106, %110 : vector<8x8xf32>
    %cst_47 = arith.constant dense<0.000000e+00> : vector<8x8xf32>
    %112 = tpu.matmul %111, %98, %cst_47 {dimension_numbers = #tpu.dot_dimension_numbers<[1], [0], [0], [1], [0, 0, 1, 1], [], []>} : vector<8x8xf32>, vector<8x8xf32>, vector<8x8xf32> -> vector<8x8xf32>
    %113 = vector.extract_strided_slice %26 {offsets = [8, 8], sizes = [8, 8], strides = [1, 1]} : vector<16x96xf32> to vector<8x8xf32>
    %114 = vector.extract_strided_slice %26 {offsets = [8, 40], sizes = [8, 8], strides = [1, 1]} : vector<16x96xf32> to vector<8x8xf32>
    %115 = vector.extract_strided_slice %26 {offsets = [8, 72], sizes = [8, 8], strides = [1, 1]} : vector<16x96xf32> to vector<8x8xf32>
    %cst_48 = arith.constant dense<0.000000e+00> : vector<8x8xf32>
    %116 = tpu.matmul %113, %114, %cst_48 {dimension_numbers = #tpu.dot_dimension_numbers<[1], [1], [0], [0], [0, 0, 1, 0], [], []>} : vector<8x8xf32>, vector<8x8xf32>, vector<8x8xf32> -> vector<8x8xf32>
    %cst_49 = arith.constant 0.353553385 : f32
    %117 = vector.broadcast %cst_49 : f32 to vector<8x8xf32>
    %118 = arith.mulf %116, %117 : vector<8x8xf32>
    %cst_50 = arith.constant dense<0xFF800000> : vector<8xf32>
    %119 = vector.multi_reduction <maximumf>, %118, %cst_50 [1] : vector<8x8xf32> to vector<8xf32>
    %120 = vector.shape_cast %119 : vector<8xf32> to vector<8x1xf32>
    %121 = vector.broadcast %120 : vector<8x1xf32> to vector<8x8xf32>
    %122 = arith.subf %118, %121 : vector<8x8xf32>
    %123 = math.exp %122 : vector<8x8xf32>
    %cst_51 = arith.constant dense<0.000000e+00> : vector<8xf32>
    %124 = vector.multi_reduction <add>, %123, %cst_51 [1] : vector<8x8xf32> to vector<8xf32>
    %125 = vector.shape_cast %124 : vector<8xf32> to vector<8x1xf32>
    %126 = tpu.reciprocal %125 {approx = true} : vector<8x1xf32> -> vector<8x1xf32>
    %127 = vector.broadcast %126 : vector<8x1xf32> to vector<8x8xf32>
    %128 = arith.mulf %123, %127 : vector<8x8xf32>
    %cst_52 = arith.constant dense<0.000000e+00> : vector<8x8xf32>
    %129 = tpu.matmul %128, %115, %cst_52 {dimension_numbers = #tpu.dot_dimension_numbers<[1], [0], [0], [1], [0, 0, 1, 1], [], []>} : vector<8x8xf32>, vector<8x8xf32>, vector<8x8xf32> -> vector<8x8xf32>
    %130 = vector.extract_strided_slice %26 {offsets = [8, 16], sizes = [8, 8], strides = [1, 1]} : vector<16x96xf32> to vector<8x8xf32>
    %131 = vector.extract_strided_slice %26 {offsets = [8, 48], sizes = [8, 8], strides = [1, 1]} : vector<16x96xf32> to vector<8x8xf32>
    %132 = vector.extract_strided_slice %26 {offsets = [8, 80], sizes = [8, 8], strides = [1, 1]} : vector<16x96xf32> to vector<8x8xf32>
    %cst_53 = arith.constant dense<0.000000e+00> : vector<8x8xf32>
    %133 = tpu.matmul %130, %131, %cst_53 {dimension_numbers = #tpu.dot_dimension_numbers<[1], [1], [0], [0], [0, 0, 1, 0], [], []>} : vector<8x8xf32>, vector<8x8xf32>, vector<8x8xf32> -> vector<8x8xf32>
    %cst_54 = arith.constant 0.353553385 : f32
    %134 = vector.broadcast %cst_54 : f32 to vector<8x8xf32>
    %135 = arith.mulf %133, %134 : vector<8x8xf32>
    %cst_55 = arith.constant dense<0xFF800000> : vector<8xf32>
    %136 = vector.multi_reduction <maximumf>, %135, %cst_55 [1] : vector<8x8xf32> to vector<8xf32>
    %137 = vector.shape_cast %136 : vector<8xf32> to vector<8x1xf32>
    %138 = vector.broadcast %137 : vector<8x1xf32> to vector<8x8xf32>
    %139 = arith.subf %135, %138 : vector<8x8xf32>
    %140 = math.exp %139 : vector<8x8xf32>
    %cst_56 = arith.constant dense<0.000000e+00> : vector<8xf32>
    %141 = vector.multi_reduction <add>, %140, %cst_56 [1] : vector<8x8xf32> to vector<8xf32>
    %142 = vector.shape_cast %141 : vector<8xf32> to vector<8x1xf32>
    %143 = tpu.reciprocal %142 {approx = true} : vector<8x1xf32> -> vector<8x1xf32>
    %144 = vector.broadcast %143 : vector<8x1xf32> to vector<8x8xf32>
    %145 = arith.mulf %140, %144 : vector<8x8xf32>
    %cst_57 = arith.constant dense<0.000000e+00> : vector<8x8xf32>
    %146 = tpu.matmul %145, %132, %cst_57 {dimension_numbers = #tpu.dot_dimension_numbers<[1], [0], [0], [1], [0, 0, 1, 1], [], []>} : vector<8x8xf32>, vector<8x8xf32>, vector<8x8xf32> -> vector<8x8xf32>
    %147 = vector.extract_strided_slice %26 {offsets = [8, 24], sizes = [8, 8], strides = [1, 1]} : vector<16x96xf32> to vector<8x8xf32>
    %148 = vector.extract_strided_slice %26 {offsets = [8, 56], sizes = [8, 8], strides = [1, 1]} : vector<16x96xf32> to vector<8x8xf32>
    %149 = vector.extract_strided_slice %26 {offsets = [8, 88], sizes = [8, 8], strides = [1, 1]} : vector<16x96xf32> to vector<8x8xf32>
    %cst_58 = arith.constant dense<0.000000e+00> : vector<8x8xf32>
    %150 = tpu.matmul %147, %148, %cst_58 {dimension_numbers = #tpu.dot_dimension_numbers<[1], [1], [0], [0], [0, 0, 1, 0], [], []>} : vector<8x8xf32>, vector<8x8xf32>, vector<8x8xf32> -> vector<8x8xf32>
    %cst_59 = arith.constant 0.353553385 : f32
    %151 = vector.broadcast %cst_59 : f32 to vector<8x8xf32>
    %152 = arith.mulf %150, %151 : vector<8x8xf32>
    %cst_60 = arith.constant dense<0xFF800000> : vector<8xf32>
    %153 = vector.multi_reduction <maximumf>, %152, %cst_60 [1] : vector<8x8xf32> to vector<8xf32>
    %154 = vector.shape_cast %153 : vector<8xf32> to vector<8x1xf32>
    %155 = vector.broadcast %154 : vector<8x1xf32> to vector<8x8xf32>
    %156 = arith.subf %152, %155 : vector<8x8xf32>
    %157 = math.exp %156 : vector<8x8xf32>
    %cst_61 = arith.constant dense<0.000000e+00> : vector<8xf32>
    %158 = vector.multi_reduction <add>, %157, %cst_61 [1] : vector<8x8xf32> to vector<8xf32>
    %159 = vector.shape_cast %158 : vector<8xf32> to vector<8x1xf32>
    %160 = tpu.reciprocal %159 {approx = true} : vector<8x1xf32> -> vector<8x1xf32>
    %161 = vector.broadcast %160 : vector<8x1xf32> to vector<8x8xf32>
    %162 = arith.mulf %157, %161 : vector<8x8xf32>
    %cst_62 = arith.constant dense<0.000000e+00> : vector<8x8xf32>
    %163 = tpu.matmul %162, %149, %cst_62 {dimension_numbers = #tpu.dot_dimension_numbers<[1], [0], [0], [1], [0, 0, 1, 1], [], []>} : vector<8x8xf32>, vector<8x8xf32>, vector<8x8xf32> -> vector<8x8xf32>
    %164 = tpu.concatenate %112, %129, %146, %163 in 1 : vector<8x8xf32>, vector<8x8xf32>, vector<8x8xf32>, vector<8x8xf32> -> vector<8x32xf32>
    %165 = tpu.concatenate %95, %164 in 0 : vector<8x32xf32>, vector<8x32xf32> -> vector<16x32xf32>
    %c0_63 = arith.constant 0 : index
    %c0_64 = arith.constant 0 : index
    %c0_65 = arith.constant 0 : index
    %166 = vector.load %arg12[%c0_63, %c0_64, %c0_65] : memref<2x32x32xbf16, #tpu.memory_space<vmem>>, vector<1x32x32xbf16>
    %167 = vector.shape_cast %166 : vector<1x32x32xbf16> to vector<32x32xbf16>
    %168 = arith.truncf %165 : vector<16x32xf32> to vector<16x32xbf16>
    %cst_66 = arith.constant dense<0.000000e+00> : vector<16x32xf32>
    %169 = tpu.matmul %168, %167, %cst_66 {dimension_numbers = #tpu.dot_dimension_numbers<[1], [0], [0], [1], [0, 0, 1, 1], [], []>} : vector<16x32xbf16>, vector<32x32xbf16>, vector<16x32xf32> -> vector<16x32xf32>
    %c0_67 = arith.constant 0 : index
    %c0_68 = arith.constant 0 : index
    %c0_69 = arith.constant 0 : index
    %170 = vector.load %arg13[%c0_67, %c0_68, %c0_69] : memref<2x1x32xf32, #tpu.memory_space<vmem>>, vector<1x1x32xf32>
    %171 = vector.shape_cast %170 : vector<1x1x32xf32> to vector<1x32xf32>
    %172 = vector.broadcast %171 : vector<1x32xf32> to vector<16x32xf32>
    %173 = arith.addf %169, %172 : vector<16x32xf32>
    %174 = arith.addf %18, %173 : vector<16x32xf32>
    %c0_70 = arith.constant 0 : index
    %c0_71 = arith.constant 0 : index
    %c0_72 = arith.constant 0 : index
    %175 = vector.load %arg14[%c0_70, %c0_71, %c0_72] : memref<2x1x32xf32, #tpu.memory_space<vmem>>, vector<1x1x32xf32>
    %176 = vector.shape_cast %175 : vector<1x1x32xf32> to vector<1x32xf32>
    %c0_73 = arith.constant 0 : index
    %c0_74 = arith.constant 0 : index
    %c0_75 = arith.constant 0 : index
    %177 = vector.load %arg15[%c0_73, %c0_74, %c0_75] : memref<2x1x32xf32, #tpu.memory_space<vmem>>, vector<1x1x32xf32>
    %178 = vector.shape_cast %177 : vector<1x1x32xf32> to vector<1x32xf32>
    %cst_76 = arith.constant dense<0.000000e+00> : vector<16xf32>
    %179 = vector.multi_reduction <add>, %174, %cst_76 [1] : vector<16x32xf32> to vector<16xf32>
    %180 = vector.shape_cast %179 : vector<16xf32> to vector<16x1xf32>
    %cst_77 = arith.constant 3.200000e+01 : f32
    %181 = vector.broadcast %cst_77 : f32 to vector<16x1xf32>
    %182 = arith.divf %180, %181 : vector<16x1xf32>
    %183 = vector.broadcast %182 : vector<16x1xf32> to vector<16x32xf32>
    %184 = arith.subf %174, %183 : vector<16x32xf32>
    %185 = arith.mulf %184, %184 : vector<16x32xf32>
    %cst_78 = arith.constant dense<0.000000e+00> : vector<16xf32>
    %186 = vector.multi_reduction <add>, %185, %cst_78 [1] : vector<16x32xf32> to vector<16xf32>
    %187 = vector.shape_cast %186 : vector<16xf32> to vector<16x1xf32>
    %cst_79 = arith.constant 3.200000e+01 : f32
    %188 = vector.broadcast %cst_79 : f32 to vector<16x1xf32>
    %189 = arith.divf %187, %188 : vector<16x1xf32>
    %190 = vector.broadcast %182 : vector<16x1xf32> to vector<16x32xf32>
    %191 = arith.subf %174, %190 : vector<16x32xf32>
    %cst_80 = arith.constant 9.99999974E-6 : f32
    %192 = vector.broadcast %cst_80 : f32 to vector<16x1xf32>
    %193 = arith.addf %189, %192 : vector<16x1xf32>
    %194 = math.rsqrt %193 : vector<16x1xf32>
    %195 = vector.broadcast %194 : vector<16x1xf32> to vector<16x32xf32>
    %196 = arith.mulf %191, %195 : vector<16x32xf32>
    %197 = vector.broadcast %176 : vector<1x32xf32> to vector<16x32xf32>
    %198 = arith.mulf %196, %197 : vector<16x32xf32>
    %199 = vector.broadcast %178 : vector<1x32xf32> to vector<16x32xf32>
    %200 = arith.addf %198, %199 : vector<16x32xf32>
    %c0_81 = arith.constant 0 : index
    %c0_82 = arith.constant 0 : index
    %c0_83 = arith.constant 0 : index
    %201 = vector.load %arg16[%c0_81, %c0_82, %c0_83] : memref<2x32x64xbf16, #tpu.memory_space<vmem>>, vector<1x32x64xbf16>
    %202 = vector.shape_cast %201 : vector<1x32x64xbf16> to vector<32x64xbf16>
    %203 = arith.truncf %200 : vector<16x32xf32> to vector<16x32xbf16>
    %cst_84 = arith.constant dense<0.000000e+00> : vector<16x64xf32>
    %204 = tpu.matmul %203, %202, %cst_84 {dimension_numbers = #tpu.dot_dimension_numbers<[1], [0], [0], [1], [0, 0, 1, 1], [], []>} : vector<16x32xbf16>, vector<32x64xbf16>, vector<16x64xf32> -> vector<16x64xf32>
    %c0_85 = arith.constant 0 : index
    %c0_86 = arith.constant 0 : index
    %c0_87 = arith.constant 0 : index
    %205 = vector.load %arg17[%c0_85, %c0_86, %c0_87] : memref<2x1x64xf32, #tpu.memory_space<vmem>>, vector<1x1x64xf32>
    %206 = vector.shape_cast %205 : vector<1x1x64xf32> to vector<1x64xf32>
    %207 = vector.broadcast %206 : vector<1x64xf32> to vector<16x64xf32>
    %208 = arith.addf %204, %207 : vector<16x64xf32>
    %cst_88 = arith.constant 0.000000e+00 : f32
    %209 = vector.broadcast %cst_88 : f32 to vector<16x64xf32>
    %210 = arith.maximumf %208, %209 : vector<16x64xf32>
    %c0_89 = arith.constant 0 : index
    %c0_90 = arith.constant 0 : index
    %c0_91 = arith.constant 0 : index
    %211 = vector.load %arg18[%c0_89, %c0_90, %c0_91] : memref<2x64x32xbf16, #tpu.memory_space<vmem>>, vector<1x64x32xbf16>
    %212 = vector.shape_cast %211 : vector<1x64x32xbf16> to vector<64x32xbf16>
    %213 = arith.truncf %210 : vector<16x64xf32> to vector<16x64xbf16>
    %cst_92 = arith.constant dense<0.000000e+00> : vector<16x32xf32>
    %214 = tpu.matmul %213, %212, %cst_92 {dimension_numbers = #tpu.dot_dimension_numbers<[1], [0], [0], [1], [0, 0, 1, 1], [], []>} : vector<16x64xbf16>, vector<64x32xbf16>, vector<16x32xf32> -> vector<16x32xf32>
    %c0_93 = arith.constant 0 : index
    %c0_94 = arith.constant 0 : index
    %c0_95 = arith.constant 0 : index
    %215 = vector.load %arg19[%c0_93, %c0_94, %c0_95] : memref<2x1x32xf32, #tpu.memory_space<vmem>>, vector<1x1x32xf32>
    %216 = vector.shape_cast %215 : vector<1x1x32xf32> to vector<1x32xf32>
    %217 = vector.broadcast %216 : vector<1x32xf32> to vector<16x32xf32>
    %218 = arith.addf %214, %217 : vector<16x32xf32>
    %219 = arith.addf %200, %218 : vector<16x32xf32>
    %c0_96 = arith.constant 0 : index
    %c0_97 = arith.constant 0 : index
    %c0_98 = arith.constant 0 : index
    %220 = vector.load %arg20[%c0_96, %c0_97, %c0_98] : memref<2x1x32xf32, #tpu.memory_space<vmem>>, vector<1x1x32xf32>
    %221 = vector.shape_cast %220 : vector<1x1x32xf32> to vector<1x32xf32>
    %c0_99 = arith.constant 0 : index
    %c0_100 = arith.constant 0 : index
    %c0_101 = arith.constant 0 : index
    %222 = vector.load %arg21[%c0_99, %c0_100, %c0_101] : memref<2x1x32xf32, #tpu.memory_space<vmem>>, vector<1x1x32xf32>
    %223 = vector.shape_cast %222 : vector<1x1x32xf32> to vector<1x32xf32>
    %cst_102 = arith.constant dense<0.000000e+00> : vector<16xf32>
    %224 = vector.multi_reduction <add>, %219, %cst_102 [1] : vector<16x32xf32> to vector<16xf32>
    %225 = vector.shape_cast %224 : vector<16xf32> to vector<16x1xf32>
    %cst_103 = arith.constant 3.200000e+01 : f32
    %226 = vector.broadcast %cst_103 : f32 to vector<16x1xf32>
    %227 = arith.divf %225, %226 : vector<16x1xf32>
    %228 = vector.broadcast %227 : vector<16x1xf32> to vector<16x32xf32>
    %229 = arith.subf %219, %228 : vector<16x32xf32>
    %230 = arith.mulf %229, %229 : vector<16x32xf32>
    %cst_104 = arith.constant dense<0.000000e+00> : vector<16xf32>
    %231 = vector.multi_reduction <add>, %230, %cst_104 [1] : vector<16x32xf32> to vector<16xf32>
    %232 = vector.shape_cast %231 : vector<16xf32> to vector<16x1xf32>
    %cst_105 = arith.constant 3.200000e+01 : f32
    %233 = vector.broadcast %cst_105 : f32 to vector<16x1xf32>
    %234 = arith.divf %232, %233 : vector<16x1xf32>
    %235 = vector.broadcast %227 : vector<16x1xf32> to vector<16x32xf32>
    %236 = arith.subf %219, %235 : vector<16x32xf32>
    %cst_106 = arith.constant 9.99999974E-6 : f32
    %237 = vector.broadcast %cst_106 : f32 to vector<16x1xf32>
    %238 = arith.addf %234, %237 : vector<16x1xf32>
    %239 = math.rsqrt %238 : vector<16x1xf32>
    %240 = vector.broadcast %239 : vector<16x1xf32> to vector<16x32xf32>
    %241 = arith.mulf %236, %240 : vector<16x32xf32>
    %242 = vector.broadcast %221 : vector<1x32xf32> to vector<16x32xf32>
    %243 = arith.mulf %241, %242 : vector<16x32xf32>
    %244 = vector.broadcast %223 : vector<1x32xf32> to vector<16x32xf32>
    %245 = arith.addf %243, %244 : vector<16x32xf32>
    %c1 = arith.constant 1 : index
    %c0_107 = arith.constant 0 : index
    %c0_108 = arith.constant 0 : index
    %246 = vector.load %arg10[%c1, %c0_107, %c0_108] : memref<2x32x96xbf16, #tpu.memory_space<vmem>>, vector<1x32x96xbf16>
    %247 = vector.shape_cast %246 : vector<1x32x96xbf16> to vector<32x96xbf16>
    %248 = arith.truncf %245 : vector<16x32xf32> to vector<16x32xbf16>
    %cst_109 = arith.constant dense<0.000000e+00> : vector<16x96xf32>
    %249 = tpu.matmul %248, %247, %cst_109 {dimension_numbers = #tpu.dot_dimension_numbers<[1], [0], [0], [1], [0, 0, 1, 1], [], []>} : vector<16x32xbf16>, vector<32x96xbf16>, vector<16x96xf32> -> vector<16x96xf32>
    %c1_110 = arith.constant 1 : index
    %c0_111 = arith.constant 0 : index
    %c0_112 = arith.constant 0 : index
    %250 = vector.load %arg11[%c1_110, %c0_111, %c0_112] : memref<2x1x96xf32, #tpu.memory_space<vmem>>, vector<1x1x96xf32>
    %251 = vector.shape_cast %250 : vector<1x1x96xf32> to vector<1x96xf32>
    %252 = vector.broadcast %251 : vector<1x96xf32> to vector<16x96xf32>
    %253 = arith.addf %249, %252 : vector<16x96xf32>
    %254 = vector.extract_strided_slice %253 {offsets = [0, 0], sizes = [8, 8], strides = [1, 1]} : vector<16x96xf32> to vector<8x8xf32>
    %255 = vector.extract_strided_slice %253 {offsets = [0, 32], sizes = [8, 8], strides = [1, 1]} : vector<16x96xf32> to vector<8x8xf32>
    %256 = vector.extract_strided_slice %253 {offsets = [0, 64], sizes = [8, 8], strides = [1, 1]} : vector<16x96xf32> to vector<8x8xf32>
    %cst_113 = arith.constant dense<0.000000e+00> : vector<8x8xf32>
    %257 = tpu.matmul %254, %255, %cst_113 {dimension_numbers = #tpu.dot_dimension_numbers<[1], [1], [0], [0], [0, 0, 1, 0], [], []>} : vector<8x8xf32>, vector<8x8xf32>, vector<8x8xf32> -> vector<8x8xf32>
    %cst_114 = arith.constant 0.353553385 : f32
    %258 = vector.broadcast %cst_114 : f32 to vector<8x8xf32>
    %259 = arith.mulf %257, %258 : vector<8x8xf32>
    %cst_115 = arith.constant dense<0xFF800000> : vector<8xf32>
    %260 = vector.multi_reduction <maximumf>, %259, %cst_115 [1] : vector<8x8xf32> to vector<8xf32>
    %261 = vector.shape_cast %260 : vector<8xf32> to vector<8x1xf32>
    %262 = vector.broadcast %261 : vector<8x1xf32> to vector<8x8xf32>
    %263 = arith.subf %259, %262 : vector<8x8xf32>
    %264 = math.exp %263 : vector<8x8xf32>
    %cst_116 = arith.constant dense<0.000000e+00> : vector<8xf32>
    %265 = vector.multi_reduction <add>, %264, %cst_116 [1] : vector<8x8xf32> to vector<8xf32>
    %266 = vector.shape_cast %265 : vector<8xf32> to vector<8x1xf32>
    %267 = tpu.reciprocal %266 {approx = true} : vector<8x1xf32> -> vector<8x1xf32>
    %268 = vector.broadcast %267 : vector<8x1xf32> to vector<8x8xf32>
    %269 = arith.mulf %264, %268 : vector<8x8xf32>
    %cst_117 = arith.constant dense<0.000000e+00> : vector<8x8xf32>
    %270 = tpu.matmul %269, %256, %cst_117 {dimension_numbers = #tpu.dot_dimension_numbers<[1], [0], [0], [1], [0, 0, 1, 1], [], []>} : vector<8x8xf32>, vector<8x8xf32>, vector<8x8xf32> -> vector<8x8xf32>
    %271 = vector.extract_strided_slice %253 {offsets = [0, 8], sizes = [8, 8], strides = [1, 1]} : vector<16x96xf32> to vector<8x8xf32>
    %272 = vector.extract_strided_slice %253 {offsets = [0, 40], sizes = [8, 8], strides = [1, 1]} : vector<16x96xf32> to vector<8x8xf32>
    %273 = vector.extract_strided_slice %253 {offsets = [0, 72], sizes = [8, 8], strides = [1, 1]} : vector<16x96xf32> to vector<8x8xf32>
    %cst_118 = arith.constant dense<0.000000e+00> : vector<8x8xf32>
    %274 = tpu.matmul %271, %272, %cst_118 {dimension_numbers = #tpu.dot_dimension_numbers<[1], [1], [0], [0], [0, 0, 1, 0], [], []>} : vector<8x8xf32>, vector<8x8xf32>, vector<8x8xf32> -> vector<8x8xf32>
    %cst_119 = arith.constant 0.353553385 : f32
    %275 = vector.broadcast %cst_119 : f32 to vector<8x8xf32>
    %276 = arith.mulf %274, %275 : vector<8x8xf32>
    %cst_120 = arith.constant dense<0xFF800000> : vector<8xf32>
    %277 = vector.multi_reduction <maximumf>, %276, %cst_120 [1] : vector<8x8xf32> to vector<8xf32>
    %278 = vector.shape_cast %277 : vector<8xf32> to vector<8x1xf32>
    %279 = vector.broadcast %278 : vector<8x1xf32> to vector<8x8xf32>
    %280 = arith.subf %276, %279 : vector<8x8xf32>
    %281 = math.exp %280 : vector<8x8xf32>
    %cst_121 = arith.constant dense<0.000000e+00> : vector<8xf32>
    %282 = vector.multi_reduction <add>, %281, %cst_121 [1] : vector<8x8xf32> to vector<8xf32>
    %283 = vector.shape_cast %282 : vector<8xf32> to vector<8x1xf32>
    %284 = tpu.reciprocal %283 {approx = true} : vector<8x1xf32> -> vector<8x1xf32>
    %285 = vector.broadcast %284 : vector<8x1xf32> to vector<8x8xf32>
    %286 = arith.mulf %281, %285 : vector<8x8xf32>
    %cst_122 = arith.constant dense<0.000000e+00> : vector<8x8xf32>
    %287 = tpu.matmul %286, %273, %cst_122 {dimension_numbers = #tpu.dot_dimension_numbers<[1], [0], [0], [1], [0, 0, 1, 1], [], []>} : vector<8x8xf32>, vector<8x8xf32>, vector<8x8xf32> -> vector<8x8xf32>
    %288 = vector.extract_strided_slice %253 {offsets = [0, 16], sizes = [8, 8], strides = [1, 1]} : vector<16x96xf32> to vector<8x8xf32>
    %289 = vector.extract_strided_slice %253 {offsets = [0, 48], sizes = [8, 8], strides = [1, 1]} : vector<16x96xf32> to vector<8x8xf32>
    %290 = vector.extract_strided_slice %253 {offsets = [0, 80], sizes = [8, 8], strides = [1, 1]} : vector<16x96xf32> to vector<8x8xf32>
    %cst_123 = arith.constant dense<0.000000e+00> : vector<8x8xf32>
    %291 = tpu.matmul %288, %289, %cst_123 {dimension_numbers = #tpu.dot_dimension_numbers<[1], [1], [0], [0], [0, 0, 1, 0], [], []>} : vector<8x8xf32>, vector<8x8xf32>, vector<8x8xf32> -> vector<8x8xf32>
    %cst_124 = arith.constant 0.353553385 : f32
    %292 = vector.broadcast %cst_124 : f32 to vector<8x8xf32>
    %293 = arith.mulf %291, %292 : vector<8x8xf32>
    %cst_125 = arith.constant dense<0xFF800000> : vector<8xf32>
    %294 = vector.multi_reduction <maximumf>, %293, %cst_125 [1] : vector<8x8xf32> to vector<8xf32>
    %295 = vector.shape_cast %294 : vector<8xf32> to vector<8x1xf32>
    %296 = vector.broadcast %295 : vector<8x1xf32> to vector<8x8xf32>
    %297 = arith.subf %293, %296 : vector<8x8xf32>
    %298 = math.exp %297 : vector<8x8xf32>
    %cst_126 = arith.constant dense<0.000000e+00> : vector<8xf32>
    %299 = vector.multi_reduction <add>, %298, %cst_126 [1] : vector<8x8xf32> to vector<8xf32>
    %300 = vector.shape_cast %299 : vector<8xf32> to vector<8x1xf32>
    %301 = tpu.reciprocal %300 {approx = true} : vector<8x1xf32> -> vector<8x1xf32>
    %302 = vector.broadcast %301 : vector<8x1xf32> to vector<8x8xf32>
    %303 = arith.mulf %298, %302 : vector<8x8xf32>
    %cst_127 = arith.constant dense<0.000000e+00> : vector<8x8xf32>
    %304 = tpu.matmul %303, %290, %cst_127 {dimension_numbers = #tpu.dot_dimension_numbers<[1], [0], [0], [1], [0, 0, 1, 1], [], []>} : vector<8x8xf32>, vector<8x8xf32>, vector<8x8xf32> -> vector<8x8xf32>
    %305 = vector.extract_strided_slice %253 {offsets = [0, 24], sizes = [8, 8], strides = [1, 1]} : vector<16x96xf32> to vector<8x8xf32>
    %306 = vector.extract_strided_slice %253 {offsets = [0, 56], sizes = [8, 8], strides = [1, 1]} : vector<16x96xf32> to vector<8x8xf32>
    %307 = vector.extract_strided_slice %253 {offsets = [0, 88], sizes = [8, 8], strides = [1, 1]} : vector<16x96xf32> to vector<8x8xf32>
    %cst_128 = arith.constant dense<0.000000e+00> : vector<8x8xf32>
    %308 = tpu.matmul %305, %306, %cst_128 {dimension_numbers = #tpu.dot_dimension_numbers<[1], [1], [0], [0], [0, 0, 1, 0], [], []>} : vector<8x8xf32>, vector<8x8xf32>, vector<8x8xf32> -> vector<8x8xf32>
    %cst_129 = arith.constant 0.353553385 : f32
    %309 = vector.broadcast %cst_129 : f32 to vector<8x8xf32>
    %310 = arith.mulf %308, %309 : vector<8x8xf32>
    %cst_130 = arith.constant dense<0xFF800000> : vector<8xf32>
    %311 = vector.multi_reduction <maximumf>, %310, %cst_130 [1] : vector<8x8xf32> to vector<8xf32>
    %312 = vector.shape_cast %311 : vector<8xf32> to vector<8x1xf32>
    %313 = vector.broadcast %312 : vector<8x1xf32> to vector<8x8xf32>
    %314 = arith.subf %310, %313 : vector<8x8xf32>
    %315 = math.exp %314 : vector<8x8xf32>
    %cst_131 = arith.constant dense<0.000000e+00> : vector<8xf32>
    %316 = vector.multi_reduction <add>, %315, %cst_131 [1] : vector<8x8xf32> to vector<8xf32>
    %317 = vector.shape_cast %316 : vector<8xf32> to vector<8x1xf32>
    %318 = tpu.reciprocal %317 {approx = true} : vector<8x1xf32> -> vector<8x1xf32>
    %319 = vector.broadcast %318 : vector<8x1xf32> to vector<8x8xf32>
    %320 = arith.mulf %315, %319 : vector<8x8xf32>
    %cst_132 = arith.constant dense<0.000000e+00> : vector<8x8xf32>
    %321 = tpu.matmul %320, %307, %cst_132 {dimension_numbers = #tpu.dot_dimension_numbers<[1], [0], [0], [1], [0, 0, 1, 1], [], []>} : vector<8x8xf32>, vector<8x8xf32>, vector<8x8xf32> -> vector<8x8xf32>
    %322 = tpu.concatenate %270, %287, %304, %321 in 1 : vector<8x8xf32>, vector<8x8xf32>, vector<8x8xf32>, vector<8x8xf32> -> vector<8x32xf32>
    %323 = vector.extract_strided_slice %253 {offsets = [8, 0], sizes = [8, 8], strides = [1, 1]} : vector<16x96xf32> to vector<8x8xf32>
    %324 = vector.extract_strided_slice %253 {offsets = [8, 32], sizes = [8, 8], strides = [1, 1]} : vector<16x96xf32> to vector<8x8xf32>
    %325 = vector.extract_strided_slice %253 {offsets = [8, 64], sizes = [8, 8], strides = [1, 1]} : vector<16x96xf32> to vector<8x8xf32>
    %cst_133 = arith.constant dense<0.000000e+00> : vector<8x8xf32>
    %326 = tpu.matmul %323, %324, %cst_133 {dimension_numbers = #tpu.dot_dimension_numbers<[1], [1], [0], [0], [0, 0, 1, 0], [], []>} : vector<8x8xf32>, vector<8x8xf32>, vector<8x8xf32> -> vector<8x8xf32>
    %cst_134 = arith.constant 0.353553385 : f32
    %327 = vector.broadcast %cst_134 : f32 to vector<8x8xf32>
    %328 = arith.mulf %326, %327 : vector<8x8xf32>
    %cst_135 = arith.constant dense<0xFF800000> : vector<8xf32>
    %329 = vector.multi_reduction <maximumf>, %328, %cst_135 [1] : vector<8x8xf32> to vector<8xf32>
    %330 = vector.shape_cast %329 : vector<8xf32> to vector<8x1xf32>
    %331 = vector.broadcast %330 : vector<8x1xf32> to vector<8x8xf32>
    %332 = arith.subf %328, %331 : vector<8x8xf32>
    %333 = math.exp %332 : vector<8x8xf32>
    %cst_136 = arith.constant dense<0.000000e+00> : vector<8xf32>
    %334 = vector.multi_reduction <add>, %333, %cst_136 [1] : vector<8x8xf32> to vector<8xf32>
    %335 = vector.shape_cast %334 : vector<8xf32> to vector<8x1xf32>
    %336 = tpu.reciprocal %335 {approx = true} : vector<8x1xf32> -> vector<8x1xf32>
    %337 = vector.broadcast %336 : vector<8x1xf32> to vector<8x8xf32>
    %338 = arith.mulf %333, %337 : vector<8x8xf32>
    %cst_137 = arith.constant dense<0.000000e+00> : vector<8x8xf32>
    %339 = tpu.matmul %338, %325, %cst_137 {dimension_numbers = #tpu.dot_dimension_numbers<[1], [0], [0], [1], [0, 0, 1, 1], [], []>} : vector<8x8xf32>, vector<8x8xf32>, vector<8x8xf32> -> vector<8x8xf32>
    %340 = vector.extract_strided_slice %253 {offsets = [8, 8], sizes = [8, 8], strides = [1, 1]} : vector<16x96xf32> to vector<8x8xf32>
    %341 = vector.extract_strided_slice %253 {offsets = [8, 40], sizes = [8, 8], strides = [1, 1]} : vector<16x96xf32> to vector<8x8xf32>
    %342 = vector.extract_strided_slice %253 {offsets = [8, 72], sizes = [8, 8], strides = [1, 1]} : vector<16x96xf32> to vector<8x8xf32>
    %cst_138 = arith.constant dense<0.000000e+00> : vector<8x8xf32>
    %343 = tpu.matmul %340, %341, %cst_138 {dimension_numbers = #tpu.dot_dimension_numbers<[1], [1], [0], [0], [0, 0, 1, 0], [], []>} : vector<8x8xf32>, vector<8x8xf32>, vector<8x8xf32> -> vector<8x8xf32>
    %cst_139 = arith.constant 0.353553385 : f32
    %344 = vector.broadcast %cst_139 : f32 to vector<8x8xf32>
    %345 = arith.mulf %343, %344 : vector<8x8xf32>
    %cst_140 = arith.constant dense<0xFF800000> : vector<8xf32>
    %346 = vector.multi_reduction <maximumf>, %345, %cst_140 [1] : vector<8x8xf32> to vector<8xf32>
    %347 = vector.shape_cast %346 : vector<8xf32> to vector<8x1xf32>
    %348 = vector.broadcast %347 : vector<8x1xf32> to vector<8x8xf32>
    %349 = arith.subf %345, %348 : vector<8x8xf32>
    %350 = math.exp %349 : vector<8x8xf32>
    %cst_141 = arith.constant dense<0.000000e+00> : vector<8xf32>
    %351 = vector.multi_reduction <add>, %350, %cst_141 [1] : vector<8x8xf32> to vector<8xf32>
    %352 = vector.shape_cast %351 : vector<8xf32> to vector<8x1xf32>
    %353 = tpu.reciprocal %352 {approx = true} : vector<8x1xf32> -> vector<8x1xf32>
    %354 = vector.broadcast %353 : vector<8x1xf32> to vector<8x8xf32>
    %355 = arith.mulf %350, %354 : vector<8x8xf32>
    %cst_142 = arith.constant dense<0.000000e+00> : vector<8x8xf32>
    %356 = tpu.matmul %355, %342, %cst_142 {dimension_numbers = #tpu.dot_dimension_numbers<[1], [0], [0], [1], [0, 0, 1, 1], [], []>} : vector<8x8xf32>, vector<8x8xf32>, vector<8x8xf32> -> vector<8x8xf32>
    %357 = vector.extract_strided_slice %253 {offsets = [8, 16], sizes = [8, 8], strides = [1, 1]} : vector<16x96xf32> to vector<8x8xf32>
    %358 = vector.extract_strided_slice %253 {offsets = [8, 48], sizes = [8, 8], strides = [1, 1]} : vector<16x96xf32> to vector<8x8xf32>
    %359 = vector.extract_strided_slice %253 {offsets = [8, 80], sizes = [8, 8], strides = [1, 1]} : vector<16x96xf32> to vector<8x8xf32>
    %cst_143 = arith.constant dense<0.000000e+00> : vector<8x8xf32>
    %360 = tpu.matmul %357, %358, %cst_143 {dimension_numbers = #tpu.dot_dimension_numbers<[1], [1], [0], [0], [0, 0, 1, 0], [], []>} : vector<8x8xf32>, vector<8x8xf32>, vector<8x8xf32> -> vector<8x8xf32>
    %cst_144 = arith.constant 0.353553385 : f32
    %361 = vector.broadcast %cst_144 : f32 to vector<8x8xf32>
    %362 = arith.mulf %360, %361 : vector<8x8xf32>
    %cst_145 = arith.constant dense<0xFF800000> : vector<8xf32>
    %363 = vector.multi_reduction <maximumf>, %362, %cst_145 [1] : vector<8x8xf32> to vector<8xf32>
    %364 = vector.shape_cast %363 : vector<8xf32> to vector<8x1xf32>
    %365 = vector.broadcast %364 : vector<8x1xf32> to vector<8x8xf32>
    %366 = arith.subf %362, %365 : vector<8x8xf32>
    %367 = math.exp %366 : vector<8x8xf32>
    %cst_146 = arith.constant dense<0.000000e+00> : vector<8xf32>
    %368 = vector.multi_reduction <add>, %367, %cst_146 [1] : vector<8x8xf32> to vector<8xf32>
    %369 = vector.shape_cast %368 : vector<8xf32> to vector<8x1xf32>
    %370 = tpu.reciprocal %369 {approx = true} : vector<8x1xf32> -> vector<8x1xf32>
    %371 = vector.broadcast %370 : vector<8x1xf32> to vector<8x8xf32>
    %372 = arith.mulf %367, %371 : vector<8x8xf32>
    %cst_147 = arith.constant dense<0.000000e+00> : vector<8x8xf32>
    %373 = tpu.matmul %372, %359, %cst_147 {dimension_numbers = #tpu.dot_dimension_numbers<[1], [0], [0], [1], [0, 0, 1, 1], [], []>} : vector<8x8xf32>, vector<8x8xf32>, vector<8x8xf32> -> vector<8x8xf32>
    %374 = vector.extract_strided_slice %253 {offsets = [8, 24], sizes = [8, 8], strides = [1, 1]} : vector<16x96xf32> to vector<8x8xf32>
    %375 = vector.extract_strided_slice %253 {offsets = [8, 56], sizes = [8, 8], strides = [1, 1]} : vector<16x96xf32> to vector<8x8xf32>
    %376 = vector.extract_strided_slice %253 {offsets = [8, 88], sizes = [8, 8], strides = [1, 1]} : vector<16x96xf32> to vector<8x8xf32>
    %cst_148 = arith.constant dense<0.000000e+00> : vector<8x8xf32>
    %377 = tpu.matmul %374, %375, %cst_148 {dimension_numbers = #tpu.dot_dimension_numbers<[1], [1], [0], [0], [0, 0, 1, 0], [], []>} : vector<8x8xf32>, vector<8x8xf32>, vector<8x8xf32> -> vector<8x8xf32>
    %cst_149 = arith.constant 0.353553385 : f32
    %378 = vector.broadcast %cst_149 : f32 to vector<8x8xf32>
    %379 = arith.mulf %377, %378 : vector<8x8xf32>
    %cst_150 = arith.constant dense<0xFF800000> : vector<8xf32>
    %380 = vector.multi_reduction <maximumf>, %379, %cst_150 [1] : vector<8x8xf32> to vector<8xf32>
    %381 = vector.shape_cast %380 : vector<8xf32> to vector<8x1xf32>
    %382 = vector.broadcast %381 : vector<8x1xf32> to vector<8x8xf32>
    %383 = arith.subf %379, %382 : vector<8x8xf32>
    %384 = math.exp %383 : vector<8x8xf32>
    %cst_151 = arith.constant dense<0.000000e+00> : vector<8xf32>
    %385 = vector.multi_reduction <add>, %384, %cst_151 [1] : vector<8x8xf32> to vector<8xf32>
    %386 = vector.shape_cast %385 : vector<8xf32> to vector<8x1xf32>
    %387 = tpu.reciprocal %386 {approx = true} : vector<8x1xf32> -> vector<8x1xf32>
    %388 = vector.broadcast %387 : vector<8x1xf32> to vector<8x8xf32>
    %389 = arith.mulf %384, %388 : vector<8x8xf32>
    %cst_152 = arith.constant dense<0.000000e+00> : vector<8x8xf32>
    %390 = tpu.matmul %389, %376, %cst_152 {dimension_numbers = #tpu.dot_dimension_numbers<[1], [0], [0], [1], [0, 0, 1, 1], [], []>} : vector<8x8xf32>, vector<8x8xf32>, vector<8x8xf32> -> vector<8x8xf32>
    %391 = tpu.concatenate %339, %356, %373, %390 in 1 : vector<8x8xf32>, vector<8x8xf32>, vector<8x8xf32>, vector<8x8xf32> -> vector<8x32xf32>
    %392 = tpu.concatenate %322, %391 in 0 : vector<8x32xf32>, vector<8x32xf32> -> vector<16x32xf32>
    %c1_153 = arith.constant 1 : index
    %c0_154 = arith.constant 0 : index
    %c0_155 = arith.constant 0 : index
    %393 = vector.load %arg12[%c1_153, %c0_154, %c0_155] : memref<2x32x32xbf16, #tpu.memory_space<vmem>>, vector<1x32x32xbf16>
    %394 = vector.shape_cast %393 : vector<1x32x32xbf16> to vector<32x32xbf16>
    %395 = arith.truncf %392 : vector<16x32xf32> to vector<16x32xbf16>
    %cst_156 = arith.constant dense<0.000000e+00> : vector<16x32xf32>
    %396 = tpu.matmul %395, %394, %cst_156 {dimension_numbers = #tpu.dot_dimension_numbers<[1], [0], [0], [1], [0, 0, 1, 1], [], []>} : vector<16x32xbf16>, vector<32x32xbf16>, vector<16x32xf32> -> vector<16x32xf32>
    %c1_157 = arith.constant 1 : index
    %c0_158 = arith.constant 0 : index
    %c0_159 = arith.constant 0 : index
    %397 = vector.load %arg13[%c1_157, %c0_158, %c0_159] : memref<2x1x32xf32, #tpu.memory_space<vmem>>, vector<1x1x32xf32>
    %398 = vector.shape_cast %397 : vector<1x1x32xf32> to vector<1x32xf32>
    %399 = vector.broadcast %398 : vector<1x32xf32> to vector<16x32xf32>
    %400 = arith.addf %396, %399 : vector<16x32xf32>
    %401 = arith.addf %245, %400 : vector<16x32xf32>
    %c1_160 = arith.constant 1 : index
    %c0_161 = arith.constant 0 : index
    %c0_162 = arith.constant 0 : index
    %402 = vector.load %arg14[%c1_160, %c0_161, %c0_162] : memref<2x1x32xf32, #tpu.memory_space<vmem>>, vector<1x1x32xf32>
    %403 = vector.shape_cast %402 : vector<1x1x32xf32> to vector<1x32xf32>
    %c1_163 = arith.constant 1 : index
    %c0_164 = arith.constant 0 : index
    %c0_165 = arith.constant 0 : index
    %404 = vector.load %arg15[%c1_163, %c0_164, %c0_165] : memref<2x1x32xf32, #tpu.memory_space<vmem>>, vector<1x1x32xf32>
    %405 = vector.shape_cast %404 : vector<1x1x32xf32> to vector<1x32xf32>
    %cst_166 = arith.constant dense<0.000000e+00> : vector<16xf32>
    %406 = vector.multi_reduction <add>, %401, %cst_166 [1] : vector<16x32xf32> to vector<16xf32>
    %407 = vector.shape_cast %406 : vector<16xf32> to vector<16x1xf32>
    %cst_167 = arith.constant 3.200000e+01 : f32
    %408 = vector.broadcast %cst_167 : f32 to vector<16x1xf32>
    %409 = arith.divf %407, %408 : vector<16x1xf32>
    %410 = vector.broadcast %409 : vector<16x1xf32> to vector<16x32xf32>
    %411 = arith.subf %401, %410 : vector<16x32xf32>
    %412 = arith.mulf %411, %411 : vector<16x32xf32>
    %cst_168 = arith.constant dense<0.000000e+00> : vector<16xf32>
    %413 = vector.multi_reduction <add>, %412, %cst_168 [1] : vector<16x32xf32> to vector<16xf32>
    %414 = vector.shape_cast %413 : vector<16xf32> to vector<16x1xf32>
    %cst_169 = arith.constant 3.200000e+01 : f32
    %415 = vector.broadcast %cst_169 : f32 to vector<16x1xf32>
    %416 = arith.divf %414, %415 : vector<16x1xf32>
    %417 = vector.broadcast %409 : vector<16x1xf32> to vector<16x32xf32>
    %418 = arith.subf %401, %417 : vector<16x32xf32>
    %cst_170 = arith.constant 9.99999974E-6 : f32
    %419 = vector.broadcast %cst_170 : f32 to vector<16x1xf32>
    %420 = arith.addf %416, %419 : vector<16x1xf32>
    %421 = math.rsqrt %420 : vector<16x1xf32>
    %422 = vector.broadcast %421 : vector<16x1xf32> to vector<16x32xf32>
    %423 = arith.mulf %418, %422 : vector<16x32xf32>
    %424 = vector.broadcast %403 : vector<1x32xf32> to vector<16x32xf32>
    %425 = arith.mulf %423, %424 : vector<16x32xf32>
    %426 = vector.broadcast %405 : vector<1x32xf32> to vector<16x32xf32>
    %427 = arith.addf %425, %426 : vector<16x32xf32>
    %c1_171 = arith.constant 1 : index
    %c0_172 = arith.constant 0 : index
    %c0_173 = arith.constant 0 : index
    %428 = vector.load %arg16[%c1_171, %c0_172, %c0_173] : memref<2x32x64xbf16, #tpu.memory_space<vmem>>, vector<1x32x64xbf16>
    %429 = vector.shape_cast %428 : vector<1x32x64xbf16> to vector<32x64xbf16>
    %430 = arith.truncf %427 : vector<16x32xf32> to vector<16x32xbf16>
    %cst_174 = arith.constant dense<0.000000e+00> : vector<16x64xf32>
    %431 = tpu.matmul %430, %429, %cst_174 {dimension_numbers = #tpu.dot_dimension_numbers<[1], [0], [0], [1], [0, 0, 1, 1], [], []>} : vector<16x32xbf16>, vector<32x64xbf16>, vector<16x64xf32> -> vector<16x64xf32>
    %c1_175 = arith.constant 1 : index
    %c0_176 = arith.constant 0 : index
    %c0_177 = arith.constant 0 : index
    %432 = vector.load %arg17[%c1_175, %c0_176, %c0_177] : memref<2x1x64xf32, #tpu.memory_space<vmem>>, vector<1x1x64xf32>
    %433 = vector.shape_cast %432 : vector<1x1x64xf32> to vector<1x64xf32>
    %434 = vector.broadcast %433 : vector<1x64xf32> to vector<16x64xf32>
    %435 = arith.addf %431, %434 : vector<16x64xf32>
    %cst_178 = arith.constant 0.000000e+00 : f32
    %436 = vector.broadcast %cst_178 : f32 to vector<16x64xf32>
    %437 = arith.maximumf %435, %436 : vector<16x64xf32>
    %c1_179 = arith.constant 1 : index
    %c0_180 = arith.constant 0 : index
    %c0_181 = arith.constant 0 : index
    %438 = vector.load %arg18[%c1_179, %c0_180, %c0_181] : memref<2x64x32xbf16, #tpu.memory_space<vmem>>, vector<1x64x32xbf16>
    %439 = vector.shape_cast %438 : vector<1x64x32xbf16> to vector<64x32xbf16>
    %440 = arith.truncf %437 : vector<16x64xf32> to vector<16x64xbf16>
    %cst_182 = arith.constant dense<0.000000e+00> : vector<16x32xf32>
    %441 = tpu.matmul %440, %439, %cst_182 {dimension_numbers = #tpu.dot_dimension_numbers<[1], [0], [0], [1], [0, 0, 1, 1], [], []>} : vector<16x64xbf16>, vector<64x32xbf16>, vector<16x32xf32> -> vector<16x32xf32>
    %c1_183 = arith.constant 1 : index
    %c0_184 = arith.constant 0 : index
    %c0_185 = arith.constant 0 : index
    %442 = vector.load %arg19[%c1_183, %c0_184, %c0_185] : memref<2x1x32xf32, #tpu.memory_space<vmem>>, vector<1x1x32xf32>
    %443 = vector.shape_cast %442 : vector<1x1x32xf32> to vector<1x32xf32>
    %444 = vector.broadcast %443 : vector<1x32xf32> to vector<16x32xf32>
    %445 = arith.addf %441, %444 : vector<16x32xf32>
    %446 = arith.addf %427, %445 : vector<16x32xf32>
    %c1_186 = arith.constant 1 : index
    %c0_187 = arith.constant 0 : index
    %c0_188 = arith.constant 0 : index
    %447 = vector.load %arg20[%c1_186, %c0_187, %c0_188] : memref<2x1x32xf32, #tpu.memory_space<vmem>>, vector<1x1x32xf32>
    %448 = vector.shape_cast %447 : vector<1x1x32xf32> to vector<1x32xf32>
    %c1_189 = arith.constant 1 : index
    %c0_190 = arith.constant 0 : index
    %c0_191 = arith.constant 0 : index
    %449 = vector.load %arg21[%c1_189, %c0_190, %c0_191] : memref<2x1x32xf32, #tpu.memory_space<vmem>>, vector<1x1x32xf32>
    %450 = vector.shape_cast %449 : vector<1x1x32xf32> to vector<1x32xf32>
    %cst_192 = arith.constant dense<0.000000e+00> : vector<16xf32>
    %451 = vector.multi_reduction <add>, %446, %cst_192 [1] : vector<16x32xf32> to vector<16xf32>
    %452 = vector.shape_cast %451 : vector<16xf32> to vector<16x1xf32>
    %cst_193 = arith.constant 3.200000e+01 : f32
    %453 = vector.broadcast %cst_193 : f32 to vector<16x1xf32>
    %454 = arith.divf %452, %453 : vector<16x1xf32>
    %455 = vector.broadcast %454 : vector<16x1xf32> to vector<16x32xf32>
    %456 = arith.subf %446, %455 : vector<16x32xf32>
    %457 = arith.mulf %456, %456 : vector<16x32xf32>
    %cst_194 = arith.constant dense<0.000000e+00> : vector<16xf32>
    %458 = vector.multi_reduction <add>, %457, %cst_194 [1] : vector<16x32xf32> to vector<16xf32>
    %459 = vector.shape_cast %458 : vector<16xf32> to vector<16x1xf32>
    %cst_195 = arith.constant 3.200000e+01 : f32
    %460 = vector.broadcast %cst_195 : f32 to vector<16x1xf32>
    %461 = arith.divf %459, %460 : vector<16x1xf32>
    %462 = vector.broadcast %454 : vector<16x1xf32> to vector<16x32xf32>
    %463 = arith.subf %446, %462 : vector<16x32xf32>
    %cst_196 = arith.constant 9.99999974E-6 : f32
    %464 = vector.broadcast %cst_196 : f32 to vector<16x1xf32>
    %465 = arith.addf %461, %464 : vector<16x1xf32>
    %466 = math.rsqrt %465 : vector<16x1xf32>
    %467 = vector.broadcast %466 : vector<16x1xf32> to vector<16x32xf32>
    %468 = arith.mulf %463, %467 : vector<16x32xf32>
    %469 = vector.broadcast %448 : vector<1x32xf32> to vector<16x32xf32>
    %470 = arith.mulf %468, %469 : vector<16x32xf32>
    %471 = vector.broadcast %450 : vector<1x32xf32> to vector<16x32xf32>
    %472 = arith.addf %470, %471 : vector<16x32xf32>
    %c0_197 = arith.constant 0 : index
    %c0_198 = arith.constant 0 : index
    %473 = vector.load %arg1[%c0_197, %c0_198] : memref<2x6xf32, #tpu.memory_space<vmem>>, vector<2x6xf32>
    %c0_199 = arith.constant 0 : index
    %c0_200 = arith.constant 0 : index
    %474 = vector.load %arg5[%c0_199, %c0_200] : memref<6x32xbf16, #tpu.memory_space<vmem>>, vector<6x32xbf16>
    %475 = arith.truncf %473 : vector<2x6xf32> to vector<2x6xbf16>
    %cst_201 = arith.constant dense<0.000000e+00> : vector<2x32xf32>
    %476 = tpu.matmul %475, %474, %cst_201 {dimension_numbers = #tpu.dot_dimension_numbers<[1], [0], [0], [1], [0, 0, 1, 1], [], []>} : vector<2x6xbf16>, vector<6x32xbf16>, vector<2x32xf32> -> vector<2x32xf32>
    %c0_202 = arith.constant 0 : index
    %c0_203 = arith.constant 0 : index
    %477 = vector.load %arg6[%c0_202, %c0_203] : memref<1x32xf32, #tpu.memory_space<vmem>>, vector<1x32xf32>
    %478 = vector.broadcast %477 : vector<1x32xf32> to vector<2x32xf32>
    %479 = arith.addf %476, %478 : vector<2x32xf32>
    %480 = vector.extract_strided_slice %472 {offsets = [7, 0], sizes = [1, 32], strides = [1, 1]} : vector<16x32xf32> to vector<1x32xf32>
    %481 = vector.extract_strided_slice %472 {offsets = [15, 0], sizes = [1, 32], strides = [1, 1]} : vector<16x32xf32> to vector<1x32xf32>
    %482 = tpu.concatenate %480, %481 in 0 : vector<1x32xf32>, vector<1x32xf32> -> vector<2x32xf32>
    %c0_204 = arith.constant 0 : index
    %c0_205 = arith.constant 0 : index
    %483 = vector.load %arg22[%c0_204, %c0_205] : memref<32x128xbf16, #tpu.memory_space<vmem>>, vector<32x128xbf16>
    %484 = arith.truncf %479 : vector<2x32xf32> to vector<2x32xbf16>
    %cst_206 = arith.constant dense<0.000000e+00> : vector<2x128xf32>
    %485 = tpu.matmul %484, %483, %cst_206 {dimension_numbers = #tpu.dot_dimension_numbers<[1], [0], [0], [1], [0, 0, 1, 1], [], []>} : vector<2x32xbf16>, vector<32x128xbf16>, vector<2x128xf32> -> vector<2x128xf32>
    %c0_207 = arith.constant 0 : index
    %c0_208 = arith.constant 0 : index
    %486 = vector.load %arg23[%c0_207, %c0_208] : memref<32x128xbf16, #tpu.memory_space<vmem>>, vector<32x128xbf16>
    %487 = arith.truncf %482 : vector<2x32xf32> to vector<2x32xbf16>
    %cst_209 = arith.constant dense<0.000000e+00> : vector<2x128xf32>
    %488 = tpu.matmul %487, %486, %cst_209 {dimension_numbers = #tpu.dot_dimension_numbers<[1], [0], [0], [1], [0, 0, 1, 1], [], []>} : vector<2x32xbf16>, vector<32x128xbf16>, vector<2x128xf32> -> vector<2x128xf32>
    %489 = arith.addf %485, %488 : vector<2x128xf32>
    %c0_210 = arith.constant 0 : index
    %c0_211 = arith.constant 0 : index
    %490 = vector.load %arg24[%c0_210, %c0_211] : memref<1x128xf32, #tpu.memory_space<vmem>>, vector<1x128xf32>
    %491 = vector.broadcast %490 : vector<1x128xf32> to vector<2x128xf32>
    %492 = arith.addf %489, %491 : vector<2x128xf32>
    %c0_212 = arith.constant 0 : index
    %c0_213 = arith.constant 0 : index
    %493 = vector.load %arg25[%c0_212, %c0_213] : memref<2x128xf32, #tpu.memory_space<vmem>>, vector<2x128xf32>
    tpu.vector_store %arg25[%c0_212, %c0_213], %492 {strides = array<i32>} : memref<2x128xf32, #tpu.memory_space<vmem>>, vector<2x128xf32>,
    return
  }
  func.func @transform_0(%arg0: i32) -> (i32, i32) {
    %c0_i32 = arith.constant 0 : i32
    %c0_i32_0 = arith.constant 0 : i32
    return %arg0, %c0_i32 : i32, i32
  }
  func.func @transform_1(%arg0: i32) -> (i32, i32) {
    %c0_i32 = arith.constant 0 : i32
    %c0_i32_0 = arith.constant 0 : i32
    return %arg0, %c0_i32 : i32, i32
  }
  func.func @transform_2(%arg0: i32) -> (i32, i32) {
    %c0_i32 = arith.constant 0 : i32
    %c0_i32_0 = arith.constant 0 : i32
    return %arg0, %c0_i32 : i32, i32
  }
  func.func @transform_3(%arg0: i32) -> (i32, i32) {
    %c0_i32 = arith.constant 0 : i32
    %c0_i32_0 = arith.constant 0 : i32
    %c0_i32_1 = arith.constant 0 : i32
    return %c0_i32, %c0_i32_0 : i32, i32
  }
  func.func @transform_4(%arg0: i32) -> (i32, i32) {
    %c0_i32 = arith.constant 0 : i32
    %c0_i32_0 = arith.constant 0 : i32
    %c0_i32_1 = arith.constant 0 : i32
    return %c0_i32, %c0_i32_0 : i32, i32
  }
  func.func @transform_5(%arg0: i32) -> (i32, i32) {
    %c0_i32 = arith.constant 0 : i32
    %c0_i32_0 = arith.constant 0 : i32
    %c0_i32_1 = arith.constant 0 : i32
    return %c0_i32, %c0_i32_0 : i32, i32
  }
  func.func @transform_6(%arg0: i32) -> (i32, i32) {
    %c0_i32 = arith.constant 0 : i32
    %c0_i32_0 = arith.constant 0 : i32
    %c0_i32_1 = arith.constant 0 : i32
    return %c0_i32, %c0_i32_0 : i32, i32
  }
  func.func @transform_7(%arg0: i32) -> (i32, i32) {
    %c0_i32 = arith.constant 0 : i32
    %c0_i32_0 = arith.constant 0 : i32
    %c0_i32_1 = arith.constant 0 : i32
    return %c0_i32, %c0_i32_0 : i32, i32
  }
  func.func @transform_8(%arg0: i32) -> (i32, i32) {
    %c0_i32 = arith.constant 0 : i32
    %c0_i32_0 = arith.constant 0 : i32
    %c0_i32_1 = arith.constant 0 : i32
    return %c0_i32, %c0_i32_0 : i32, i32
  }
  func.func @transform_9(%arg0: i32) -> (i32, i32, i32) {
    %c0_i32 = arith.constant 0 : i32
    %c0_i32_0 = arith.constant 0 : i32
    %c0_i32_1 = arith.constant 0 : i32
    %c0_i32_2 = arith.constant 0 : i32
    return %c0_i32, %c0_i32_0, %c0_i32_1 : i32, i32, i32
  }
  func.func @transform_10(%arg0: i32) -> (i32, i32, i32) {
    %c0_i32 = arith.constant 0 : i32
    %c0_i32_0 = arith.constant 0 : i32
    %c0_i32_1 = arith.constant 0 : i32
    %c0_i32_2 = arith.constant 0 : i32
    return %c0_i32, %c0_i32_0, %c0_i32_1 : i32, i32, i32
  }
  func.func @transform_11(%arg0: i32) -> (i32, i32, i32) {
    %c0_i32 = arith.constant 0 : i32
    %c0_i32_0 = arith.constant 0 : i32
    %c0_i32_1 = arith.constant 0 : i32
    %c0_i32_2 = arith.constant 0 : i32
    return %c0_i32, %c0_i32_0, %c0_i32_1 : i32, i32, i32
  }
  func.func @transform_12(%arg0: i32) -> (i32, i32, i32) {
    %c0_i32 = arith.constant 0 : i32
    %c0_i32_0 = arith.constant 0 : i32
    %c0_i32_1 = arith.constant 0 : i32
    %c0_i32_2 = arith.constant 0 : i32
    return %c0_i32, %c0_i32_0, %c0_i32_1 : i32, i32, i32
  }
  func.func @transform_13(%arg0: i32) -> (i32, i32, i32) {
    %c0_i32 = arith.constant 0 : i32
    %c0_i32_0 = arith.constant 0 : i32
    %c0_i32_1 = arith.constant 0 : i32
    %c0_i32_2 = arith.constant 0 : i32
    return %c0_i32, %c0_i32_0, %c0_i32_1 : i32, i32, i32
  }
  func.func @transform_14(%arg0: i32) -> (i32, i32, i32) {
    %c0_i32 = arith.constant 0 : i32
    %c0_i32_0 = arith.constant 0 : i32
    %c0_i32_1 = arith.constant 0 : i32
    %c0_i32_2 = arith.constant 0 : i32
    return %c0_i32, %c0_i32_0, %c0_i32_1 : i32, i32, i32
  }
  func.func @transform_15(%arg0: i32) -> (i32, i32, i32) {
    %c0_i32 = arith.constant 0 : i32
    %c0_i32_0 = arith.constant 0 : i32
    %c0_i32_1 = arith.constant 0 : i32
    %c0_i32_2 = arith.constant 0 : i32
    return %c0_i32, %c0_i32_0, %c0_i32_1 : i32, i32, i32
  }
  func.func @transform_16(%arg0: i32) -> (i32, i32, i32) {
    %c0_i32 = arith.constant 0 : i32
    %c0_i32_0 = arith.constant 0 : i32
    %c0_i32_1 = arith.constant 0 : i32
    %c0_i32_2 = arith.constant 0 : i32
    return %c0_i32, %c0_i32_0, %c0_i32_1 : i32, i32, i32
  }
  func.func @transform_17(%arg0: i32) -> (i32, i32, i32) {
    %c0_i32 = arith.constant 0 : i32
    %c0_i32_0 = arith.constant 0 : i32
    %c0_i32_1 = arith.constant 0 : i32
    %c0_i32_2 = arith.constant 0 : i32
    return %c0_i32, %c0_i32_0, %c0_i32_1 : i32, i32, i32
  }
  func.func @transform_18(%arg0: i32) -> (i32, i32, i32) {
    %c0_i32 = arith.constant 0 : i32
    %c0_i32_0 = arith.constant 0 : i32
    %c0_i32_1 = arith.constant 0 : i32
    %c0_i32_2 = arith.constant 0 : i32
    return %c0_i32, %c0_i32_0, %c0_i32_1 : i32, i32, i32
  }
  func.func @transform_19(%arg0: i32) -> (i32, i32, i32) {
    %c0_i32 = arith.constant 0 : i32
    %c0_i32_0 = arith.constant 0 : i32
    %c0_i32_1 = arith.constant 0 : i32
    %c0_i32_2 = arith.constant 0 : i32
    return %c0_i32, %c0_i32_0, %c0_i32_1 : i32, i32, i32
  }
  func.func @transform_20(%arg0: i32) -> (i32, i32, i32) {
    %c0_i32 = arith.constant 0 : i32
    %c0_i32_0 = arith.constant 0 : i32
    %c0_i32_1 = arith.constant 0 : i32
    %c0_i32_2 = arith.constant 0 : i32
    return %c0_i32, %c0_i32_0, %c0_i32_1 : i32, i32, i32
  }
  func.func @transform_21(%arg0: i32) -> (i32, i32) {
    %c0_i32 = arith.constant 0 : i32
    %c0_i32_0 = arith.constant 0 : i32
    %c0_i32_1 = arith.constant 0 : i32
    return %c0_i32, %c0_i32_0 : i32, i32
  }
  func.func @transform_22(%arg0: i32) -> (i32, i32) {
    %c0_i32 = arith.constant 0 : i32
    %c0_i32_0 = arith.constant 0 : i32
    %c0_i32_1 = arith.constant 0 : i32
    return %c0_i32, %c0_i32_0 : i32, i32
  }
  func.func @transform_23(%arg0: i32) -> (i32, i32) {
    %c0_i32 = arith.constant 0 : i32
    %c0_i32_0 = arith.constant 0 : i32
    %c0_i32_1 = arith.constant 0 : i32
    return %c0_i32, %c0_i32_0 : i32, i32
  }
  func.func @transform_24(%arg0: i32) -> (i32, i32) {
    %c0_i32 = arith.constant 0 : i32
    %c0_i32_0 = arith.constant 0 : i32
    return %arg0, %c0_i32 : i32, i32
  }
}

</mosaic_0001>

<bundles_post_ra>
// kernel: tpu_custom_call.1
= control target key start
LH: loop header
LB: loop body
LE: loop exit
PB: predicated region body
PF: predicated region fallthrough
CT: control target
= control target key end

     0   :  { %s6007_s0 = inlined_call_operand.hbm [shape: f32[2,6], index: 0, kind: input, shape index: {}]   ;;  %s6008_s1 = inlined_call_operand.vmem [shape: f32[16,3], index: 1, kind: input, shape index: {}]   ;;  %s6009_s2 = inlined_call_operand.vmem [shape: f32[10,16], index: 2, kind: input, shape index: {}]   ;;  %s6010_s3 = inlined_call_operand.vmem [shape: bf16[16,8], index: 3, kind: input, shape index: {}]   ;;  %s6011_s4 = inlined_call_operand.hbm [shape: bf16[6,32], index: 4, kind: input, shape index: {}]   ;;  %s6012_s5 = inlined_call_operand.hbm [shape: f32[1,32], index: 5, kind: input, shape index: {}]   ;;  %s6013_s6 = inlined_call_operand.hbm [shape: bf16[3,32], index: 6, kind: input, shape index: {}]   ;;  %s6014_s7 = inlined_call_operand.hbm [shape: f32[5,32], index: 7, kind: input, shape index: {}]   ;;  %s6015_s8 = inlined_call_operand.hbm [shape: f32[1,32], index: 8, kind: input, shape index: {}]   ;;  %s6016_s9 = inlined_call_operand.vmem [shape: bf16[2,32,96], index: 9, kind: input, shape index: {}]   ;;  %s6017_s10 = inlined_call_operand.hbm [shape: f32[2,1,96], index: 10, kind: input, shape index: {}]   ;;  %s6018_s11 = inlined_call_operand.vmem [shape: bf16[2,32,32], index: 11, kind: input, shape index: {}]   ;;  %s6019_s12 = inlined_call_operand.hbm [shape: f32[2,1,32], index: 12, kind: input, shape index: {}]   ;;  %s6020_s13 = inlined_call_operand.hbm [shape: f32[2,1,32], index: 13, kind: input, shape index: {}]   ;;  %s6021_s14 = inlined_call_operand.vmem [shape: f32[2,1,32], index: 14, kind: input, shape index: {}]   ;;  %s6022_s15 = inlined_call_operand.vmem [shape: bf16[2,32,64], index: 15, kind: input, shape index: {}]   ;;  %s6023_s16 = inlined_call_operand.vmem [shape: f32[2,1,64], index: 16, kind: input, shape index: {}]   ;;  %s6024_s17 = inlined_call_operand.vmem [shape: bf16[2,64,32], index: 17, kind: input, shape index: {}]   ;;  %s6025_s18 = inlined_call_operand.vmem [shape: f32[2,1,32], index: 18, kind: input, shape index: {}]   ;;  %s6026_s19 = inlined_call_operand.vmem [shape: f32[2,1,32], index: 19, kind: input, shape index: {}]   ;;  %s6027_s20 = inlined_call_operand.vmem [shape: f32[2,1,32], index: 20, kind: input, shape index: {}]   ;;  %s6028_s21 = inlined_call_operand.vmem [shape: bf16[32,128], index: 21, kind: input, shape index: {}]   ;;  %s6029_s22 = inlined_call_operand.vmem [shape: bf16[32,128], index: 22, kind: input, shape index: {}]   ;;  %s6030_s23 = inlined_call_operand.vmem [shape: f32[1,128], index: 23, kind: input, shape index: {}]   ;;  %s6031_s24 = inlined_call_operand.hbm [shape: f32[2,128], index: 24, kind: output, shape index: {}]  }
   0x1   :  { %6050 = sst [smem:[#allocation24_spill]] %s6007_s0 }
   0x2   :  { %6051 = sst [smem:[#allocation25_spill]] %s6008_s1 }
   0x3   :  { %6052 = sst [smem:[#allocation26_spill]] %s6009_s2 }
   0x4   :  { %6053 = sst [smem:[#allocation27_spill]] %s6010_s3 }
   0x5   :  { %6054 = sst [smem:[#allocation28_spill]] %s6011_s4 }
   0x6   :  { %6055 = sst [smem:[#allocation29_spill]] %s6012_s5 }
   0x7   :  { %6056 = sst [smem:[#allocation30_spill]] %s6013_s6 }
   0x8   :  { %6057 = sst [smem:[#allocation31_spill]] %s6014_s7 }
   0x9   :  { %6058 = sst [smem:[#allocation32_spill]] %s6015_s8 }
   0xa   :  { %29 = vsyncpa [#allocation3], 0 }
   0xb   :  { %30 = vsyncpa [#allocation6], 0 }
   0xc   :  { %31 = vsyncpa [#allocation9], 0 }
   0xd   :  { %32 = vsyncpa [#allocation12], 0 }
   0xe   :  { %33 = vsyncpa [#allocation15], 0 }
   0xf   :  { %34 = vsyncpa [#allocation4], 0  ;;  %s5151_s5 = smov [#allocation5]   ;;  %s5152_s27 = smov [#allocation8]  }
  0x10   :  { %s57_s26 = sshll.u32 %s5151_s5, 4  ;;  %s77_s28 = sshll.u32 %s5152_s27, 4  ;;  %s58_s26 = int_to_ptr.vmem [resolvable:$true] %s57_s26  ;;  %s78_s28 = int_to_ptr.vmem [resolvable:$true] %s77_s28 }
  0x11   :  { %s6059_s29 = sld [smem:[#allocation28_spill]] }
  0x17   :  { %s4919_s0 = scalar_lea.hbm %s6059_s29, 64 }
  0x18   :  { %p4920_p0 = scmp.ne.s32.totalorder %s6059_s29, %s4919_s0  ;;  %p4923_p1 = scmp.lt.u32.totalorder %s4919_s0, %s6059_s29 }
  0x1a   :  { %p4925_p2 = pnand %p4923_p1, %p4920_p0 }
  0x1c   :  { %4928 = shalt.err (!%p4925_p2)
}
  0x1d   :  { %s4929_s8 = scalar_lea.vmem %s58_s26, 64  ;;  %p4934_p4 = scmp.lt.s32.totalorder %s58_s26, %s58_s26 }
  0x1e   :  { %p4930_p3 = scmp.ne.s32.totalorder %s58_s26, %s4929_s8  ;;  %p4935_p5 = scmp.lt.s32.totalorder %s4929_s8, %s4929_s8 }
  0x20   :  { %p4936_p6 = por %p4935_p5, %p4934_p4 }
  0x22   :  { %p4937_p7 = pnand %p4936_p6, %p4930_p3 }
  0x24   :  { %4940 = shalt.err (!%p4937_p7)
}
  0x25   :  { %60 = dma.hbm_to_vmem [thread:$0]  %s6059_s29, 64, %s58_s26, [#allocation6]  }
  0x26   :  { %s6060_s6 = sld [smem:[#allocation30_spill]] }
  0x2c   :  { %s4941_s2 = scalar_lea.hbm %s6060_s6, 32 }
  0x2d   :  { %p4942_p8 = scmp.ne.s32.totalorder %s6060_s6, %s4941_s2  ;;  %p4945_p9 = scmp.lt.u32.totalorder %s4941_s2, %s6060_s6 }
  0x2f   :  { %p4947_p10 = pnand %p4945_p9, %p4942_p8 }
  0x31   :  { %4950 = shalt.err (!%p4947_p10)
}
  0x32   :  { %s4951_s25 = scalar_lea.vmem %s78_s28, 32  ;;  %p4956_p12 = scmp.lt.s32.totalorder %s78_s28, %s78_s28 }
  0x33   :  { %p4952_p11 = scmp.ne.s32.totalorder %s78_s28, %s4951_s25  ;;  %p4957_p13 = scmp.lt.s32.totalorder %s4951_s25, %s4951_s25 }
  0x35   :  { %p4958_p0 = por %p4957_p13, %p4956_p12 }
  0x37   :  { %p4959_p1 = pnand %p4958_p0, %p4952_p11 }
  0x39   :  { %4962 = shalt.err (!%p4959_p1)
}
  0x3a   :  { %80 = dma.hbm_to_vmem [thread:$0]  %s6060_s6, 32, %s78_s28, [#allocation9]  }
  0x3b   :  { %s5153_s8 = smov [#allocation11]   ;;  %s6061_s27 = sld [smem:[#allocation32_spill]] }
  0x3c   :  { %s97_s4 = sshll.u32 %s5153_s8, 4  ;;  %s98_s4 = int_to_ptr.vmem [resolvable:$true] %s97_s4 }
  0x41   :  { %s4963_s2 = scalar_lea.hbm %s6061_s27, 16 }
  0x42   :  { %p4964_p2 = scmp.ne.s32.totalorder %s6061_s27, %s4963_s2  ;;  %p4967_p3 = scmp.lt.u32.totalorder %s4963_s2, %s6061_s27 }
  0x44   :  { %p4969_p4 = pnand %p4967_p3, %p4964_p2 }
  0x46   :  { %4972 = shalt.err (!%p4969_p4)
}
  0x47   :  { %s4973_s25 = scalar_lea.vmem %s98_s4, 16  ;;  %s4977_s28 = scalar_lea.vmem %s98_s4, 32 }
  0x48   :  { %p4974_p5 = scmp.ne.s32.totalorder %s98_s4, %s4973_s25  ;;  %p4978_p6 = scmp.lt.s32.totalorder %s98_s4, %s98_s4 }
  0x49   :  { %p4979_p7 = scmp.lt.s32.totalorder %s4977_s28, %s4973_s25 }
  0x4b   :  { %p4980_p8 = por %p4979_p7, %p4978_p6 }
  0x4d   :  { %p4981_p9 = pnand %p4980_p8, %p4974_p5 }
  0x4f   :  { %4984 = shalt.err (!%p4981_p9)
}
  0x50   :  { %100 = dma.hbm_to_vmem [thread:$0]  %s6061_s27, 16, %s98_s4, [#allocation12]  }
  0x51   :  { %s5154_s29 = smov [#allocation14]   ;;  %s5155_s1 = smov [#allocation2]  }
  0x52   :  { %s122_s8 = sshll.u32 %s5154_s29, 4  ;;  %s41_s5 = sshll.u32 %s5155_s1, 4  ;;  %s123_s8 = int_to_ptr.vmem [resolvable:$true] %s122_s8  ;;  %s42_s5 = int_to_ptr.vmem [resolvable:$true] %s41_s5 }
  0x53   :  { %s4985_s30 = scalar_lea.hbm %s6019_s12, 32 }
  0x54   :  { %p4986_p10 = scmp.ne.s32.totalorder %s6019_s12, %s4985_s30  ;;  %p4989_p11 = scmp.lt.u32.totalorder %s4985_s30, %s6019_s12 }
  0x56   :  { %p4991_p12 = pnand %p4989_p11, %p4986_p10 }
  0x58   :  { %4994 = shalt.err (!%p4991_p12)
}
  0x59   :  { %s4995_s4 = scalar_lea.vmem %s123_s8, 32  ;;  %p5000_p0 = scmp.lt.s32.totalorder %s123_s8, %s123_s8 }
  0x5a   :  { %p4996_p13 = scmp.ne.s32.totalorder %s123_s8, %s4995_s4  ;;  %p5001_p1 = scmp.lt.s32.totalorder %s4995_s4, %s4995_s4 }
  0x5c   :  { %p5002_p2 = por %p5001_p1, %p5000_p0 }
  0x5e   :  { %p5003_p3 = pnand %p5002_p2, %p4996_p13 }
  0x60   :  { %5006 = shalt.err (!%p5003_p3)
}
  0x61   :  { %s6040_s27 = smov 16   ;;  %s6042_s6 = smov 1  }
  0x62   :  { %128 = dma.hbm_to_vmem [thread:$0]  %s6019_s12, 32, %s123_s8, [#allocation15], %s6040_s27, %s6040_s27, %s6042_s6  }
  0x63   :  { %s6062_s7 = sld [smem:[#allocation24_spill]] }
  0x69   :  { %s5007_s30 = scalar_lea.hbm %s6062_s7, 32 }
  0x6a   :  { %p5008_p4 = scmp.ne.s32.totalorder %s6062_s7, %s5007_s30  ;;  %p5011_p5 = scmp.lt.u32.totalorder %s5007_s30, %s6062_s7 }
  0x6c   :  { %p5013_p6 = pnand %p5011_p5, %p5008_p4 }
  0x6e   :  { %5016 = shalt.err (!%p5013_p6)
}
  0x6f   :  { %s5017_s4 = scalar_lea.vmem %s42_s5, 32  ;;  %p5022_p8 = scmp.lt.s32.totalorder %s42_s5, %s42_s5 }
  0x70   :  { %p5018_p7 = scmp.ne.s32.totalorder %s42_s5, %s5017_s4  ;;  %p5023_p9 = scmp.lt.s32.totalorder %s5017_s4, %s5017_s4 }
  0x72   :  { %p5024_p10 = por %p5023_p9, %p5022_p8 }
  0x74   :  { %p5025_p11 = pnand %p5024_p10, %p5018_p7 }
  0x76   :  { %5028 = shalt.err (!%p5025_p11)
}
  0x77   :  { %44 = dma.hbm_to_vmem [thread:$0]  %s6062_s7, 32, %s42_s5, [#allocation3]  }
  0x78   :  { %s5158_s26 = smov [#allocation7]   ;;  %s5159_s1 = smov [#allocation10]  }
  0x79   :  { %s67_s29 = sshll.u32 %s5158_s26, 4  ;;  %s87_s2 = sshll.u32 %s5159_s1, 4  ;;  %s68_s29 = int_to_ptr.vmem [resolvable:$true] %s67_s29  ;;  %s88_s2 = int_to_ptr.vmem [resolvable:$true] %s87_s2 }
  0x7a   :  { %s6063_s3 = sld [smem:[#allocation29_spill]] }
  0x80   :  { %s5029_s25 = scalar_lea.hbm %s6063_s3, 16 }
  0x81   :  { %p5030_p12 = scmp.ne.s32.totalorder %s6063_s3, %s5029_s25  ;;  %p5033_p13 = scmp.lt.u32.totalorder %s5029_s25, %s6063_s3 }
  0x83   :  { %p5035_p0 = pnand %p5033_p13, %p5030_p12 }
  0x85   :  { %5038 = shalt.err (!%p5035_p0)
}
  0x86   :  { %s5039_s5 = scalar_lea.vmem %s68_s29, 16  ;;  %s5043_s7 = scalar_lea.vmem %s68_s29, 32 }
  0x87   :  { %p5040_p1 = scmp.ne.s32.totalorder %s68_s29, %s5039_s5  ;;  %p5044_p2 = scmp.lt.s32.totalorder %s68_s29, %s68_s29 }
  0x88   :  { %p5045_p3 = scmp.lt.s32.totalorder %s5043_s7, %s5039_s5 }
  0x8a   :  { %p5046_p4 = por %p5045_p3, %p5044_p2 }
  0x8c   :  { %p5047_p5 = pnand %p5046_p4, %p5040_p1 }
  0x8e   :  { %5050 = shalt.err (!%p5047_p5)
}
  0x8f   :  { %70 = dma.hbm_to_vmem [thread:$0]  %s6063_s3, 16, %s68_s29, [#allocation6]  }
  0x90   :  { %s6064_s1 = sld [smem:[#allocation31_spill]] }
  0x96   :  { %s5051_s6 = scalar_lea.hbm %s6064_s1, 128 }
  0x97   :  { %p5052_p6 = scmp.ne.s32.totalorder %s6064_s1, %s5051_s6  ;;  %p5055_p7 = scmp.lt.u32.totalorder %s5051_s6, %s6064_s1 }
  0x99   :  { %p5057_p8 = pnand %p5055_p7, %p5052_p6 }
  0x9b   :  { %5060 = shalt.err (!%p5057_p8)
}
  0x9c   :  { %s5061_s4 = scalar_lea.vmem %s88_s2, 128  ;;  %p5066_p10 = scmp.lt.s32.totalorder %s88_s2, %s88_s2 }
  0x9d   :  { %p5062_p9 = scmp.ne.s32.totalorder %s88_s2, %s5061_s4  ;;  %p5067_p11 = scmp.lt.s32.totalorder %s5061_s4, %s5061_s4 }
  0x9f   :  { %p5068_p12 = por %p5067_p11, %p5066_p10 }
  0xa1   :  { %p5069_p13 = pnand %p5068_p12, %p5062_p9 }
  0xa3   :  { %5072 = shalt.err (!%p5069_p13)
}
  0xa4   :  { %90 = dma.hbm_to_vmem [thread:$0]  %s6064_s1, 128, %s88_s2, [#allocation9]  }
  0xa5   :  { %s5160_s5 = smov [#allocation13]   ;;  %s5161_s12 = smov [#allocation16]  }
  0xa6   :  { %s108_s7 = sshll.u32 %s5160_s5, 4  ;;  %s134_s8 = sshll.u32 %s5161_s12, 4  ;;  %s109_s7 = int_to_ptr.vmem [resolvable:$true] %s108_s7  ;;  %s135_s8 = int_to_ptr.vmem [resolvable:$true] %s134_s8 }
  0xa7   :  { %s5073_s6 = scalar_lea.hbm %s6017_s10, 32 }
  0xa8   :  { %p5074_p0 = scmp.ne.s32.totalorder %s6017_s10, %s5073_s6  ;;  %p5077_p1 = scmp.lt.u32.totalorder %s5073_s6, %s6017_s10 }
  0xaa   :  { %p5079_p2 = pnand %p5077_p1, %p5074_p0 }
  0xac   :  { %5082 = shalt.err (!%p5079_p2)
}
  0xad   :  { %s5083_s2 = scalar_lea.vmem %s109_s7, 32  ;;  %p5088_p4 = scmp.lt.s32.totalorder %s109_s7, %s109_s7 }
  0xae   :  { %p5084_p3 = scmp.ne.s32.totalorder %s109_s7, %s5083_s2  ;;  %p5089_p5 = scmp.lt.s32.totalorder %s5083_s2, %s5083_s2 }
  0xb0   :  { %p5090_p6 = por %p5089_p5, %p5088_p4 }
  0xb2   :  { %p5091_p7 = pnand %p5090_p6, %p5084_p3 }
  0xb4   :  { %5094 = shalt.err (!%p5091_p7)
}
  0xb5   :  { %s6065_s1 = smov 1   ;;  %s6066_s4 = smov 16  }
  0xb6   :  { %114 = dma.hbm_to_vmem [thread:$0]  %s6017_s10, 32, %s109_s7, [#allocation12], %s6066_s4, %s6066_s4, %s6065_s1  }
  0xb7   :  { %s5095_s27 = scalar_lea.hbm %s6020_s13, 32 }
  0xb8   :  { %p5096_p8 = scmp.ne.s32.totalorder %s6020_s13, %s5095_s27  ;;  %p5099_p9 = scmp.lt.u32.totalorder %s5095_s27, %s6020_s13 }
  0xba   :  { %p5101_p10 = pnand %p5099_p9, %p5096_p8 }
  0xbc   :  { %5104 = shalt.err (!%p5101_p10)
}
  0xbd   :  { %s5105_s25 = scalar_lea.vmem %s135_s8, 32  ;;  %p5110_p12 = scmp.lt.s32.totalorder %s135_s8, %s135_s8 }
  0xbe   :  { %p5106_p11 = scmp.ne.s32.totalorder %s135_s8, %s5105_s25  ;;  %p5111_p13 = scmp.lt.s32.totalorder %s5105_s25, %s5105_s25 }
  0xc0   :  { %p5112_p0 = por %p5111_p13, %p5110_p12 }
  0xc2   :  { %p5113_p1 = pnand %p5112_p0, %p5106_p11 }
  0xc4   :  { %5116 = shalt.err (!%p5113_p1)
}
  0xc5   :  { %140 = dma.hbm_to_vmem [thread:$0]  %s6020_s13, 32, %s135_s8, [#allocation15], %s6066_s4, %s6066_s4, %s6065_s1  }
  0xc6   :  { %5139 = dma.done.wait [#allocation3], 32  }
  0xc7   :  { %5140 = vsyncadd [#allocation3], 4294967264 }
  0xc8   :  { %5141 = dma.done.wait [#allocation6], 80  }
  0xc9   :  { %5142 = vsyncadd [#allocation6], 4294967216 }
  0xca   :  { %5143 = dma.done.wait [#allocation9], 160  }
  0xcb   :  { %5144 = vsyncadd [#allocation9], 4294967136 }
  0xcc   :  { %5145 = dma.done.wait [#allocation12], 48  }
  0xcd   :  { %5146 = vsyncadd [#allocation12], 4294967248 }
  0xce   :  { %5147 = dma.done.wait [#allocation15], 64  }
  0xcf   :  { %5148 = vsyncadd [#allocation15], 4294967232  ;;  %v5162_v0 = vmov 0.0   ;;  %vm5163_vm0 = vmmov 0   ;;  %s6067_s28 = sld [smem:[#allocation27_spill]]  ;;  %s6068_s29 = sld [smem:[#allocation26_spill]] }
  0xd0   :  { %4480 = vmatprep.subr.bf16.mxu0 %v5162_v0  ;;  %4482 = vmatprep.mubr.msk.bf16.mxu0 %vm5163_vm0, %v5162_v0  ;;  %vm200_vm1 = vcmask 130048   ;;  %v249_v5 = vld [vmem:[#allocation10] sm:$0x1f]  ;;  %vm286_vm2 = vcmask 1044480   ;;  %vm362_vm3 = vcmask 1042432   ;;  %vm476_vm4 = vcmask 1040384  }
  0xd1   :  { %4486 = vmatprep.subr.mxu1 %v5162_v0  ;;  %4488 = vmatprep.mubr.msk.f32.mxu1 %vm5163_vm0, %v5162_v0  ;;  %vm477_vm5 = vcmask 1041408   ;;  %v5164_v13 = vmov 65535   ;;  %vm282_vm6 = vcmask 39936   ;;  %v247_v16 = vld [vmem:[#allocation8] sm:$0x3]  ;;  %s6069_s26 = sld [smem:[#allocation25_spill]] }
  0xd2   :  { %4487 = vmatpush3.msk.msra.mxu1 %vm286_vm2, %v249_v5  ;;  %v478_v14 = vsel %vm476_vm4, 4294967295, %v5164_v13  ;;  %vm472_vm7 = vcmask 23552   ;;  %v4815_v23 = vld [vmem:[%s6016_s9] sm:$0xff]   ;;  %v4816_v24 = vld [vmem:[%s6016_s9 + $0x8] sm:$0xff]   ;;  %v4245_v32 = vld [vmem:[#allocation11] ss:$0 sm:$0xff] }
  0xd3   :  { %4491 = vmatprep.subr.mxu1 %v5162_v0  ;;  %v479_v17 = vsel %vm477_vm5, %v478_v14, 0  ;;  %vm557_vm8 = vcmask 261120   ;;  %v4246_v39 = vld [vmem:[#allocation13] ss:$0 sm:$0xff]  ;;  %s5165_s13 = smov 120   ;;  %s5166_s8 = smov 96  }
  0xd4   :  { %v481_v18 = vand.u32 %v479_v17, %v247_v16  ;;  %s5168_s2 = smov 80   ;;  %s5169_s1 = smov 112   ;;  %vm605_vm9 = vcmask 64512   ;;  %vm1280_vm10 = vcmask 195584   ;;  %vm2185_vm11 = vcmask 523264  }
  0xd5   :  { %v4814_v1 = vld [vmem:[%s6067_s28] sm:$0xff]   ;;  %v190_v3 = vld [vmem:[%s6068_s29 + $0x8] sm:$0x3]  ;;  %s5167_s28 = smov 88   ;;  %s5171_s3 = smov 104   ;;  %vm4036_vm12 = vcmask 48128  }
  0xd6   :  { %v189_v2 = vld [vmem:[%s6068_s29] sm:$0xff]  ;;  %4481 = vmatpush3.bf16.msra.mxu0 %v4814_v1  ;;  %s5170_s29 = smov 72   ;;  %s6048_s5 = smov 64  }
  0xd7   :  { %v193_v4 = vpack.c.bf16 %v190_v3, %v189_v2  ;;  %4502 = vmatprep.subr.bf16.mxu0 %v5162_v0  ;;  %v245_v19 = vld [vmem:[%s6069_s26] sm:$0xff]  ;;  %v246_v20 = vld [vmem:[%s6069_s26 + $0x8] sm:$0xff]  ;;  %s5173_s12 = smov 48   ;;  %s6046_s27 = smov 40  }
  0xd8   :  { %v248_v22 = vpack.c.bf16 %v246_v20, %v245_v19  ;;  %s5175_s26 = smov 56   ;;  %s6045_s30 = smov 8  }
  0xd9   :  { %4483 = vmatmul.mubr.msk.bf16.vlgmr.msra.gmra.mrb[0].mxu0 %vm200_vm1, %v193_v4  ;;  %s6044_s7 = smov 24  }
  0xda   :  { %4506 = vmatprep.mubr.msk.bf16.mxu0 %vm5163_vm0, %v5162_v0  ;;  %4503 = vmatpush3.bf16.msra.mxu0 %v4815_v23 }
  0xdb   :  { %4504 = vmatprep.subr.bf16.mxu0 %v5162_v0 }
  0xde   :  { %4505 = vmatpush3.bf16.msra.mxu0 %v4816_v24 }
  0xdf   :  { %4510 = vmatprep.subr.mxu0 %v5162_v0 }
 0x1ac   :  { %v238_v6 = vpop.f32.mrb[0].mxu0 }
 0x1ad   :  { %250 = vxpose.xlu0.b32.start.end [1/1] (short) (narrow) %v238_v6, 8  ;;  %v4484_v7 = vpop.f32.mrb[1].mxu0  ;;  %v363_v9 = vrot.slane %v238_v6, 5 }
 0x1ae   :  { %v241_v8 = vpop.f32.mrb[2].mxu0 }
 0x1af   :  { %v364_v10 = vrot.slane %v241_v8, 5  ;;  %v4485_v11 = vpop.f32.mrb[3].mxu0 }
 0x1b1   :  { %v365_v12 = vsel %vm362_vm3, %v363_v9, %v364_v10 }
 0x1b2   :  { %367 = vxpose.xlu0.b32.start.end [1/1] (short) (narrow) %v365_v12, 8 }
 0x22d   :  { %v266_v15 = vpop.trf.xlu0 }
 0x22e   :  { %4489 = vmatmul.mubr.msk.f32.vlgmr.msra.gmra.mrb[0].mxu1 %vm282_vm6, %v266_v15 }
 0x22f   :  { %4492 = vmatpush3.msk.msra.mxu1 %vm286_vm2, %v249_v5  ;;  %4493 = vmatprep.mubr.msk.f32.mxu1 %vm5163_vm0, %v5162_v0 }
 0x230   :  { %4496 = vmatprep.subr.bf16.mxu1 %v5162_v0 }
 0x232   :  { %v383_v21 = vpop.trf.xlu0 }
 0x233   :  { %4494 = vmatmul.mubr.msk.f32.vlgmr.msra.gmra.mrb[2].mxu1 %vm282_vm6, %v383_v21 }
 0x234   :  { %4497 = vmatpush3.bf16.msra.mxu1 %v481_v18  ;;  %4498 = vmatprep.mubr.msk.bf16.mxu1 %vm5163_vm0, %v5162_v0 }
 0x235   :  { %4520 = vmatprep.subr.mxu1 %v5162_v0 }
 0x237   :  { %4499 = vmatmul.mubr.msk.bf16.vlgmr.msra.gmra.mrb[4].mxu1 %vm472_vm7, %v248_v22 }
 0x238   :  { %4522 = vmatprep.mubr.msk.f32.mxu1 %vm5163_vm0, %v5162_v0 }
 0x301   :  { %v356_v25 = vpop.f32.mrb[0].mxu1 }
 0x302   :  { %v4490_v26 = vpop.f32.mrb[1].mxu1 }
 0x306   :  { %v468_v27 = vpop.f32.mrb[2].mxu1 }
 0x307   :  { %v4495_v28 = vpop.f32.mrb[3].mxu1 }
 0x30a   :  { %v517_v29 = vpop.f32.mrb[4].mxu1 }
 0x30b   :  { %v518_v30 = vadd.f32 %v517_v29, %v356_v25  ;;  %v4500_v31 = vpop.f32.mrb[5].mxu1 }
 0x30c   :  { %v520_v33 = vpop.f32.mrb[6].mxu1 }
 0x30d   :  { %v521_v34 = vadd.f32 %v520_v33, %v468_v27  ;;  %v4501_v35 = vpop.f32.mrb[7].mxu1  ;;  %v5467_v36 = vadd.f32 %v4245_v32, %v518_v30 }
 0x30f   :  { %v5469_v37 = vadd.f32 %v4245_v32, %v521_v34 }
 0x311   :  { %v537_v38 = vpack.c.bf16 %v5469_v37, %v5467_v36 }
 0x313   :  { %4507 = vmatmul.mubr.msk.bf16.vlgmr.msra.gmra.mrb[4].mxu0 %vm557_vm8, %v537_v38 }
 0x314   :  { %4512 = vmatprep.mubr.msk.f32.mxu0 %vm5163_vm0, %v5162_v0 }
 0x3e6   :  { %v595_v40 = vpop.f32.mrb[4].mxu0 }
 0x3e7   :  { %v5476_v41 = vadd.f32 %v4246_v39, %v595_v40  ;;  %v4508_v42 = vpop.f32.mrb[5].mxu0 }
 0x3e8   :  { %v598_v43 = vpop.f32.mrb[6].mxu0 }
 0x3e9   :  { %768 = vrot.lane.b32.xlu0 %v5476_v41, %s5165_s13  ;;  %603 = vrot.lane.b32.xlu1 %v5476_v41, %s5166_s8  ;;  %v4509_v44 = vpop.f32.mrb[7].mxu0  ;;  %v5492_v45 = vadd.f32 %v4246_v39, %v598_v43 }
 0x3ed   :  { %770 = vrot.lane.b32.xlu1 %v5476_v41, %s5167_s28 }
 0x3f1   :  { %936 = vrot.lane.b32.xlu1 %v5476_v41, %s5168_s2 }
 0x3f5   :  { %934 = vrot.lane.b32.xlu1 %v5476_v41, %s5169_s1 }
 0x3f9   :  { %1102 = vrot.lane.b32.xlu1 %v5476_v41, %s5170_s29 }
 0x3fd   :  { %1100 = vrot.lane.b32.xlu1 %v5476_v41, %s5171_s3 }
 0x401   :  { %1283 = vrot.lane.b32.xlu1 %v5492_v45, %s5166_s8 }
 0x405   :  { %1449 = vrot.lane.b32.xlu1 %v5492_v45, %s5167_s28 }
 0x409   :  { %1447 = vrot.lane.b32.xlu1 %v5492_v45, %s5165_s13 }
 0x40d   :  { %1615 = vrot.lane.b32.xlu1 %v5492_v45, %s5168_s2 }
 0x411   :  { %1613 = vrot.lane.b32.xlu1 %v5492_v45, %s5169_s1 }
 0x415   :  { %1781 = vrot.lane.b32.xlu1 %v5492_v45, %s5170_s29 }
 0x419   :  { %1779 = vrot.lane.b32.xlu1 %v5492_v45, %s5171_s3 }
 0x45b   :  { %v604_v46 = vpop.permute.xlu1 %603  ;;  %v769_v48 = vpop.permute.xlu0 %768 }
 0x45c   :  { %4511 = vmatpush3.xpose.msk.msra.mxu0 %vm605_vm9, %v604_v46 }
 0x45d   :  { %4515 = vmatprep.subr.mxu0 %v5162_v0 }
 0x45f   :  { %4513 = vmatmul.mubr.msk.f32.vlgmr.msra.gmra.mrb[8].mxu0 %vm605_vm9, %v5476_v41  ;;  %v771_v47 = vpop.permute.xlu1 %770 }
 0x460   :  { %4521 = vmatpush3.xpose.msk.msra.mxu1 %vm605_vm9, %v771_v47  ;;  %4517 = vmatprep.mubr.msk.f32.mxu0 %vm5163_vm0, %v5162_v0 }
 0x461   :  { %4530 = vmatprep.subr.mxu1 %v5162_v0 }
 0x463   :  { %4523 = vmatmul.mubr.msk.f32.vlgmr.msra.gmra.mrb[8].mxu1 %vm605_vm9, %v769_v48  ;;  %v937_v49 = vpop.permute.xlu1 %936 }
 0x464   :  { %4531 = vmatpush3.xpose.msk.msra.mxu1 %vm605_vm9, %v937_v49  ;;  %4532 = vmatprep.mubr.msk.f32.mxu1 %vm5163_vm0, %v5162_v0 }
 0x465   :  { %4540 = vmatprep.subr.mxu1 %v5162_v0 }
 0x467   :  { %v935_v50 = vpop.permute.xlu1 %934 }
 0x468   :  { %4533 = vmatmul.mubr.msk.f32.vlgmr.msra.gmra.mrb[10].mxu1 %vm605_vm9, %v935_v50 }
 0x469   :  { %4542 = vmatprep.mubr.msk.f32.mxu1 %vm5163_vm0, %v5162_v0 }
 0x46b   :  { %v1103_v51 = vpop.permute.xlu1 %1102 }
 0x46c   :  { %4541 = vmatpush3.xpose.msk.msra.mxu1 %vm605_vm9, %v1103_v51 }
 0x46d   :  { %4550 = vmatprep.subr.mxu1 %v5162_v0 }
 0x46f   :  { %v1101_v52 = vpop.permute.xlu1 %1100 }
 0x470   :  { %4543 = vmatmul.mubr.msk.f32.vlgmr.msra.gmra.mrb[12].mxu1 %vm605_vm9, %v1101_v52 }
 0x471   :  { %4552 = vmatprep.mubr.msk.f32.mxu1 %vm5163_vm0, %v5162_v0 }
 0x473   :  { %v1284_v53 = vpop.permute.xlu1 %1283 }
 0x474   :  { %4551 = vmatpush3.xpose.msk.msra.mxu1 %vm605_vm9, %v1284_v53 }
 0x475   :  { %4560 = vmatprep.subr.mxu1 %v5162_v0 }
 0x477   :  { %4553 = vmatmul.mubr.msk.f32.vlgmr.msra.gmra.mrb[14].mxu1 %vm605_vm9, %v5492_v45  ;;  %v1450_v54 = vpop.permute.xlu1 %1449 }
 0x478   :  { %4561 = vmatpush3.xpose.msk.msra.mxu1 %vm605_vm9, %v1450_v54  ;;  %4562 = vmatprep.mubr.msk.f32.mxu1 %vm5163_vm0, %v5162_v0 }
 0x479   :  { %4570 = vmatprep.subr.mxu1 %v5162_v0 }
 0x47b   :  { %v1448_v55 = vpop.permute.xlu1 %1447 }
 0x47c   :  { %4563 = vmatmul.mubr.msk.f32.vlgmr.msra.gmra.mrb[16].mxu1 %vm605_vm9, %v1448_v55 }
 0x47d   :  { %4572 = vmatprep.mubr.msk.f32.mxu1 %vm5163_vm0, %v5162_v0 }
 0x47f   :  { %v1616_v56 = vpop.permute.xlu1 %1615 }
 0x480   :  { %4571 = vmatpush3.xpose.msk.msra.mxu1 %vm605_vm9, %v1616_v56 }
 0x481   :  { %4580 = vmatprep.subr.mxu1 %v5162_v0 }
 0x483   :  { %v1614_v57 = vpop.permute.xlu1 %1613 }
 0x484   :  { %4573 = vmatmul.mubr.msk.f32.vlgmr.msra.gmra.mrb[18].mxu1 %vm605_vm9, %v1614_v57 }
 0x485   :  { %4582 = vmatprep.mubr.msk.f32.mxu1 %vm5163_vm0, %v5162_v0 }
 0x487   :  { %v1782_v58 = vpop.permute.xlu1 %1781 }
 0x488   :  { %4581 = vmatpush3.xpose.msk.msra.mxu1 %vm605_vm9, %v1782_v58 }
 0x489   :  { %4590 = vmatprep.subr.bf16.mxu1 %v5162_v0 }
 0x48b   :  { %v1780_v59 = vpop.permute.xlu1 %1779 }
 0x48c   :  { %4583 = vmatmul.mubr.msk.f32.vlgmr.msra.gmra.mrb[20].mxu1 %vm605_vm9, %v1780_v59 }
 0x48d   :  { %4594 = vmatprep.mubr.msk.bf16.mxu1 %vm5163_vm0, %v5162_v0 }
 0x532   :  { %v676_v60 = vpop.f32.mrb[8].mxu0 }
 0x533   :  { %v680_v61 = vmul.f32 0.35355338, %v676_v60  ;;  %v4514_v62 = vpop.f32.mrb[9].mxu0 }
 0x535   :  { %v681_v63 = vsel %vm605_vm9, %v680_v61, -inf }
 0x536   :  { %v842_v1 = vpop.f32.mrb[8].mxu1  ;;  %682 = vmax.xlane.f32.xlu0 %v681_v63 }
 0x537   :  { %v846_v2 = vmul.f32 0.35355338, %v842_v1  ;;  %v4524_v3 = vpop.f32.mrb[9].mxu1 }
 0x539   :  { %v847_v4 = vsel %vm605_vm9, %v846_v2, -inf }
 0x53a   :  { %848 = vmax.xlane.f32.xlu1 %v847_v4 }
 0x53b   :  { %v1008_v5 = vpop.f32.mrb[10].mxu1 }
 0x53c   :  { %v5552_v6 = vmul.f32 0.35355338, %v1008_v5  ;;  %v4534_v7 = vpop.f32.mrb[11].mxu1 }
 0x53e   :  { %v1013_v8 = vsel %vm605_vm9, %v5552_v6, -inf }
 0x53f   :  { %1014 = vmax.xlane.f32.xlu0 %v1013_v8 }
 0x543   :  { %v1174_v9 = vpop.f32.mrb[12].mxu1 }
 0x544   :  { %v1178_v10 = vmul.f32 0.35355338, %v1174_v9  ;;  %v4544_v11 = vpop.f32.mrb[13].mxu1 }
 0x546   :  { %v1179_v12 = vsel %vm605_vm9, %v1178_v10, -inf }
 0x547   :  { %1180 = vmax.xlane.f32.xlu0 %v1179_v12 }
 0x54a   :  { %v1355_v13 = vpop.f32.mrb[14].mxu1 }
 0x54b   :  { %v1359_v14 = vmul.f32 0.35355338, %v1355_v13  ;;  %v4554_v15 = vpop.f32.mrb[15].mxu1 }
 0x54d   :  { %v1360_v16 = vsel %vm605_vm9, %v1359_v14, -inf }
 0x54e   :  { %1361 = vmax.xlane.f32.xlu0 %v1360_v16 }
 0x54f   :  { %v1521_v17 = vpop.f32.mrb[16].mxu1 }
 0x550   :  { %v5558_v18 = vmul.f32 0.35355338, %v1521_v17  ;;  %v4564_v19 = vpop.f32.mrb[17].mxu1 }
 0x552   :  { %v1526_v20 = vsel %vm605_vm9, %v5558_v18, -inf }
 0x553   :  { %1527 = vmax.xlane.f32.xlu1 %v1526_v20 }
 0x557   :  { %v1687_v21 = vpop.f32.mrb[18].mxu1 }
 0x558   :  { %v1691_v22 = vmul.f32 0.35355338, %v1687_v21  ;;  %v4574_v23 = vpop.f32.mrb[19].mxu1 }
 0x55a   :  { %v1692_v24 = vsel %vm605_vm9, %v1691_v22, -inf }
 0x55b   :  { %1693 = vmax.xlane.f32.xlu0 %v1692_v24 }
 0x55f   :  { %v1853_v25 = vpop.f32.mrb[20].mxu1 }
 0x560   :  { %v4584_v26 = vpop.f32.mrb[21].mxu1  ;;  %v5565_v27 = vmul.f32 0.35355338, %v1853_v25 }
 0x562   :  { %v1858_v28 = vsel %vm605_vm9, %v5565_v27, -inf }
 0x564   :  { %692 = vrot.lane.b32.xlu1 %v5476_v41, %s6048_s5 }
 0x588   :  { %1859 = vmax.xlane.f32.xlu1 %v1858_v28 }
 0x599   :  { %1024 = vrot.lane.b32.xlu1 %v5476_v41, %s5173_s12 }
 0x59d   :  { %1190 = vrot.lane.b32.xlu1 %v5476_v41, %s6046_s27 }
 0x5a1   :  { %1371 = vrot.lane.b32.xlu1 %v5492_v45, %s6048_s5 }
 0x5c3   :  { %v683_v29 = vpop.xlane.xlu0 %682 }
 0x5c4   :  { %v684_v30 = vsub.f32 %v680_v61, %v683_v29 }
 0x5c6   :  { %v685_v31 = vmul.f32 1.442695, %v684_v30 }
 0x5c7   :  { %v849_v32 = vpop.xlane.xlu1 %848 }
 0x5c8   :  { %4839 = vpow2.f32 %v685_v31  ;;  %v850_v33 = vsub.f32 %v846_v2, %v849_v32 }
 0x5ca   :  { %v851_v34 = vmul.f32 1.442695, %v850_v33 }
 0x5cc   :  { %4841 = vpow2.f32 %v851_v34  ;;  %v1015_v35 = vpop.xlane.xlu0 %1014 }
 0x5cd   :  { %v1016_v51 = vsub.f32 %v5552_v6, %v1015_v35 }
 0x5cf   :  { %v1017_v53 = vmul.f32 1.442695, %v1016_v51 }
 0x5d2   :  { %v5575_v38 = vpop.eup %4839 }
 0x5d3   :  { %v687_v39 = vsel %vm605_vm9, %v5575_v38, 0.0 }
 0x5d4   :  { %688 = vadd.xlane.f32.xlu0 %v687_v39  ;;  %v1181_v40 = vpop.xlane.xlu0 %1180 }
 0x5d5   :  { %v1182_v42 = vsub.f32 %v1178_v10, %v1181_v40 }
 0x5d6   :  { %v5579_v43 = vpop.eup %4841 }
 0x5d7   :  { %v1183_v44 = vmul.f32 1.442695, %v1182_v42  ;;  %v853_v46 = vsel %vm605_vm9, %v5579_v43, 0.0 }
 0x5d8   :  { %854 = vadd.xlane.f32.xlu1 %v853_v46 }
 0x5d9   :  { %4843 = vpow2.f32 %v1183_v44 }
 0x5da   :  { %4845 = vpow2.f32 %v1017_v53 }
 0x5db   :  { %v1362_v52 = vpop.xlane.xlu0 %1361 }
 0x5dc   :  { %v1363_v54 = vsub.f32 %v1359_v14, %v1362_v52 }
 0x5de   :  { %v1364_v56 = vmul.f32 1.442695, %v1363_v54  ;;  %v4817_v54 = vld [vmem:[%s6018_s11] sm:$0xff]  }
 0x5df   :  { %4591 = vmatpush3.bf16.msra.mxu1 %v4817_v54 }
 0x5e0   :  { %v1528_v47 = vpop.xlane.xlu1 %1527  ;;  %4847 = vpow2.f32 %v1364_v56  ;;  %4592 = vmatprep.subr.bf16.mxu1 %v5162_v0 }
 0x5e1   :  { %v1529_v59 = vsub.f32 %v5558_v18, %v1528_v47 }
 0x5e3   :  { %v5583_v48 = vpop.eup %4843  ;;  %v1530_v61 = vmul.f32 1.442695, %v1529_v59 }
 0x5e4   :  { %v693_v49 = vpop.permute.xlu1 %692  ;;  %v1185_v50 = vsel %vm605_vm9, %v5583_v48, 0.0  ;;  %v4846_v60 = vpop.eup %4845 }
 0x5e5   :  { %4516 = vmatpush3.msra.mxu0 %v693_v49  ;;  %1186 = vadd.xlane.f32.xlu1 %v1185_v50 }
 0x5e6   :  { %4525 = vmatprep.subr.mxu0 %v5162_v0 }
 0x5e8   :  { %v1694_v55 = vpop.xlane.xlu0 %1693 }
 0x5e9   :  { %v1695_v57 = vsub.f32 %v1691_v22, %v1694_v55 }
 0x5ea   :  { %858 = vrot.lane.b32.xlu0 %v5476_v41, %s5175_s26  ;;  %v1019_v41 = vsel %vm605_vm9, %v4846_v60, 0.0  ;;  %v4848_v62 = vpop.eup %4847 }
 0x5eb   :  { %v1696_v58 = vmul.f32 1.442695, %v1695_v57  ;;  %v1366_v63 = vsel %vm605_vm9, %v4848_v62, 0.0 }
 0x5ed   :  { %4849 = vpow2.f32 %v1696_v58  ;;  %v4818_v58 = vld [vmem:[%s6018_s11 + $0x8] sm:$0xff]  }
 0x5ee   :  { %4851 = vpow2.f32 %v1530_v61  ;;  %4593 = vmatpush3.bf16.msra.mxu1 %v4818_v58 }
 0x5ef   :  { %4606 = vmatprep.subr.bf16.mxu1 %v5162_v0 }
 0x5f6   :  { %1537 = vrot.lane.b32.xlu1 %v5492_v45, %s5175_s26 }
 0x5f7   :  { %v5596_v1 = vpop.eup %4849 }
 0x5f8   :  { %v1698_v2 = vsel %vm605_vm9, %v5596_v1, 0.0  ;;  %v4852_v4 = vpop.eup %4851 }
 0x5f9   :  { %v1532_v7 = vsel %vm605_vm9, %v4852_v4, 0.0 }
 0x609   :  { %1020 = vadd.xlane.f32.xlu0 %v1019_v41 }
 0x60d   :  { %1367 = vadd.xlane.f32.xlu0 %v1366_v63 }
 0x611   :  { %1699 = vadd.xlane.f32.xlu0 %v1698_v2 }
 0x615   :  { %v1860_v3 = vpop.xlane.xlu1 %1859 }
 0x616   :  { %v1861_v5 = vsub.f32 %v5565_v27, %v1860_v3 }
 0x618   :  { %v1862_v6 = vmul.f32 1.442695, %v1861_v5 }
 0x619   :  { %v1025_v10 = vpop.permute.xlu1 %1024 }
 0x61a   :  { %4853 = vpow2.f32 %v1862_v6  ;;  %1533 = vadd.xlane.f32.xlu1 %v1532_v7 }
 0x61d   :  { %v1191_v11 = vpop.permute.xlu1 %1190 }
 0x621   :  { %v1372_v12 = vpop.permute.xlu1 %1371 }
 0x624   :  { %v5602_v8 = vpop.eup %4853 }
 0x625   :  { %v1864_v9 = vsel %vm605_vm9, %v5602_v8, 0.0 }
 0x626   :  { %1865 = vadd.xlane.f32.xlu0 %v1864_v9 }
 0x62b   :  { %1869 = vrot.lane.b32.xlu1 %v5492_v45, %s6046_s27 }
 0x63c   :  { %1703 = vrot.lane.b32.xlu0 %v5492_v45, %s5173_s12 }
 0x661   :  { %v689_v13 = vpop.xlane.xlu0 %688 }
 0x662   :  { %4855 = vrcp.f32 %v689_v13 }
 0x665   :  { %v855_v14 = vpop.xlane.xlu1 %854  ;;  %v859_v17 = vpop.permute.xlu0 %858 }
 0x666   :  { %4857 = vrcp.f32 %v855_v14 }
 0x66c   :  { %v4856_v15 = vpop.eup %4855 }
 0x66d   :  { %v691_v16 = vmul.f32 %v4856_v15, %v5575_v38 }
 0x66f   :  { %4518 = vmatmul.mubr.msk.f32.vlgmr.msra.gmra.mrb[10].mxu0 %vm605_vm9, %v691_v16 }
 0x670   :  { %v4858_v18 = vpop.eup %4857  ;;  %4526 = vmatpush3.msra.mxu0 %v859_v17  ;;  %4527 = vmatprep.mubr.msk.f32.mxu0 %vm5163_vm0, %v5162_v0  ;;  %v4274_v17 = vld [vmem:[#allocation14] ss:$0 sm:$0xff] }
 0x671   :  { %v857_v45 = vmul.f32 %v4858_v18, %v5579_v43  ;;  %4535 = vmatprep.subr.mxu0 %v5162_v0 }
 0x672   :  { %v1187_v19 = vpop.xlane.xlu1 %1186 }
 0x673   :  { %4528 = vmatmul.mubr.msk.f32.vlgmr.msra.gmra.mrb[12].mxu0 %vm605_vm9, %v857_v45 }
 0x674   :  { %4536 = vmatpush3.msra.mxu0 %v1025_v10  ;;  %4537 = vmatprep.mubr.msk.f32.mxu0 %vm5163_vm0, %v5162_v0 }
 0x675   :  { %4545 = vmatprep.subr.mxu0 %v5162_v0 }
 0x676   :  { %v1538_v25 = vpop.permute.xlu1 %1537 }
 0x696   :  { %v1021_v20 = vpop.xlane.xlu0 %1020 }
 0x697   :  { %4859 = vrcp.f32 %v1021_v20 }
 0x698   :  { %4861 = vrcp.f32 %v1187_v19 }
 0x69a   :  { %v1368_v21 = vpop.xlane.xlu0 %1367 }
 0x69b   :  { %4863 = vrcp.f32 %v1368_v21 }
 0x69e   :  { %v1700_v28 = vpop.xlane.xlu0 %1699 }
 0x6a1   :  { %v4860_v22 = vpop.eup %4859 }
 0x6a2   :  { %v1023_v23 = vmul.f32 %v4860_v22, %v4846_v60  ;;  %v4862_v24 = vpop.eup %4861 }
 0x6a3   :  { %v1189_v26 = vmul.f32 %v4862_v24, %v5583_v48 }
 0x6a4   :  { %4538 = vmatmul.mubr.msk.f32.vlgmr.msra.gmra.mrb[14].mxu0 %vm605_vm9, %v1023_v23 }
 0x6a5   :  { %4546 = vmatpush3.msra.mxu0 %v1191_v11  ;;  %4547 = vmatprep.mubr.msk.f32.mxu0 %vm5163_vm0, %v5162_v0  ;;  %v4864_v27 = vpop.eup %4863 }
 0x6a6   :  { %4555 = vmatprep.subr.mxu0 %v5162_v0  ;;  %v1370_v30 = vmul.f32 %v4864_v27, %v4848_v62 }
 0x6a7   :  { %v1534_v29 = vpop.xlane.xlu1 %1533 }
 0x6a8   :  { %4865 = vrcp.f32 %v1534_v29  ;;  %4548 = vmatmul.mubr.msk.f32.vlgmr.msra.gmra.mrb[16].mxu0 %vm605_vm9, %v1189_v26 }
 0x6a9   :  { %4556 = vmatpush3.msra.mxu0 %v1372_v12  ;;  %4557 = vmatprep.mubr.msk.f32.mxu0 %vm5163_vm0, %v5162_v0  ;;  %4867 = vrcp.f32 %v1700_v28 }
 0x6aa   :  { %4565 = vmatprep.subr.mxu0 %v5162_v0 }
 0x6ab   :  { %v1870_v39 = vpop.permute.xlu1 %1869 }
 0x6ac   :  { %4558 = vmatmul.mubr.msk.f32.vlgmr.msra.gmra.mrb[18].mxu0 %vm605_vm9, %v1370_v30 }
 0x6ad   :  { %4566 = vmatpush3.msra.mxu0 %v1538_v25  ;;  %4567 = vmatprep.mubr.msk.f32.mxu0 %vm5163_vm0, %v5162_v0 }
 0x6ae   :  { %4575 = vmatprep.subr.mxu0 %v5162_v0 }
 0x6b2   :  { %v4866_v31 = vpop.eup %4865 }
 0x6b3   :  { %v1536_v32 = vmul.f32 %v4866_v31, %v4852_v4  ;;  %v1866_v33 = vpop.xlane.xlu0 %1865  ;;  %v4868_v34 = vpop.eup %4867 }
 0x6b4   :  { %4869 = vrcp.f32 %v1866_v33  ;;  %v1702_v35 = vmul.f32 %v4868_v34, %v5596_v1 }
 0x6b5   :  { %4568 = vmatmul.mubr.msk.f32.vlgmr.msra.gmra.mrb[20].mxu0 %vm605_vm9, %v1536_v32 }
 0x6b6   :  { %4577 = vmatprep.mubr.msk.f32.mxu0 %vm5163_vm0, %v5162_v0 }
 0x6b7   :  { %v1704_v38 = vpop.permute.xlu0 %1703 }
 0x6b8   :  { %4576 = vmatpush3.msra.mxu0 %v1704_v38  ;;  %v4820_v38 = vld [vmem:[%s6022_s15 + $0x8] sm:$0xff]  }
 0x6b9   :  { %4578 = vmatmul.mubr.msk.f32.vlgmr.msra.gmra.mrb[22].mxu0 %vm605_vm9, %v1702_v35  ;;  %4585 = vmatprep.subr.mxu0 %v5162_v0 }
 0x6ba   :  { %4586 = vmatpush3.msra.mxu0 %v1870_v39  ;;  %4587 = vmatprep.mubr.msk.f32.mxu0 %vm5163_vm0, %v5162_v0  ;;  %v4821_v39 = vld [vmem:[%s6024_s17] sm:$0xff]  }
 0x6bb   :  { %4598 = vmatprep.subr.bf16.mxu0 %v5162_v0 }
 0x6be   :  { %v4870_v40 = vpop.eup %4869 }
 0x6bf   :  { %v1868_v42 = vmul.f32 %v4870_v40, %v5602_v8  ;;  %v4822_v40 = vld [vmem:[%s6024_s17 + $0x8] sm:$0xff]  }
 0x6c1   :  { %4588 = vmatmul.mubr.msk.f32.vlgmr.msra.gmra.mrb[24].mxu0 %vm605_vm9, %v1868_v42 }
 0x6c2   :  { %4602 = vmatprep.mubr.msk.bf16.mxu0 %vm5163_vm0, %v5162_v0 }
 0x742   :  { %v764_v43 = vpop.f32.mrb[10].mxu0 }
 0x743   :  { %v4519_v44 = vpop.f32.mrb[11].mxu0 }
 0x746   :  { %v930_v46 = vpop.f32.mrb[12].mxu0 }
 0x747   :  { %v4529_v47 = vpop.f32.mrb[13].mxu0 }
 0x777   :  { %v1096_v48 = vpop.f32.mrb[14].mxu0 }
 0x778   :  { %v4539_v49 = vpop.f32.mrb[15].mxu0 }
 0x77b   :  { %v1262_v50 = vpop.f32.mrb[16].mxu0 }
 0x77c   :  { %v4549_v51 = vpop.f32.mrb[17].mxu0 }
 0x77d   :  { %v4278_v51 = vld [vmem:[#allocation16] ss:$0 sm:$0xff] }
 0x77f   :  { %v1443_v52 = vpop.f32.mrb[18].mxu0 }
 0x780   :  { %v4559_v53 = vpop.f32.mrb[19].mxu0 }
 0x788   :  { %v1609_v55 = vpop.f32.mrb[20].mxu0 }
 0x789   :  { %v4784_v56 = vpack.i.bf16 %v1609_v55, %v930_v46  ;;  %v4569_v57 = vpop.f32.mrb[21].mxu0  ;;  %v4279_v55 = vld [vmem:[%s6021_s14] ss:$0 sm:$0xff] }
 0x78b   :  { %4785 = vrot.lane.b32.xlu0 %v4784_v56, %s6045_s30 }
 0x78c   :  { %v1775_v59 = vpop.f32.mrb[22].mxu0 }
 0x78d   :  { %v4789_v60 = vpack.i.bf16 %v1775_v59, %v1096_v48  ;;  %v4579_v61 = vpop.f32.mrb[23].mxu0 }
 0x78e   :  { %v4824_v61 = vld [vmem:[%s6024_s17 + $0x18] sm:$0xff]  }
 0x78f   :  { %4790 = vrot.lane.b32.xlu1 %v4789_v60, %s6066_s4  ;;  %v4823_v60 = vld [vmem:[%s6024_s17 + $0x10] sm:$0xff]  }
 0x794   :  { %v1941_v41 = vpop.f32.mrb[24].mxu0 }
 0x795   :  { %v4794_v62 = vpack.i.bf16 %v1941_v41, %v1262_v50  ;;  %v4589_v63 = vpop.f32.mrb[25].mxu0  ;;  %v4280_v41 = vld [vmem:[%s6023_s16] ss:$0 sm:$0xff] }
 0x797   :  { %4795 = vrot.lane.b32.xlu0 %v4794_v62, %s6044_s7 }
 0x7fd   :  { %v4786_v1 = vpop.permute.xlu0 %4785 }
 0x7fe   :  { %v4788_v3 = vunpack.i.h.bf16 %v4786_v1  ;;  %v4787_v4 = vunpack.i.l.bf16 %v4786_v1 }
 0x800   :  { %v1957_v8 = vsel %vm605_vm9, %v1443_v52, %v4788_v3  ;;  %v1278_v9 = vsel %vm605_vm9, %v764_v43, %v4787_v4 }
 0x801   :  { %v4791_v2 = vpop.permute.xlu1 %4790 }
 0x802   :  { %v4793_v5 = vunpack.i.h.bf16 %v4791_v2  ;;  %v4792_v6 = vunpack.i.l.bf16 %v4791_v2 }
 0x804   :  { %v1958_v12 = vsel %vm200_vm1, %v1957_v8, %v4793_v5  ;;  %v1279_v13 = vsel %vm200_vm1, %v1278_v9, %v4792_v6  ;;  %v4284_v8 = vld [vmem:[%s6025_s18] ss:$0 sm:$0xff] }
 0x809   :  { %v4796_v7 = vpop.permute.xlu0 %4795 }
 0x80a   :  { %v4798_v10 = vunpack.i.h.bf16 %v4796_v7  ;;  %v4797_v11 = vunpack.i.l.bf16 %v4796_v7 }
 0x80c   :  { %v1959_v14 = vsel %vm1280_vm10, %v1958_v12, %v4798_v10  ;;  %v1281_v15 = vsel %vm1280_vm10, %v1279_v13, %v4797_v11 }
 0x80d   :  { %v1964_v16 = vpack.c.bf16 %v1959_v14, %v1281_v15 }
 0x80f   :  { %4595 = vmatmul.mubr.msk.bf16.vlgmr.msra.gmra.mrb[24].mxu1 %vm557_vm8, %v1964_v16 }
 0x810   :  { %4614 = vmatprep.mubr.msk.bf16.mxu1 %vm5163_vm0, %v5162_v0  ;;  %4607 = vmatpush3.bf16.msra.mxu1 %v4821_v39 }
 0x811   :  { %4608 = vmatprep.subr.bf16.mxu1 %v5162_v0 }
 0x814   :  { %4609 = vmatpush3.bf16.msra.mxu1 %v4822_v40 }
 0x815   :  { %4610 = vmatprep.subr.bf16.mxu1 %v5162_v0 }
 0x818   :  { %4611 = vmatpush3.bf16.msra.mxu1 %v4823_v60 }
 0x819   :  { %4612 = vmatprep.subr.bf16.mxu1 %v5162_v0 }
 0x81c   :  { %4613 = vmatpush3.bf16.msra.mxu1 %v4824_v61 }
 0x81d   :  { %4636 = vmatprep.subr.mxu1 %v5162_v0 }
 0x8e2   :  { %v2021_v18 = vpop.f32.mrb[24].mxu1 }
 0x8e3   :  { %v2022_v45 = vadd.f32 %v4274_v17, %v2021_v18  ;;  %v4596_v19 = vpop.f32.mrb[25].mxu1 }
 0x8e4   :  { %v2024_v20 = vpop.f32.mrb[26].mxu1 }
 0x8e5   :  { %v2025_v21 = vadd.f32 %v4274_v17, %v2024_v20  ;;  %v4597_v22 = vpop.f32.mrb[27].mxu1  ;;  %v2028_v23 = vadd.f32 %v2022_v45, %v5467_v36 }
 0x8e7   :  { %v2032_v24 = vsel %vm557_vm8, %v2028_v23, 0.0  ;;  %v2029_v25 = vadd.f32 %v2025_v21, %v5469_v37  ;;  %v4819_v37 = vld [vmem:[%s6022_s15] sm:$0xff]  }
 0x8e8   :  { %2033 = vadd.xlane.f32.xlu1 %v2032_v24  ;;  %4599 = vmatpush3.bf16.msra.mxu0 %v4819_v37  ;;  %v4290_v37 = vld [vmem:[%s6026_s19] ss:$0 sm:$0xff] }
 0x8e9   :  { %v2035_v26 = vsel %vm557_vm8, %v2029_v25, 0.0  ;;  %4600 = vmatprep.subr.bf16.mxu0 %v5162_v0 }
 0x8ea   :  { %2036 = vadd.xlane.f32.xlu0 %v2035_v26 }
 0x8ec   :  { %4601 = vmatpush3.bf16.msra.mxu0 %v4820_v38 }
 0x8ed   :  { %4618 = vmatprep.subr.bf16.mxu0 %v5162_v0 }
 0x975   :  { %v2034_v27 = vpop.xlane.xlu1 %2033 }
 0x976   :  { %v2039_v28 = vmul.f32 0.03125, %v2034_v27 }
 0x977   :  { %v2037_v29 = vpop.xlane.xlu0 %2036 }
 0x978   :  { %v2041_v30 = vsub.f32 %v2028_v23, %v2039_v28  ;;  %v2040_v31 = vmul.f32 0.03125, %v2037_v29  ;;  %v4825_v28 = vld [vmem:[%s6016_s9 + $0x10] sm:$0xff]   ;;  %v4826_v29 = vld [vmem:[%s6016_s9 + $0x18] sm:$0xff]  }
 0x97a   :  { %v2042_v32 = vsub.f32 %v2029_v25, %v2040_v31  ;;  %v2043_v33 = vmul.f32 %v2041_v30, %v2041_v30 }
 0x97c   :  { %v2045_v34 = vsel %vm557_vm8, %v2043_v33, 0.0  ;;  %v2044_v35 = vmul.f32 %v2042_v32, %v2042_v32 }
 0x97d   :  { %2046 = vadd.xlane.f32.xlu0 %v2045_v34 }
 0x97e   :  { %v2048_v36 = vsel %vm557_vm8, %v2044_v35, 0.0 }
 0x981   :  { %2049 = vadd.xlane.f32.xlu0 %v2048_v36 }
 0xa0a   :  { %v2047_v42 = vpop.xlane.xlu0 %2046 }
 0xa0b   :  { %v2051_v43 = vmul.f32 0.03125, %v2047_v42 }
 0xa0d   :  { %v2053_v44 = vadd.f32 1e-05, %v2051_v43  ;;  %v4291_v43 = vld [vmem:[%s6027_s20] ss:$0 sm:$0xff] }
 0xa0e   :  { %v2050_v46 = vpop.xlane.xlu0 %2049 }
 0xa0f   :  { %4871 = vrsqrt.f32 %v2053_v44  ;;  %v2052_v47 = vmul.f32 0.03125, %v2050_v46 }
 0xa11   :  { %v2054_v48 = vadd.f32 1e-05, %v2052_v47 }
 0xa13   :  { %4873 = vrsqrt.f32 %v2054_v48 }
 0xa19   :  { %v4872_v49 = vpop.eup %4871 }
 0xa1a   :  { %v2057_v50 = vmul.f32 %v4872_v49, %v2041_v30  ;;  %v4296_v49 = vld [vmem:[#allocation13 + $0x1] ss:$0 sm:$0xff] }
 0xa1c   :  { %v2065_v53 = vmul.f32 %v4278_v51, %v2057_v50 }
 0xa1d   :  { %v4874_v52 = vpop.eup %4873 }
 0xa1e   :  { %v2058_v54 = vmul.f32 %v4874_v52, %v2042_v32  ;;  %v2073_v57 = vadd.f32 %v4279_v55, %v2065_v53 }
 0xa20   :  { %v2066_v56 = vmul.f32 %v4278_v51, %v2058_v54 }
 0xa22   :  { %v2074_v58 = vadd.f32 %v4279_v55, %v2066_v56 }
 0xa24   :  { %v2079_v59 = vpack.c.bf16 %v2074_v58, %v2073_v57 }
 0xa26   :  { %4603 = vmatmul.mubr.msk.bf16.vlgmr.msra.gmra.mrb[28].mxu0 %vm557_vm8, %v2079_v59 }
 0xa27   :  { %4622 = vmatprep.mubr.msk.bf16.mxu0 %vm5163_vm0, %v5162_v0  ;;  %4619 = vmatpush3.bf16.msra.mxu0 %v4825_v28 }
 0xa28   :  { %4620 = vmatprep.subr.bf16.mxu0 %v5162_v0 }
 0xa2b   :  { %4621 = vmatpush3.bf16.msra.mxu0 %v4826_v29 }
 0xa2c   :  { %4626 = vmatprep.subr.mxu0 %v5162_v0 }
 0xaf9   :  { %v2136_v62 = vpop.f32.mrb[28].mxu0 }
 0xafa   :  { %v2137_v63 = vadd.f32 %v4280_v41, %v2136_v62  ;;  %v4604_v1 = vpop.f32.mrb[29].mxu0 }
 0xafb   :  { %v2139_v2 = vpop.f32.mrb[30].mxu0 }
 0xafc   :  { %v2140_v3 = vadd.f32 %v4280_v41, %v2139_v2  ;;  %v4605_v4 = vpop.f32.mrb[31].mxu0  ;;  %v2143_v5 = vmax.f32 %v2137_v63, 0.0 }
 0xafe   :  { %v2144_v6 = vmax.f32 %v2140_v3, 0.0 }
 0xb00   :  { %v2153_v7 = vpack.c.bf16 %v2144_v6, %v2143_v5 }
 0xb02   :  { %4615 = vmatmul.mubr.msk.bf16.vlgmr.msra.gmra.mrb[28].mxu1 %vm2185_vm11, %v2153_v7 }
 0xb03   :  { %4638 = vmatprep.mubr.msk.f32.mxu1 %vm5163_vm0, %v5162_v0 }
 0xbd5   :  { %v2223_v9 = vpop.f32.mrb[28].mxu1 }
 0xbd6   :  { %v2224_v10 = vadd.f32 %v4284_v8, %v2223_v9  ;;  %v4616_v11 = vpop.f32.mrb[29].mxu1 }
 0xbd7   :  { %v2226_v12 = vpop.f32.mrb[30].mxu1 }
 0xbd8   :  { %v2227_v13 = vadd.f32 %v4284_v8, %v2226_v12  ;;  %v4617_v14 = vpop.f32.mrb[31].mxu1  ;;  %v2230_v15 = vadd.f32 %v2224_v10, %v2073_v57 }
 0xbda   :  { %v2234_v16 = vsel %vm557_vm8, %v2230_v15, 0.0  ;;  %v2231_v17 = vadd.f32 %v2227_v13, %v2074_v58 }
 0xbdb   :  { %2235 = vadd.xlane.f32.xlu1 %v2234_v16 }
 0xbdc   :  { %v2237_v18 = vsel %vm557_vm8, %v2231_v17, 0.0 }
 0xbdd   :  { %2238 = vadd.xlane.f32.xlu0 %v2237_v18 }
 0xc68   :  { %v2236_v45 = vpop.xlane.xlu1 %2235 }
 0xc69   :  { %v2240_v19 = vmul.f32 0.03125, %v2236_v45 }
 0xc6a   :  { %v2239_v20 = vpop.xlane.xlu0 %2238 }
 0xc6b   :  { %v2242_v21 = vsub.f32 %v2230_v15, %v2240_v19  ;;  %v2241_v22 = vmul.f32 0.03125, %v2239_v20 }
 0xc6d   :  { %v2243_v23 = vsub.f32 %v2231_v17, %v2241_v22  ;;  %v2244_v24 = vmul.f32 %v2242_v21, %v2242_v21 }
 0xc6f   :  { %v2246_v25 = vsel %vm557_vm8, %v2244_v24, 0.0  ;;  %v2245_v26 = vmul.f32 %v2243_v23, %v2243_v23 }
 0xc70   :  { %2247 = vadd.xlane.f32.xlu1 %v2246_v25 }
 0xc71   :  { %v2249_v27 = vsel %vm557_vm8, %v2245_v26, 0.0 }
 0xc72   :  { %2250 = vadd.xlane.f32.xlu0 %v2249_v27 }
 0xcfd   :  { %v2248_v30 = vpop.xlane.xlu1 %2247 }
 0xcfe   :  { %v2252_v31 = vmul.f32 0.03125, %v2248_v30 }
 0xcff   :  { %v2251_v32 = vpop.xlane.xlu0 %2250 }
 0xd00   :  { %v2254_v33 = vadd.f32 1e-05, %v2252_v31  ;;  %v2253_v34 = vmul.f32 0.03125, %v2251_v32 }
 0xd02   :  { %4875 = vrsqrt.f32 %v2254_v33  ;;  %v2255_v35 = vadd.f32 1e-05, %v2253_v34 }
 0xd04   :  { %4877 = vrsqrt.f32 %v2255_v35 }
 0xd0c   :  { %v4876_v36 = vpop.eup %4875 }
 0xd0d   :  { %v2258_v38 = vmul.f32 %v4876_v36, %v2242_v21 }
 0xd0e   :  { %v4878_v39 = vpop.eup %4877 }
 0xd0f   :  { %v2266_v40 = vmul.f32 %v4290_v37, %v2258_v38  ;;  %v2259_v42 = vmul.f32 %v4878_v39, %v2243_v23 }
 0xd11   :  { %v2267_v44 = vmul.f32 %v4290_v37, %v2259_v42  ;;  %v5729_v46 = vadd.f32 %v4291_v43, %v2266_v40 }
 0xd13   :  { %v5731_v47 = vadd.f32 %v4291_v43, %v2267_v44 }
 0xd15   :  { %v2281_v48 = vpack.c.bf16 %v5731_v47, %v5729_v46 }
 0xd17   :  { %4623 = vmatmul.mubr.msk.bf16.vlgmr.msra.gmra.mrb[32].mxu0 %vm557_vm8, %v2281_v48 }
 0xd18   :  { %4628 = vmatprep.mubr.msk.f32.mxu0 %vm5163_vm0, %v5162_v0 }
 0xdea   :  { %v2339_v50 = vpop.f32.mrb[32].mxu0 }
 0xdeb   :  { %v5738_v51 = vadd.f32 %v4296_v49, %v2339_v50  ;;  %v4624_v52 = vpop.f32.mrb[33].mxu0 }
 0xdec   :  { %v2342_v53 = vpop.f32.mrb[34].mxu0 }
 0xded   :  { %2513 = vrot.lane.b32.xlu0 %v5738_v51, %s5167_s28  ;;  %2347 = vrot.lane.b32.xlu1 %v5738_v51, %s5166_s8  ;;  %v4625_v54 = vpop.f32.mrb[35].mxu0  ;;  %v5748_v55 = vadd.f32 %v4296_v49, %v2342_v53 }
 0xdf1   :  { %2845 = vrot.lane.b32.xlu0 %v5738_v51, %s5170_s29  ;;  %2511 = vrot.lane.b32.xlu1 %v5738_v51, %s5165_s13 }
 0xdf5   :  { %2679 = vrot.lane.b32.xlu1 %v5738_v51, %s5168_s2  ;;  %3025 = vrot.lane.b32.xlu0 %v5748_v55, %s5166_s8  ;;  %s6071_s8 = smov 40  }
 0xdf9   :  { %2677 = vrot.lane.b32.xlu1 %v5738_v51, %s5169_s1  ;;  %3189 = vrot.lane.b32.xlu0 %v5748_v55, %s5165_s13  ;;  %s6070_s13 = smov 64  }
 0xdfd   :  { %2843 = vrot.lane.b32.xlu1 %v5738_v51, %s5171_s3  ;;  %3355 = vrot.lane.b32.xlu0 %v5748_v55, %s5169_s1 }
 0xe01   :  { %3191 = vrot.lane.b32.xlu1 %v5748_v55, %s5167_s28  ;;  %3521 = vrot.lane.b32.xlu0 %v5748_v55, %s5171_s3  ;;  %s6072_s3 = smov 8  }
 0xe05   :  { %3357 = vrot.lane.b32.xlu1 %v5748_v55, %s5168_s2 }
 0xe09   :  { %3523 = vrot.lane.b32.xlu1 %v5748_v55, %s5170_s29 }
 0xe5f   :  { %v2514_v56 = vpop.permute.xlu0 %2513  ;;  %v2348_v57 = vpop.permute.xlu1 %2347 }
 0xe60   :  { %4627 = vmatpush3.xpose.msk.msra.mxu0 %vm605_vm9, %v2348_v57  ;;  %4637 = vmatpush3.xpose.msk.msra.mxu1 %vm605_vm9, %v2514_v56 }
 0xe61   :  { %4646 = vmatprep.subr.mxu1 %v5162_v0  ;;  %4631 = vmatprep.subr.mxu0 %v5162_v0 }
 0xe63   :  { %4629 = vmatmul.mubr.msk.f32.vlgmr.msra.gmra.mrb[26].mxu0 %vm605_vm9, %v5738_v51  ;;  %v2512_v58 = vpop.permute.xlu1 %2511  ;;  %v2846_v59 = vpop.permute.xlu0 %2845 }
 0xe64   :  { %4639 = vmatmul.mubr.msk.f32.vlgmr.msra.gmra.mrb[22].mxu1 %vm605_vm9, %v2512_v58  ;;  %4633 = vmatprep.mubr.msk.f32.mxu0 %vm5163_vm0, %v5162_v0 }
 0xe65   :  { %4648 = vmatprep.mubr.msk.f32.mxu1 %vm5163_vm0, %v5162_v0 }
 0xe67   :  { %v2680_v60 = vpop.permute.xlu1 %2679  ;;  %v3026_v41 = vpop.permute.xlu0 %3025 }
 0xe68   :  { %4647 = vmatpush3.xpose.msk.msra.mxu1 %vm605_vm9, %v2680_v60 }
 0xe69   :  { %4656 = vmatprep.subr.mxu1 %v5162_v0 }
 0xe6b   :  { %v2678_v61 = vpop.permute.xlu1 %2677  ;;  %v3190_v63 = vpop.permute.xlu0 %3189 }
 0xe6c   :  { %4649 = vmatmul.mubr.msk.f32.vlgmr.msra.gmra.mrb[32].mxu1 %vm605_vm9, %v2678_v61 }
 0xe6d   :  { %4657 = vmatpush3.xpose.msk.msra.mxu1 %vm605_vm9, %v2846_v59  ;;  %4658 = vmatprep.mubr.msk.f32.mxu1 %vm5163_vm0, %v5162_v0 }
 0xe6e   :  { %4666 = vmatprep.subr.mxu1 %v5162_v0 }
 0xe6f   :  { %v2844_v62 = vpop.permute.xlu1 %2843  ;;  %v3356_v3 = vpop.permute.xlu0 %3355 }
 0xe70   :  { %4659 = vmatmul.mubr.msk.f32.vlgmr.msra.gmra.mrb[34].mxu1 %vm605_vm9, %v2844_v62 }
 0xe71   :  { %4667 = vmatpush3.xpose.msk.msra.mxu1 %vm605_vm9, %v3026_v41  ;;  %4668 = vmatprep.mubr.msk.f32.mxu1 %vm5163_vm0, %v5162_v0 }
 0xe72   :  { %4676 = vmatprep.subr.mxu1 %v5162_v0 }
 0xe73   :  { %v3192_v1 = vpop.permute.xlu1 %3191  ;;  %v3522_v5 = vpop.permute.xlu0 %3521 }
 0xe74   :  { %4669 = vmatmul.mubr.msk.f32.vlgmr.msra.gmra.mrb[36].mxu1 %vm605_vm9, %v5748_v55 }
 0xe75   :  { %4677 = vmatpush3.xpose.msk.msra.mxu1 %vm605_vm9, %v3192_v1  ;;  %4678 = vmatprep.mubr.msk.f32.mxu1 %vm5163_vm0, %v5162_v0 }
 0xe76   :  { %4686 = vmatprep.subr.mxu1 %v5162_v0 }
 0xe77   :  { %v3358_v2 = vpop.permute.xlu1 %3357 }
 0xe78   :  { %4679 = vmatmul.mubr.msk.f32.vlgmr.msra.gmra.mrb[38].mxu1 %vm605_vm9, %v3190_v63 }
 0xe79   :  { %4687 = vmatpush3.xpose.msk.msra.mxu1 %vm605_vm9, %v3358_v2  ;;  %4688 = vmatprep.mubr.msk.f32.mxu1 %vm5163_vm0, %v5162_v0 }
 0xe7a   :  { %4696 = vmatprep.subr.mxu1 %v5162_v0 }
 0xe7b   :  { %v3524_v4 = vpop.permute.xlu1 %3523 }
 0xe7c   :  { %4689 = vmatmul.mubr.msk.f32.vlgmr.msra.gmra.mrb[40].mxu1 %vm605_vm9, %v3356_v3 }
 0xe7d   :  { %4697 = vmatpush3.xpose.msk.msra.mxu1 %vm605_vm9, %v3524_v4  ;;  %4698 = vmatprep.mubr.msk.f32.mxu1 %vm5163_vm0, %v5162_v0 }
 0xe7e   :  { %4706 = vmatprep.subr.bf16.mxu1 %v5162_v0 }
 0xe80   :  { %4699 = vmatmul.mubr.msk.f32.vlgmr.msra.gmra.mrb[42].mxu1 %vm605_vm9, %v3522_v5 }
 0xe81   :  { %4710 = vmatprep.mubr.msk.bf16.mxu1 %vm5163_vm0, %v5162_v0 }
 0xf36   :  { %v2419_v6 = vpop.f32.mrb[26].mxu0 }
 0xf37   :  { %v2423_v7 = vmul.f32 0.35355338, %v2419_v6  ;;  %v4630_v8 = vpop.f32.mrb[27].mxu0  ;;  %v2585_v9 = vpop.f32.mrb[22].mxu1 }
 0xf38   :  { %v2589_v10 = vmul.f32 0.35355338, %v2585_v9  ;;  %v4640_v11 = vpop.f32.mrb[23].mxu1 }
 0xf39   :  { %v2424_v12 = vsel %vm605_vm9, %v2423_v7, -inf }
 0xf3a   :  { %2425 = vmax.xlane.f32.xlu1 %v2424_v12  ;;  %v2590_v13 = vsel %vm605_vm9, %v2589_v10, -inf }
 0xf3b   :  { %2591 = vmax.xlane.f32.xlu0 %v2590_v13 }
 0xf3f   :  { %v2751_v14 = vpop.f32.mrb[32].mxu1 }
 0xf40   :  { %v2755_v15 = vmul.f32 0.35355338, %v2751_v14  ;;  %v4650_v16 = vpop.f32.mrb[33].mxu1 }
 0xf42   :  { %v2756_v17 = vsel %vm605_vm9, %v2755_v15, -inf }
 0xf43   :  { %v2917_v18 = vpop.f32.mrb[34].mxu1  ;;  %2757 = vmax.xlane.f32.xlu0 %v2756_v17 }
 0xf44   :  { %v2921_v45 = vmul.f32 0.35355338, %v2917_v18  ;;  %v4660_v19 = vpop.f32.mrb[35].mxu1 }
 0xf46   :  { %v2922_v20 = vsel %vm605_vm9, %v2921_v45, -inf }
 0xf47   :  { %2923 = vmax.xlane.f32.xlu0 %v2922_v20  ;;  %v3097_v21 = vpop.f32.mrb[36].mxu1 }
 0xf48   :  { %v3101_v22 = vmul.f32 0.35355338, %v3097_v21  ;;  %v4670_v23 = vpop.f32.mrb[37].mxu1 }
 0xf4a   :  { %v3102_v24 = vsel %vm605_vm9, %v3101_v22, -inf }
 0xf4b   :  { %v3263_v25 = vpop.f32.mrb[38].mxu1  ;;  %3103 = vmax.xlane.f32.xlu1 %v3102_v24 }
 0xf4c   :  { %v3267_v26 = vmul.f32 0.35355338, %v3263_v25  ;;  %v4680_v27 = vpop.f32.mrb[39].mxu1 }
 0xf4e   :  { %v3268_v28 = vsel %vm605_vm9, %v3267_v26, -inf }
 0xf4f   :  { %3269 = vmax.xlane.f32.xlu0 %v3268_v28  ;;  %v3429_v29 = vpop.f32.mrb[40].mxu1 }
 0xf50   :  { %v3433_v30 = vmul.f32 0.35355338, %v3429_v29  ;;  %v4690_v31 = vpop.f32.mrb[41].mxu1 }
 0xf52   :  { %v3434_v32 = vsel %vm605_vm9, %v3433_v30, -inf }
 0xf53   :  { %v3595_v33 = vpop.f32.mrb[42].mxu1  ;;  %3435 = vmax.xlane.f32.xlu1 %v3434_v32 }
 0xf54   :  { %v3599_v34 = vmul.f32 0.35355338, %v3595_v33  ;;  %v4700_v35 = vpop.f32.mrb[43].mxu1 }
 0xf56   :  { %v3600_v36 = vsel %vm605_vm9, %v3599_v34, -inf }
 0xf57   :  { %3601 = vmax.xlane.f32.xlu0 %v3600_v36 }
 0xf64   :  { %2601 = vrot.lane.b32.xlu1 %v5738_v51, %s5175_s26 }
 0xf68   :  { %2767 = vrot.lane.b32.xlu1 %v5738_v51, %s5173_s12 }
 0xf6d   :  { %2435 = vrot.lane.b32.xlu0 %v5738_v51, %s6070_s13 }
 0xfc7   :  { %v2426_v37 = vpop.xlane.xlu1 %2425 }
 0xfc8   :  { %v2427_v38 = vsub.f32 %v2423_v7, %v2426_v37  ;;  %v2592_v39 = vpop.xlane.xlu0 %2591 }
 0xfc9   :  { %v2593_v40 = vsub.f32 %v2589_v10, %v2592_v39 }
 0xfca   :  { %v2428_v42 = vmul.f32 1.442695, %v2427_v38 }
 0xfcb   :  { %v2594_v43 = vmul.f32 1.442695, %v2593_v40 }
 0xfcc   :  { %4879 = vpow2.f32 %v2428_v42 }
 0xfcd   :  { %4881 = vpow2.f32 %v2594_v43 }
 0xfd0   :  { %v2758_v48 = vpop.xlane.xlu0 %2757 }
 0xfd1   :  { %v2759_v58 = vsub.f32 %v2755_v15, %v2758_v48 }
 0xfd3   :  { %v2760_v61 = vmul.f32 1.442695, %v2759_v58 }
 0xfd4   :  { %v2924_v53 = vpop.xlane.xlu0 %2923 }
 0xfd5   :  { %v2925_v59 = vsub.f32 %v2921_v45, %v2924_v53  ;;  %4883 = vpow2.f32 %v2760_v61 }
 0xfd6   :  { %v5826_v44 = vpop.eup %4879 }
 0xfd7   :  { %v5828_v49 = vpop.eup %4881  ;;  %v2430_v50 = vsel %vm605_vm9, %v5826_v44, 0.0  ;;  %v2926_v62 = vmul.f32 1.442695, %v2925_v59 }
 0xfd8   :  { %2431 = vadd.xlane.f32.xlu1 %v2430_v50  ;;  %v2596_v52 = vsel %vm605_vm9, %v5828_v49, 0.0  ;;  %v3104_v60 = vpop.xlane.xlu1 %3103 }
 0xfd9   :  { %2597 = vadd.xlane.f32.xlu0 %v2596_v52  ;;  %v3105_v41 = vsub.f32 %v3101_v22, %v3104_v60  ;;  %4885 = vpow2.f32 %v2926_v62 }
 0xfdb   :  { %v3106_v2 = vmul.f32 1.442695, %v3105_v41  ;;  %v4827_v41 = vld [vmem:[%s6018_s11 + $0x10] sm:$0xff]  }
 0xfdc   :  { %v3270_v54 = vpop.xlane.xlu0 %3269  ;;  %4707 = vmatpush3.bf16.msra.mxu1 %v4827_v41 }
 0xfdd   :  { %v3271_v63 = vsub.f32 %v3267_v26, %v3270_v54  ;;  %4887 = vpow2.f32 %v3106_v2  ;;  %4708 = vmatprep.subr.bf16.mxu1 %v5162_v0 }
 0xfdf   :  { %v3272_v4 = vmul.f32 1.442695, %v3271_v63 }
 0xfe0   :  { %v3436_v1 = vpop.xlane.xlu1 %3435 }
 0xfe1   :  { %v3437_v3 = vsub.f32 %v3433_v30, %v3436_v1  ;;  %4889 = vpow2.f32 %v3272_v4  ;;  %v4828_v1 = vld [vmem:[%s6018_s11 + $0x18] sm:$0xff]  }
 0xfe2   :  { %4709 = vmatpush3.bf16.msra.mxu1 %v4828_v1  ;;  %v4334_v1 = vld [vmem:[%s6021_s14 + $0x1] ss:$0 sm:$0xff] }
 0xfe3   :  { %v3438_v5 = vmul.f32 1.442695, %v3437_v3  ;;  %4722 = vmatprep.subr.bf16.mxu1 %v5162_v0 }
 0xfe4   :  { %v3602_v56 = vpop.xlane.xlu0 %3601  ;;  %v2602_v45 = vpop.permute.xlu1 %2601 }
 0xfe5   :  { %v3603_v6 = vsub.f32 %v3599_v34, %v3602_v56  ;;  %4891 = vpow2.f32 %v3438_v5 }
 0xfe7   :  { %v3604_v7 = vmul.f32 1.442695, %v3603_v6 }
 0xfe8   :  { %v2436_v57 = vpop.permute.xlu0 %2435  ;;  %v2768_v19 = vpop.permute.xlu1 %2767 }
 0xfe9   :  { %4632 = vmatpush3.msra.mxu0 %v2436_v57  ;;  %3113 = vrot.lane.b32.xlu1 %v5748_v55, %s6070_s13  ;;  %4893 = vpow2.f32 %v3604_v7 }
 0xfea   :  { %4641 = vmatprep.subr.mxu0 %v5162_v0 }
 0xfef   :  { %2933 = vrot.lane.b32.xlu0 %v5738_v51, %s6071_s8  ;;  %v4884_v51 = vpop.eup %4883 }
 0xff0   :  { %v4886_v8 = vpop.eup %4885  ;;  %v2762_v9 = vsel %vm605_vm9, %v4884_v51, 0.0 }
 0xff1   :  { %v4888_v10 = vpop.eup %4887  ;;  %v2928_v11 = vsel %vm605_vm9, %v4886_v8, 0.0 }
 0xff2   :  { %v5841_v12 = vpop.eup %4889  ;;  %v3108_v13 = vsel %vm605_vm9, %v4888_v10, 0.0 }
 0xff3   :  { %v5844_v14 = vpop.eup %4891  ;;  %v3274_v15 = vsel %vm605_vm9, %v5841_v12, 0.0 }
 0xff4   :  { %v3440_v16 = vsel %vm605_vm9, %v5844_v14, 0.0  ;;  %v5850_v17 = vpop.eup %4893 }
 0xff5   :  { %v3606_v18 = vsel %vm605_vm9, %v5850_v17, 0.0 }
0x100d   :  { %2763 = vadd.xlane.f32.xlu1 %v2762_v9 }
0x100e   :  { %2929 = vadd.xlane.f32.xlu0 %v2928_v11 }
0x1011   :  { %3109 = vadd.xlane.f32.xlu1 %v3108_v13 }
0x1012   :  { %3275 = vadd.xlane.f32.xlu0 %v3274_v15 }
0x1015   :  { %3441 = vadd.xlane.f32.xlu1 %v3440_v16 }
0x1019   :  { %3607 = vadd.xlane.f32.xlu1 %v3606_v18 }
0x1028   :  { %3279 = vrot.lane.b32.xlu0 %v5748_v55, %s5175_s26 }
0x102a   :  { %3445 = vrot.lane.b32.xlu1 %v5748_v55, %s5173_s12  ;;  %s6073_s12 = smov 24  }
0x102c   :  { %3611 = vrot.lane.b32.xlu0 %v5748_v55, %s6071_s8 }
0x1065   :  { %v2432_v20 = vpop.xlane.xlu1 %2431 }
0x1066   :  { %4895 = vrcp.f32 %v2432_v20  ;;  %v2598_v21 = vpop.xlane.xlu0 %2597 }
0x1067   :  { %4897 = vrcp.f32 %v2598_v21 }
0x1069   :  { %v3114_v55 = vpop.permute.xlu1 %3113 }
0x106a   :  { %v2934_v26 = vpop.permute.xlu0 %2933 }
0x1070   :  { %v4896_v22 = vpop.eup %4895 }
0x1071   :  { %v2434_v23 = vmul.f32 %v4896_v22, %v5826_v44  ;;  %v4898_v24 = vpop.eup %4897 }
0x1072   :  { %v2600_v25 = vmul.f32 %v4898_v24, %v5828_v49 }
0x1073   :  { %4634 = vmatmul.mubr.msk.f32.vlgmr.msra.gmra.mrb[36].mxu0 %vm605_vm9, %v2434_v23 }
0x1074   :  { %4642 = vmatpush3.msra.mxu0 %v2602_v45  ;;  %4643 = vmatprep.mubr.msk.f32.mxu0 %vm5163_vm0, %v5162_v0 }
0x1075   :  { %4651 = vmatprep.subr.mxu0 %v5162_v0 }
0x1077   :  { %4644 = vmatmul.mubr.msk.f32.vlgmr.msra.gmra.mrb[38].mxu0 %vm605_vm9, %v2600_v25  ;;  %v4328_v25 = vld [vmem:[#allocation14 + $0x1] ss:$0 sm:$0xff] }
0x1078   :  { %4652 = vmatpush3.msra.mxu0 %v2768_v19  ;;  %4653 = vmatprep.mubr.msk.f32.mxu0 %vm5163_vm0, %v5162_v0 }
0x1079   :  { %4661 = vmatprep.subr.mxu0 %v5162_v0 }
0x109a   :  { %v2764_v27 = vpop.xlane.xlu1 %2763 }
0x109b   :  { %4899 = vrcp.f32 %v2764_v27  ;;  %v2930_v28 = vpop.xlane.xlu0 %2929 }
0x109c   :  { %4901 = vrcp.f32 %v2930_v28 }
0x109e   :  { %v3110_v29 = vpop.xlane.xlu1 %3109 }
0x109f   :  { %4903 = vrcp.f32 %v3110_v29  ;;  %v3276_v30 = vpop.xlane.xlu0 %3275 }
0x10a0   :  { %4905 = vrcp.f32 %v3276_v30 }
0x10a2   :  { %v3442_v31 = vpop.xlane.xlu1 %3441 }
0x10a3   :  { %4907 = vrcp.f32 %v3442_v31  ;;  %v3280_v40 = vpop.permute.xlu0 %3279 }
0x10a5   :  { %v4900_v32 = vpop.eup %4899 }
0x10a6   :  { %v2766_v33 = vmul.f32 %v4900_v32, %v4884_v51  ;;  %v4902_v34 = vpop.eup %4901  ;;  %v3608_v36 = vpop.xlane.xlu1 %3607 }
0x10a7   :  { %v2932_v35 = vmul.f32 %v4902_v34, %v4886_v8  ;;  %4909 = vrcp.f32 %v3608_v36  ;;  %v3612_v50 = vpop.permute.xlu0 %3611 }
0x10a8   :  { %4654 = vmatmul.mubr.msk.f32.vlgmr.msra.gmra.mrb[40].mxu0 %vm605_vm9, %v2766_v33 }
0x10a9   :  { %4662 = vmatpush3.msra.mxu0 %v2934_v26  ;;  %4663 = vmatprep.mubr.msk.f32.mxu0 %vm5163_vm0, %v5162_v0  ;;  %v4904_v37 = vpop.eup %4903 }
0x10aa   :  { %4671 = vmatprep.subr.mxu0 %v5162_v0  ;;  %v3112_v38 = vmul.f32 %v4904_v37, %v4888_v10  ;;  %v4906_v39 = vpop.eup %4905  ;;  %v3446_v44 = vpop.permute.xlu1 %3445 }
0x10ab   :  { %v3278_v42 = vmul.f32 %v4906_v39, %v5841_v12 }
0x10ac   :  { %4664 = vmatmul.mubr.msk.f32.vlgmr.msra.gmra.mrb[42].mxu0 %vm605_vm9, %v2932_v35 }
0x10ad   :  { %4672 = vmatpush3.msra.mxu0 %v3114_v55  ;;  %4673 = vmatprep.mubr.msk.f32.mxu0 %vm5163_vm0, %v5162_v0  ;;  %v4908_v43 = vpop.eup %4907 }
0x10ae   :  { %4681 = vmatprep.subr.mxu0 %v5162_v0  ;;  %v3444_v48 = vmul.f32 %v4908_v43, %v5844_v14 }
0x10b0   :  { %4674 = vmatmul.mubr.msk.f32.vlgmr.msra.gmra.mrb[44].mxu0 %vm605_vm9, %v3112_v38 }
0x10b1   :  { %4682 = vmatpush3.msra.mxu0 %v3280_v40  ;;  %4683 = vmatprep.mubr.msk.f32.mxu0 %vm5163_vm0, %v5162_v0  ;;  %v4910_v49 = vpop.eup %4909 }
0x10b2   :  { %4691 = vmatprep.subr.mxu0 %v5162_v0  ;;  %v3610_v52 = vmul.f32 %v4910_v49, %v5850_v17  ;;  %v4831_v49 = vld [vmem:[%s6024_s17 + $0x20] sm:$0xff]  }
0x10b4   :  { %4684 = vmatmul.mubr.msk.f32.vlgmr.msra.gmra.mrb[46].mxu0 %vm605_vm9, %v3278_v42 }
0x10b5   :  { %4692 = vmatpush3.msra.mxu0 %v3446_v44  ;;  %4693 = vmatprep.mubr.msk.f32.mxu0 %vm5163_vm0, %v5162_v0 }
0x10b6   :  { %4701 = vmatprep.subr.mxu0 %v5162_v0 }
0x10b8   :  { %4694 = vmatmul.mubr.msk.f32.vlgmr.msra.gmra.mrb[48].mxu0 %vm605_vm9, %v3444_v48  ;;  %v4830_v48 = vld [vmem:[%s6022_s15 + $0x18] sm:$0xff]  }
0x10b9   :  { %4702 = vmatpush3.msra.mxu0 %v3612_v50  ;;  %4703 = vmatprep.mubr.msk.f32.mxu0 %vm5163_vm0, %v5162_v0  ;;  %v4832_v50 = vld [vmem:[%s6024_s17 + $0x28] sm:$0xff]  }
0x10ba   :  { %4714 = vmatprep.subr.bf16.mxu0 %v5162_v0 }
0x10bc   :  { %4704 = vmatmul.mubr.msk.f32.vlgmr.msra.gmra.mrb[50].mxu0 %vm605_vm9, %v3610_v52 }
0x10bd   :  { %4718 = vmatprep.mubr.msk.bf16.mxu0 %vm5163_vm0, %v5162_v0 }
0x1146   :  { %v2507_v53 = vpop.f32.mrb[36].mxu0 }
0x1147   :  { %v4635_v54 = vpop.f32.mrb[37].mxu0 }
0x114a   :  { %v2673_v56 = vpop.f32.mrb[38].mxu0 }
0x114b   :  { %v4645_v57 = vpop.f32.mrb[39].mxu0 }
0x117b   :  { %v2839_v58 = vpop.f32.mrb[40].mxu0 }
0x117c   :  { %v4655_v59 = vpop.f32.mrb[41].mxu0 }
0x117f   :  { %v3005_v60 = vpop.f32.mrb[42].mxu0 }
0x1180   :  { %v4665_v61 = vpop.f32.mrb[43].mxu0 }
0x1181   :  { %v4333_v61 = vld [vmem:[#allocation16 + $0x1] ss:$0 sm:$0xff] }
0x1183   :  { %v3185_v62 = vpop.f32.mrb[44].mxu0 }
0x1184   :  { %v4675_v63 = vpop.f32.mrb[45].mxu0 }
0x1187   :  { %v3351_v2 = vpop.f32.mrb[46].mxu0 }
0x1188   :  { %v4799_v3 = vpack.i.bf16 %v3351_v2, %v2673_v56  ;;  %v4685_v4 = vpop.f32.mrb[47].mxu0 }
0x118a   :  { %4800 = vrot.lane.b32.xlu1 %v4799_v3, %s6072_s3 }
0x118b   :  { %v3517_v5 = vpop.f32.mrb[48].mxu0 }
0x118c   :  { %v4804_v6 = vpack.i.bf16 %v3517_v5, %v2839_v58  ;;  %v4695_v7 = vpop.f32.mrb[49].mxu0 }
0x118d   :  { %v4834_v7 = vld [vmem:[%s6024_s17 + $0x38] sm:$0xff]  }
0x118e   :  { %4805 = vrot.lane.b32.xlu0 %v4804_v6, %s6066_s4  ;;  %v4833_v6 = vld [vmem:[%s6024_s17 + $0x30] sm:$0xff]  }
0x118f   :  { %v3683_v51 = vpop.f32.mrb[50].mxu0 }
0x1190   :  { %v4809_v8 = vpack.i.bf16 %v3683_v51, %v3005_v60  ;;  %v4705_v9 = vpop.f32.mrb[51].mxu0  ;;  %v4340_v51 = vld [vmem:[%s6023_s16 + $0x1] ss:$0 sm:$0xff] }
0x1192   :  { %4810 = vrot.lane.b32.xlu1 %v4809_v8, %s6073_s12 }
0x11fc   :  { %v4801_v10 = vpop.permute.xlu1 %4800 }
0x11fd   :  { %v4803_v12 = vunpack.i.h.bf16 %v4801_v10  ;;  %v4802_v13 = vunpack.i.l.bf16 %v4801_v10 }
0x11ff   :  { %v3699_v17 = vsel %vm605_vm9, %v3185_v62, %v4803_v12  ;;  %v3021_v18 = vsel %vm605_vm9, %v2507_v53, %v4802_v13 }
0x1200   :  { %v4806_v11 = vpop.permute.xlu0 %4805 }
0x1201   :  { %v4808_v14 = vunpack.i.h.bf16 %v4806_v11  ;;  %v4807_v15 = vunpack.i.l.bf16 %v4806_v11 }
0x1203   :  { %v3700_v20 = vsel %vm200_vm1, %v3699_v17, %v4808_v14  ;;  %v3022_v21 = vsel %vm200_vm1, %v3021_v18, %v4807_v15  ;;  %v4027_v17 = vld [vmem:[#allocation5] sm:$0x7]  ;;  %v4026_v18 = vld [vmem:[#allocation2] sm:$0x3] }
0x1204   :  { %v4811_v16 = vpop.permute.xlu1 %4810 }
0x1205   :  { %v4813_v45 = vunpack.i.h.bf16 %v4811_v16  ;;  %v4812_v19 = vunpack.i.l.bf16 %v4811_v16 }
0x1207   :  { %v3701_v22 = vsel %vm1280_vm10, %v3700_v20, %v4813_v45  ;;  %v3023_v23 = vsel %vm1280_vm10, %v3022_v21, %v4812_v19  ;;  %v4041_v45 = vsel %vm362_vm3, %v4027_v17, 0  ;;  %v4028_v19 = vpack.c.bf16 %v4026_v18, %v4026_v18  ;;  %v4353_v20 = vld [vmem:[%s6025_s18 + $0x1] ss:$0 sm:$0xff] }
0x1208   :  { %v3707_v24 = vpack.c.bf16 %v3701_v22, %v3023_v23 }
0x120a   :  { %4711 = vmatmul.mubr.msk.bf16.vlgmr.msra.gmra.mrb[44].mxu1 %vm557_vm8, %v3707_v24 }
0x120b   :  { %4730 = vmatprep.mubr.msk.bf16.mxu1 %vm5163_vm0, %v5162_v0  ;;  %4723 = vmatpush3.bf16.msra.mxu1 %v4831_v49  ;;  %v4837_v49 = vld [vmem:[%s6029_s22 + $0x8] sm:$0xff]  }
0x120c   :  { %4724 = vmatprep.subr.bf16.mxu1 %v5162_v0 }
0x120f   :  { %4725 = vmatpush3.bf16.msra.mxu1 %v4832_v50 }
0x1210   :  { %4726 = vmatprep.subr.bf16.mxu1 %v5162_v0 }
0x1213   :  { %4727 = vmatpush3.bf16.msra.mxu1 %v4833_v6 }
0x1214   :  { %4728 = vmatprep.subr.bf16.mxu1 %v5162_v0 }
0x1217   :  { %4729 = vmatpush3.bf16.msra.mxu1 %v4834_v7 }
0x1218   :  { %4748 = vmatprep.subr.bf16.mxu1 %v5162_v0 }
0x12dd   :  { %v3765_v55 = vpop.f32.mrb[44].mxu1 }
0x12de   :  { %v3766_v26 = vadd.f32 %v4328_v25, %v3765_v55  ;;  %v4712_v27 = vpop.f32.mrb[45].mxu1 }
0x12df   :  { %v3768_v28 = vpop.f32.mrb[46].mxu1 }
0x12e0   :  { %v3769_v29 = vadd.f32 %v4328_v25, %v3768_v28  ;;  %v4713_v30 = vpop.f32.mrb[47].mxu1  ;;  %v3772_v31 = vadd.f32 %v3766_v26, %v5729_v46 }
0x12e2   :  { %v3773_v32 = vadd.f32 %v3769_v29, %v5731_v47  ;;  %v3778_v33 = vsel %vm557_vm8, %v3772_v31, 0.0  ;;  %v4829_v47 = vld [vmem:[%s6022_s15 + $0x10] sm:$0xff]  }
0x12e3   :  { %3779 = vadd.xlane.f32.xlu0 %v3778_v33  ;;  %4715 = vmatpush3.bf16.msra.mxu0 %v4829_v47 }
0x12e4   :  { %v3781_v34 = vsel %vm557_vm8, %v3773_v32, 0.0  ;;  %4716 = vmatprep.subr.bf16.mxu0 %v5162_v0 }
0x12e5   :  { %3782 = vadd.xlane.f32.xlu1 %v3781_v34 }
0x12e7   :  { %4717 = vmatpush3.bf16.msra.mxu0 %v4830_v48 }
0x12e8   :  { %4734 = vmatprep.subr.bf16.mxu0 %v5162_v0 }
0x1370   :  { %v3780_v35 = vpop.xlane.xlu0 %3779 }
0x1371   :  { %v3784_v36 = vmul.f32 0.03125, %v3780_v35 }
0x1372   :  { %v3783_v37 = vpop.xlane.xlu1 %3782 }
0x1373   :  { %v3786_v38 = vsub.f32 %v3772_v31, %v3784_v36  ;;  %v3785_v39 = vmul.f32 0.03125, %v3783_v37 }
0x1375   :  { %v3787_v40 = vsub.f32 %v3773_v32, %v3785_v39  ;;  %v3788_v42 = vmul.f32 %v3786_v38, %v3786_v38 }
0x1377   :  { %v3790_v43 = vsel %vm557_vm8, %v3788_v42, 0.0  ;;  %v3789_v44 = vmul.f32 %v3787_v40, %v3787_v40  ;;  %v4835_v42 = vld [vmem:[%s6029_s22] sm:$0xff]  }
0x1378   :  { %3791 = vadd.xlane.f32.xlu0 %v3790_v43  ;;  %v4363_v43 = vld [vmem:[#allocation7] ss:$0 sm:$0xff] }
0x1379   :  { %v3793_v46 = vsel %vm557_vm8, %v3789_v44, 0.0 }
0x137c   :  { %3794 = vadd.xlane.f32.xlu0 %v3793_v46  ;;  %v4838_v46 = vld [vmem:[%s6028_s21 + $0x8] sm:$0xff]  }
0x1405   :  { %v3792_v52 = vpop.xlane.xlu0 %3791 }
0x1406   :  { %v3796_v53 = vmul.f32 0.03125, %v3792_v52 }
0x1408   :  { %v3798_v54 = vadd.f32 1e-05, %v3796_v53 }
0x1409   :  { %v3795_v56 = vpop.xlane.xlu0 %3794 }
0x140a   :  { %4911 = vrsqrt.f32 %v3798_v54  ;;  %v3797_v57 = vmul.f32 0.03125, %v3795_v56 }
0x140c   :  { %v3799_v58 = vadd.f32 1e-05, %v3797_v57 }
0x140e   :  { %4913 = vrsqrt.f32 %v3799_v58 }
0x1414   :  { %v4912_v59 = vpop.eup %4911 }
0x1415   :  { %v3802_v60 = vmul.f32 %v4912_v59, %v3786_v38 }
0x1417   :  { %v3810_v62 = vmul.f32 %v4333_v61, %v3802_v60 }
0x1418   :  { %v4914_v41 = vpop.eup %4913 }
0x1419   :  { %v3803_v63 = vmul.f32 %v4914_v41, %v3787_v40  ;;  %v3818_v3 = vadd.f32 %v4334_v1, %v3810_v62  ;;  %v4836_v40 = vld [vmem:[%s6028_s21] sm:$0xff]  }
0x141b   :  { %v3811_v2 = vmul.f32 %v4333_v61, %v3803_v63  ;;  %v4361_v61 = vld [vmem:[%s6026_s19 + $0x1] ss:$0 sm:$0xff] }
0x141c   :  { %v4362_v63 = vld [vmem:[%s6027_s20 + $0x1] ss:$0 sm:$0xff]  ;;  %s5178_s20 = smov [#allocation17]  }
0x141d   :  { %v3819_v4 = vadd.f32 %v4334_v1, %v3811_v2  ;;  %s4225_s30 = sshll.u32 %s5178_s20, 4  ;;  %s4226_s30 = int_to_ptr.vmem [resolvable:$true] %s4225_s30 }
0x141e   :  { %s5117_s7 = scalar_lea.vmem %s4226_s30, 32  ;;  %p5122_p3 = scmp.lt.s32.totalorder %s4226_s30, %s4226_s30 }
0x141f   :  { %v3825_v5 = vpack.c.bf16 %v3819_v4, %v3818_v3  ;;  %p5118_p2 = scmp.ne.s32.totalorder %s4226_s30, %s5117_s7  ;;  %p5123_p4 = scmp.lt.s32.totalorder %s5117_s7, %s5117_s7 }
0x1421   :  { %4719 = vmatmul.mubr.msk.bf16.vlgmr.msra.gmra.mrb[52].mxu0 %vm557_vm8, %v3825_v5  ;;  %p5124_p5 = por %p5123_p4, %p5122_p3 }
0x1422   :  { %4736 = vmatprep.mubr.msk.bf16.mxu0 %vm5163_vm0, %v5162_v0  ;;  %4735 = vmatpush3.bf16.msra.mxu0 %v4041_v45 }
0x1423   :  { %4740 = vmatprep.subr.bf16.mxu0 %v5162_v0  ;;  %p5125_p6 = pnand %p5124_p5, %p5118_p2 }
0x1429   :  { %4737 = vmatmul.mubr.msk.bf16.vlgmr.msra.gmra.mrb[56].mxu0 %vm4036_vm12, %v4028_v19 }
0x142a   :  { %4744 = vmatprep.mubr.msk.bf16.mxu0 %vm5163_vm0, %v5162_v0  ;;  %4741 = vmatpush3.bf16.msra.mxu0 %v4835_v42 }
0x142b   :  { %4742 = vmatprep.subr.bf16.mxu0 %v5162_v0 }
0x142e   :  { %4743 = vmatpush3.bf16.msra.mxu0 %v4837_v49 }
0x14f4   :  { %v3883_v8 = vpop.f32.mrb[52].mxu0 }
0x14f5   :  { %v3884_v9 = vadd.f32 %v4340_v51, %v3883_v8  ;;  %v4720_v10 = vpop.f32.mrb[53].mxu0 }
0x14f6   :  { %v3886_v11 = vpop.f32.mrb[54].mxu0 }
0x14f7   :  { %v3887_v12 = vadd.f32 %v4340_v51, %v3886_v11  ;;  %v4721_v13 = vpop.f32.mrb[55].mxu0  ;;  %v3890_v14 = vmax.f32 %v3884_v9, 0.0 }
0x14f9   :  { %v3891_v15 = vmax.f32 %v3887_v12, 0.0 }
0x14fb   :  { %v3901_v16 = vpack.c.bf16 %v3891_v15, %v3890_v14  ;;  %v4371_v14 = vld [vmem:[%s6030_s23] ss:$0 sm:$0xff] }
0x14fc   :  { %v4077_v44 = vpop.f32.mrb[56].mxu0 }
0x14fd   :  { %4731 = vmatmul.mubr.msk.bf16.vlgmr.msra.gmra.mrb[48].mxu1 %vm2185_vm11, %v3901_v16  ;;  %v4078_v47 = vadd.f32 %v4363_v43, %v4077_v44  ;;  %v4738_v48 = vpop.f32.mrb[57].mxu0 }
0x14fe   :  { %4752 = vmatprep.mubr.msk.bf16.mxu1 %vm5163_vm0, %v5162_v0  ;;  %4749 = vmatpush3.bf16.msra.mxu1 %v4836_v40  ;;  %v4080_v50 = vpop.f32.mrb[58].mxu0 }
0x14ff   :  { %4750 = vmatprep.subr.bf16.mxu1 %v5162_v0  ;;  %v4094_v52 = vpack.c.bf16 %v4078_v47, %v4078_v47  ;;  %v4739_v53 = vpop.f32.mrb[59].mxu0 }
0x1502   :  { %4751 = vmatpush3.bf16.msra.mxu1 %v4838_v46 }
0x1505   :  { %4753 = vmatmul.mubr.msk.bf16.vlgmr.msra.gmra.mrb[52].mxu1 %vm557_vm8, %v4094_v52 }
0x15d0   :  { %v3971_v21 = vpop.f32.mrb[48].mxu1 }
0x15d1   :  { %v3972_v22 = vadd.f32 %v4353_v20, %v3971_v21  ;;  %v4732_v23 = vpop.f32.mrb[49].mxu1 }
0x15d2   :  { %v3974_v24 = vpop.f32.mrb[50].mxu1 }
0x15d3   :  { %v3975_v25 = vadd.f32 %v4353_v20, %v3974_v24  ;;  %v4733_v55 = vpop.f32.mrb[51].mxu1  ;;  %v3978_v26 = vadd.f32 %v3972_v22, %v3818_v3 }
0x15d5   :  { %v3979_v27 = vadd.f32 %v3975_v25, %v3819_v4  ;;  %v3984_v28 = vsel %vm557_vm8, %v3978_v26, 0.0 }
0x15d6   :  { %3985 = vadd.xlane.f32.xlu0 %v3984_v28 }
0x15d7   :  { %v3987_v29 = vsel %vm557_vm8, %v3979_v27, 0.0 }
0x15d8   :  { %3988 = vadd.xlane.f32.xlu1 %v3987_v29  ;;  %v4204_v9 = vpop.f32.mrb[52].mxu1 }
0x15d9   :  { %v4754_v10 = vpop.f32.mrb[53].mxu1 }
0x15da   :  { %v4207_v11 = vpop.f32.mrb[54].mxu1 }
0x15db   :  { %v4755_v12 = vpop.f32.mrb[55].mxu1 }
0x1663   :  { %v3986_v30 = vpop.xlane.xlu0 %3985 }
0x1664   :  { %v3990_v31 = vmul.f32 0.03125, %v3986_v30 }
0x1665   :  { %v3989_v32 = vpop.xlane.xlu1 %3988 }
0x1666   :  { %v3992_v33 = vsub.f32 %v3978_v26, %v3990_v31  ;;  %v3991_v34 = vmul.f32 0.03125, %v3989_v32 }
0x1668   :  { %v3993_v35 = vsub.f32 %v3979_v27, %v3991_v34  ;;  %v3994_v36 = vmul.f32 %v3992_v33, %v3992_v33 }
0x166a   :  { %v3996_v37 = vsel %vm557_vm8, %v3994_v36, 0.0  ;;  %v3995_v38 = vmul.f32 %v3993_v35, %v3993_v35 }
0x166b   :  { %3997 = vadd.xlane.f32.xlu0 %v3996_v37 }
0x166c   :  { %v3999_v39 = vsel %vm557_vm8, %v3995_v38, 0.0 }
0x166d   :  { %4000 = vadd.xlane.f32.xlu1 %v3999_v39 }
0x16f8   :  { %v3998_v54 = vpop.xlane.xlu0 %3997 }
0x16f9   :  { %v4002_v56 = vmul.f32 0.03125, %v3998_v54 }
0x16fa   :  { %v4001_v57 = vpop.xlane.xlu1 %4000 }
0x16fb   :  { %v4004_v58 = vadd.f32 1e-05, %v4002_v56  ;;  %v4003_v59 = vmul.f32 0.03125, %v4001_v57 }
0x16fd   :  { %4915 = vrsqrt.f32 %v4004_v58  ;;  %v4005_v60 = vadd.f32 1e-05, %v4003_v59 }
0x16ff   :  { %4917 = vrsqrt.f32 %v4005_v60 }
0x1707   :  { %v4916_v0 = vpop.eup %4915 }
0x1708   :  { %v4008_v41 = vmul.f32 %v4916_v0, %v3992_v33 }
0x1709   :  { %v4918_v62 = vpop.eup %4917 }
0x170a   :  { %v4016_v1 = vmul.f32 %v4361_v61, %v4008_v41  ;;  %v4009_v2 = vmul.f32 %v4918_v62, %v3993_v35 }
0x170c   :  { %v4024_v3 = vadd.f32 %v4362_v63, %v4016_v1  ;;  %v4017_v4 = vmul.f32 %v4361_v61, %v4009_v2 }
0x170e   :  { %v4025_v5 = vadd.f32 %v4362_v63, %v4017_v4  ;;  %v4084_v6 = vrot.slane %v4024_v3, 7 }
0x1710   :  { %v4087_v7 = vrot.slane %v4025_v5, 6 }
0x1712   :  { %v4089_v51 = vsel %vm476_vm4, %v4084_v6, %v4087_v7 }
0x1713   :  { %v4099_v8 = vpack.c.bf16 %v4089_v51, %v4089_v51 }
0x1715   :  { %4745 = vmatmul.mubr.msk.bf16.vlgmr.msra.gmra.mrb[60].mxu0 %vm557_vm8, %v4099_v8 }
0x17e8   :  { %v4149_v13 = vpop.f32.mrb[60].mxu0 }
0x17e9   :  { %v4205_v15 = vadd.f32 %v4204_v9, %v4149_v13  ;;  %v4746_v16 = vpop.f32.mrb[61].mxu0 }
0x17ea   :  { %v4152_v17 = vpop.f32.mrb[62].mxu0 }
0x17eb   :  { %v4217_v18 = vadd.f32 %v4371_v14, %v4205_v15  ;;  %v4747_v45 = vpop.f32.mrb[63].mxu0 }
0x17ed   :  { %4218 = vst [vmem:[#allocation17] sm:$0x3] %v4217_v18 }
0x17ee   :  { %5128 = shalt.err (!%p5125_p6)
}
0x17ef   :  { %s5129_s23 = scalar_lea.hbm %s6031_s24, 32 }
0x17f0   :  { %p5130_p7 = scmp.ne.s32.totalorder %s6031_s24, %s5129_s23  ;;  %p5133_p8 = scmp.lt.u32.totalorder %s5129_s23, %s6031_s24 }
0x17f2   :  { %p5135_p9 = pnand %p5133_p8, %p5130_p7 }
0x17f4   :  { %5138 = shalt.err (!%p5135_p9)
}
0x17f5   :  { %4228 = dma.vmem_to_hbm [thread:$0]  %s4226_s30, 32, %s6031_s24, [#allocation4]  }
0x17f6   :  { %5149 = dma.done.wait [#allocation4], 32  }
0x17f7   :  { %5150 = vsyncadd [#allocation4], 4294967264 }
0x17f8   :  { %4232 = vsyncpa [#allocation3], 1 }
0x17f9   :  { %4233 = vsyncpa [#allocation6], 1 }
0x17fa   :  { %4234 = vsyncpa [#allocation9], 1 }
0x17fb   :  { %4235 = vsyncpa [#allocation12], 1 }
0x17fc   :  { %4236 = vsyncpa [#allocation15], 1 }
0x17fd   :  { %4237 = vsyncpa [#allocation4], 1 }

</bundles_post_ra>
